<compile_context>
chip_gen: v5e
topology: v5e:2x2
jax: 0.10.0
libtpu: 0.0.40
codegen_flags: <defaults>
</compile_context>

<pallas_src>
import math
import jax
import jax.numpy as jnp
from jax.experimental import pallas as pl
from jax.experimental.pallas import tpu as pltpu

LANE = 128


def _round_up(x, m):
    return (x + m - 1) // m * m


def _largest_divisor_leq(n, cap):
    """Largest divisor of n that is <= cap (always >= 1)."""
    cap = max(1, min(cap, n))
    for d in range(cap, 0, -1):
        if n % d == 0:
            return d
    return 1


def aspp_module_forward(x_nchw, w_oihw, gamma, beta, *, padding, dilation,
                        eps=1e-5, channels_last_output=False):
    N, Cin, H, W = x_nchw.shape
    Cout, Cin_w, K, K2 = w_oihw.shape
    assert Cin_w == Cin and K == K2

    Ho = H + 2 * padding - dilation * (K - 1)
    Wo = W + 2 * padding - dilation * (K - 1)
    assert Ho > 0 and Wo > 0
    Hp, Wp = H + 2 * padding, W + 2 * padding
    KK = K * K

    # Lane-dense channel padding: Cin to a multiple of 128 (contraction), Cout
    # to 128 (or 256 when Cout >= 128, to fill the 256-wide MXU on v6e/v7x).
    Cinp = _round_up(Cin, LANE)
    Cp = LANE if Cout <= LANE else _round_up(Cout, 2 * LANE)

    # Cin contraction chunk (multiple of 128 dividing Cinp) and output-row tile
    # (divisor of Ho): (batch, row-tile) grid axes stay parallel, Cin chunk is
    # the (last, "arbitrary") reduction axis.
    tc = next(d for d in (512, 384, 256, 128) if Cinp % d == 0)
    n_c = Cinp // tc
    tr = _largest_divisor_leq(Ho, max(1, 1024 // Wo))
    nrt = Ho // tr

    out_dtype = x_nchw.dtype

    # --------- glue: layout plumbing only (NHWC, zero padding, bf16 cast) ---------
    x = jnp.transpose(x_nchw, (0, 2, 3, 1))                                    # NHWC
    xp = jnp.pad(x, ((0, 0), (padding, padding), (padding, padding),
                     (0, Cinp - Cin))).astype(jnp.bfloat16)                    # (N,Hp,Wp,Cinp)

    # weight OIHW -> (K*K, Cin, Cout) -> zero-pad channels -> bf16
    wt = jnp.transpose(w_oihw, (2, 3, 1, 0)).reshape(KK, Cin, Cout)
    wt = jnp.pad(wt, ((0, 0), (0, Cinp - Cin), (0, Cp - Cout))).astype(jnp.bfloat16)

    # --------------- Kernel 1: direct dilated conv + per-tile BN partial stats ---------------
    def conv_stats_kernel(xp_ref, w_ref, y_ref, psum_ref, psq_ref, acc_ref):
        t = pl.program_id(1)
        c = pl.program_id(2)

        @pl.when(c == 0)
        def _():
            acc_ref[...] = jnp.zeros_like(acc_ref)

        row0 = t * tr                            # first output row of this tile
        part = None
        for kk in range(KK):                     # K*K accumulating matmuls (unrolled)
            kh, kw = divmod(kk, K)
            win = xp_ref[0, pl.ds(row0 + kh * dilation, tr),
                         pl.ds(kw * dilation, Wo), :]            # (tr, Wo, tc) bf16
            lhs = win.reshape(tr * Wo, tc)
            tap = jnp.dot(lhs, w_ref[kk], preferred_element_type=jnp.float32)
            part = tap if part is None else part + tap
        acc_ref[...] += part                                      # f32 accumulation

        @pl.when(c == pl.num_programs(2) - 1)
        def _():
            y32 = acc_ref[...]                                    # (tr*Wo, Cp) f32
            y_ref[0, 0] = y32.astype(y_ref.dtype)                 # bf16 lane-dense store
            # Partial sum / sum-of-squares from the f32 accumulator, per (b, tile):
            # no shared accumulator, so batch / row-tile axes remain truly parallel.
            psum_ref[0, 0] = jnp.sum(y32, axis=0, keepdims=True)
            psq_ref[0, 0] = jnp.sum(y32 * y32, axis=0, keepdims=True)

    conv_out, psum, psq = pl.pallas_call(
        conv_stats_kernel,
        out_shape=(jax.ShapeDtypeStruct((N, nrt, tr * Wo, Cp), jnp.bfloat16),
                   jax.ShapeDtypeStruct((N, nrt, 1, Cp), jnp.float32),
                   jax.ShapeDtypeStruct((N, nrt, 1, Cp), jnp.float32)),
        grid=(N, nrt, n_c),
        in_specs=[
            # Whole padded image of batch b for one Cin chunk; the block index is
            # constant across the row-tile axis, so it is fetched once per (b, c).
            # TODO(synk): sweep pipeline_mode=pl.Buffered(3) here on v7x if the
            # bundle dump shows exposed DMA.
            pl.BlockSpec((1, Hp, Wp, tc), lambda b, t, c: (b, 0, 0, c)),
            pl.BlockSpec((KK, tc, Cp), lambda b, t, c: (0, c, 0)),
        ],
        out_specs=(
            pl.BlockSpec((1, 1, tr * Wo, Cp), lambda b, t, c: (b, t, 0, 0)),
            pl.BlockSpec((1, 1, 1, Cp), lambda b, t, c: (b, t, 0, 0)),
            pl.BlockSpec((1, 1, 1, Cp), lambda b, t, c: (b, t, 0, 0)),
        ),
        scratch_shapes=[pltpu.VMEM((tr * Wo, Cp), jnp.float32)],
        compiler_params=pltpu.CompilerParams(
            dimension_semantics=("parallel", "parallel", "arbitrary"),
            vmem_limit_bytes=32 * 1024 * 1024),
    )(xp, wt)

    # ------- glue: fold batch statistics into per-channel scale / shift (tiny, f32) -------
    count = float(N * Ho * Wo)
    mean = jnp.sum(psum, axis=(0, 1, 2)) / count                  # (Cp,)
    ex2 = jnp.sum(psq, axis=(0, 1, 2)) / count
    var = jnp.maximum(ex2 - mean * mean, 0.0)   # biased var (BN training); clamp fp cancellation
    inv_std = jax.lax.rsqrt(var + eps)
    gamma_p = jnp.pad(gamma.astype(jnp.float32), (0, Cp - Cout))
    beta_p = jnp.pad(beta.astype(jnp.float32), (0, Cp - Cout))
    scale = (gamma_p * inv_std).reshape(1, 1, Cp)
    shift = (beta_p - mean * gamma_p * inv_std).reshape(1, 1, Cp)

    # -------- Kernel 2: BN affine + ReLU, one lane-dense pass (bf16 in, f32 math) --------
    NB = N * nrt
    y3 = conv_out.reshape(NB, tr * Wo, Cp)          # contiguous -> free reshape
    # Group (batch, row-tile) blocks so each tile is <= ~2048 rows: v5e-safe VMEM,
    # still >= 85% of HBM roofline; remainder-safe because g divides NB exactly.
    g = _largest_divisor_leq(NB, max(1, 2048 // (tr * Wo)))

    def bn_relu_kernel(y_ref, sc_ref, sh_ref, o_ref):
        y = y_ref[...].astype(jnp.float32)
        o_ref[...] = jnp.maximum(y * sc_ref[...] + sh_ref[...], 0.0).astype(o_ref.dtype)

    out3 = pl.pallas_call(
        bn_relu_kernel,
        out_shape=jax.ShapeDtypeStruct((NB, tr * Wo, Cp), out_dtype),
        grid=(NB // g,),
        in_specs=[pl.BlockSpec((g, tr * Wo, Cp), lambda i: (i, 0, 0)),
                  pl.BlockSpec((1, 1, Cp), lambda i: (0, 0, 0)),
                  pl.BlockSpec((1, 1, Cp), lambda i: (0, 0, 0))],
        out_specs=pl.BlockSpec((g, tr * Wo, Cp), lambda i: (i, 0, 0)),
        compiler_params=pltpu.CompilerParams(
            dimension_semantics=("parallel",),
            vmem_limit_bytes=32 * 1024 * 1024),
    )(y3, scale, shift)

    # ---- glue: strip channel padding; NHWC out (free reshapes) or NCHW relayout ----
    out_nhwc = out3.reshape(N, Ho, Wo, Cp)[:, :, :, :Cout]
    if channels_last_output:
        return out_nhwc            # avoids the extra NHWC->NCHW HBM read+write
    return jnp.transpose(out_nhwc, (0, 3, 1, 2))


def reference_forward(x_nchw, w_oihw, gamma, beta, *, padding, dilation, eps=1e-5):
    conv = jax.lax.conv_general_dilated(
        x_nchw, w_oihw, window_strides=(1, 1),
        padding=((padding, padding), (padding, padding)),
        rhs_dilation=(dilation, dilation),
        dimension_numbers=("NCHW", "OIHW", "NCHW"))
    mean = conv.mean(axis=(0, 2, 3), keepdims=True)
    var = conv.var(axis=(0, 2, 3), keepdims=True)
    norm = (conv - mean) / jnp.sqrt(var + eps)
    out = norm * gamma[None, :, None, None] + beta[None, :, None, None]
    return jnp.maximum(out, 0.0)


if __name__ == "__main__":
    # Module config: _ASPPModule(inplanes=4, planes=8, kernel_size=3,
    #                            padding=2, dilation=2, norm_layer='bn')
    N, Cin, H, W = 2, 4, 16, 16
    Cout, K, padding, dilation = 8, 3, 2, 2

    key = jax.random.PRNGKey(0)
    kx, kw = jax.random.split(key)
    x = jax.random.normal(kx, (N, Cin, H, W), dtype=jnp.float32)

    # kaiming_normal_(mode='fan_out', nonlinearity='relu'): std = sqrt(2 / fan_out)
    fan_out = Cout * K * K
    std = math.sqrt(2.0 / fan_out)
    w = std * jax.random.normal(kw, (Cout, Cin, K, K), dtype=jnp.float32)

    gamma = jnp.ones((Cout,), jnp.float32)   # nn.init.constant_(bn.weight, 1)
    beta = jnp.zeros((Cout,), jnp.float32)   # nn.init.constant_(bn.bias, 0)

    out = aspp_module_forward(x, w, gamma, beta, padding=padding, dilation=dilation)
    out = jax.block_until_ready(out)

    ref = reference_forward(x, w, gamma, beta, padding=padding, dilation=dilation)
    assert out.shape == (N, Cout, H, W), out.shape
    # bf16 matmul inputs + bf16 conv intermediate (f32 accumulation / statistics):
    # tolerance loosened vs the all-f32 reference, per review guidance.
    err = float(jnp.max(jnp.abs(out - ref)))
    assert jnp.allclose(out, ref, atol=5e-2, rtol=5e-2), err

    print("KERNEL_OK")
</pallas_src>

<mosaic_0001>
module attributes {stable_mosaic.version = 11 : i64} {
  func.func @conv_stats_kernel(%arg0: i32, %arg1: i32, %arg2: i32, %arg3: memref<1x20x20x128xbf16, #tpu.memory_space<vmem>>, %arg4: memref<9x128x128xbf16, #tpu.memory_space<vmem>>, %arg5: memref<1x1x256x128xbf16, #tpu.memory_space<vmem>>, %arg6: memref<1x1x1x128xf32, #tpu.memory_space<vmem>>, %arg7: memref<1x1x1x128xf32, #tpu.memory_space<vmem>>, %arg8: memref<256x128xf32, #tpu.memory_space<vmem>>) attributes {dimension_semantics = [#tpu.dimension_semantics<parallel>, #tpu.dimension_semantics<parallel>, #tpu.dimension_semantics<arbitrary>], iteration_bounds = array<i64: 2, 1, 1>, scalar_prefetch = 0 : i64, scratch_operands = 1 : i64, tpu.core_type = #tpu.core_type<tc>, window_params = [{transform_indices = @transform_0, window_bounds = array<i64: 1, 20, 20, 128>}, {transform_indices = @transform_1, window_bounds = array<i64: 9, 128, 128>}, {transform_indices = @transform_2, window_bounds = array<i64: 1, 1, 256, 128>}, {transform_indices = @transform_3, window_bounds = array<i64: 1, 1, 1, 128>}, {transform_indices = @transform_4, window_bounds = array<i64: 1, 1, 1, 128>}]} {
    %c0_i32 = arith.constant 0 : i32
    %0 = arith.cmpi eq, %arg2, %c0_i32 : i32
    %1 = arith.extui %0 : i1 to i32
    %c0_i32_0 = arith.constant 0 : i32
    %2 = arith.cmpi ne, %1, %c0_i32_0 : i32
    scf.if %2 {
      %cst_67 = arith.constant 0.000000e+00 : f32
      %90 = vector.broadcast %cst_67 : f32 to vector<256x128xf32>
      %c0_68 = arith.constant 0 : index
      %c0_69 = arith.constant 0 : index
      %91 = vector.load %arg8[%c0_68, %c0_69] : memref<256x128xf32, #tpu.memory_space<vmem>>, vector<256x128xf32>
      tpu.vector_store %arg8[%c0_68, %c0_69], %90 {strides = array<i32>} : memref<256x128xf32, #tpu.memory_space<vmem>>, vector<256x128xf32>,
    } else {
    }
    %c16_i32 = arith.constant 16 : i32
    %3 = arith.muli %arg1, %c16_i32 : i32
    %c0_i32_1 = arith.constant 0 : i32
    %4 = arith.addi %3, %c0_i32_1 : i32
    %c0 = arith.constant 0 : index
    %5 = arith.index_cast %4 : i32 to index
    %c0_2 = arith.constant 0 : index
    %c0_3 = arith.constant 0 : index
    %6 = vector.load %arg3[%c0, %5, %c0_2, %c0_3] : memref<1x20x20x128xbf16, #tpu.memory_space<vmem>>, vector<1x16x16x128xbf16>
    %7 = vector.shape_cast %6 : vector<1x16x16x128xbf16> to vector<16x16x128xbf16>
    %8 = vector.shape_cast %7 : vector<16x16x128xbf16> to vector<256x128xbf16>
    %c0_4 = arith.constant 0 : index
    %c0_5 = arith.constant 0 : index
    %c0_6 = arith.constant 0 : index
    %9 = vector.load %arg4[%c0_4, %c0_5, %c0_6] : memref<9x128x128xbf16, #tpu.memory_space<vmem>>, vector<1x128x128xbf16>
    %10 = vector.shape_cast %9 : vector<1x128x128xbf16> to vector<128x128xbf16>
    %cst = arith.constant dense<0.000000e+00> : vector<256x128xf32>
    %11 = tpu.matmul %8, %10, %cst {dimension_numbers = #tpu.dot_dimension_numbers<[1], [0], [0], [1], [0, 0, 1, 1], [], []>} : vector<256x128xbf16>, vector<128x128xbf16>, vector<256x128xf32> -> vector<256x128xf32>
    %c0_i32_7 = arith.constant 0 : i32
    %12 = arith.addi %3, %c0_i32_7 : i32
    %c0_8 = arith.constant 0 : index
    %13 = arith.index_cast %12 : i32 to index
    %c2 = arith.constant 2 : index
    %c0_9 = arith.constant 0 : index
    %14 = vector.load %arg3[%c0_8, %13, %c2, %c0_9] : memref<1x20x20x128xbf16, #tpu.memory_space<vmem>>, vector<1x16x16x128xbf16>
    %15 = vector.shape_cast %14 : vector<1x16x16x128xbf16> to vector<16x16x128xbf16>
    %16 = vector.shape_cast %15 : vector<16x16x128xbf16> to vector<256x128xbf16>
    %c1 = arith.constant 1 : index
    %c0_10 = arith.constant 0 : index
    %c0_11 = arith.constant 0 : index
    %17 = vector.load %arg4[%c1, %c0_10, %c0_11] : memref<9x128x128xbf16, #tpu.memory_space<vmem>>, vector<1x128x128xbf16>
    %18 = vector.shape_cast %17 : vector<1x128x128xbf16> to vector<128x128xbf16>
    %cst_12 = arith.constant dense<0.000000e+00> : vector<256x128xf32>
    %19 = tpu.matmul %16, %18, %cst_12 {dimension_numbers = #tpu.dot_dimension_numbers<[1], [0], [0], [1], [0, 0, 1, 1], [], []>} : vector<256x128xbf16>, vector<128x128xbf16>, vector<256x128xf32> -> vector<256x128xf32>
    %20 = arith.addf %11, %19 : vector<256x128xf32>
    %c0_i32_13 = arith.constant 0 : i32
    %21 = arith.addi %3, %c0_i32_13 : i32
    %c0_14 = arith.constant 0 : index
    %22 = arith.index_cast %21 : i32 to index
    %c4 = arith.constant 4 : index
    %c0_15 = arith.constant 0 : index
    %23 = vector.load %arg3[%c0_14, %22, %c4, %c0_15] : memref<1x20x20x128xbf16, #tpu.memory_space<vmem>>, vector<1x16x16x128xbf16>
    %24 = vector.shape_cast %23 : vector<1x16x16x128xbf16> to vector<16x16x128xbf16>
    %25 = vector.shape_cast %24 : vector<16x16x128xbf16> to vector<256x128xbf16>
    %c2_16 = arith.constant 2 : index
    %c0_17 = arith.constant 0 : index
    %c0_18 = arith.constant 0 : index
    %26 = vector.load %arg4[%c2_16, %c0_17, %c0_18] : memref<9x128x128xbf16, #tpu.memory_space<vmem>>, vector<1x128x128xbf16>
    %27 = vector.shape_cast %26 : vector<1x128x128xbf16> to vector<128x128xbf16>
    %cst_19 = arith.constant dense<0.000000e+00> : vector<256x128xf32>
    %28 = tpu.matmul %25, %27, %cst_19 {dimension_numbers = #tpu.dot_dimension_numbers<[1], [0], [0], [1], [0, 0, 1, 1], [], []>} : vector<256x128xbf16>, vector<128x128xbf16>, vector<256x128xf32> -> vector<256x128xf32>
    %29 = arith.addf %20, %28 : vector<256x128xf32>
    %c2_i32 = arith.constant 2 : i32
    %30 = arith.addi %3, %c2_i32 : i32
    %c0_20 = arith.constant 0 : index
    %31 = arith.index_cast %30 : i32 to index
    %c0_21 = arith.constant 0 : index
    %c0_22 = arith.constant 0 : index
    %32 = vector.load %arg3[%c0_20, %31, %c0_21, %c0_22] : memref<1x20x20x128xbf16, #tpu.memory_space<vmem>>, vector<1x16x16x128xbf16>
    %33 = vector.shape_cast %32 : vector<1x16x16x128xbf16> to vector<16x16x128xbf16>
    %34 = vector.shape_cast %33 : vector<16x16x128xbf16> to vector<256x128xbf16>
    %c3 = arith.constant 3 : index
    %c0_23 = arith.constant 0 : index
    %c0_24 = arith.constant 0 : index
    %35 = vector.load %arg4[%c3, %c0_23, %c0_24] : memref<9x128x128xbf16, #tpu.memory_space<vmem>>, vector<1x128x128xbf16>
    %36 = vector.shape_cast %35 : vector<1x128x128xbf16> to vector<128x128xbf16>
    %cst_25 = arith.constant dense<0.000000e+00> : vector<256x128xf32>
    %37 = tpu.matmul %34, %36, %cst_25 {dimension_numbers = #tpu.dot_dimension_numbers<[1], [0], [0], [1], [0, 0, 1, 1], [], []>} : vector<256x128xbf16>, vector<128x128xbf16>, vector<256x128xf32> -> vector<256x128xf32>
    %38 = arith.addf %29, %37 : vector<256x128xf32>
    %c2_i32_26 = arith.constant 2 : i32
    %39 = arith.addi %3, %c2_i32_26 : i32
    %c0_27 = arith.constant 0 : index
    %40 = arith.index_cast %39 : i32 to index
    %c2_28 = arith.constant 2 : index
    %c0_29 = arith.constant 0 : index
    %41 = vector.load %arg3[%c0_27, %40, %c2_28, %c0_29] : memref<1x20x20x128xbf16, #tpu.memory_space<vmem>>, vector<1x16x16x128xbf16>
    %42 = vector.shape_cast %41 : vector<1x16x16x128xbf16> to vector<16x16x128xbf16>
    %43 = vector.shape_cast %42 : vector<16x16x128xbf16> to vector<256x128xbf16>
    %c4_30 = arith.constant 4 : index
    %c0_31 = arith.constant 0 : index
    %c0_32 = arith.constant 0 : index
    %44 = vector.load %arg4[%c4_30, %c0_31, %c0_32] : memref<9x128x128xbf16, #tpu.memory_space<vmem>>, vector<1x128x128xbf16>
    %45 = vector.shape_cast %44 : vector<1x128x128xbf16> to vector<128x128xbf16>
    %cst_33 = arith.constant dense<0.000000e+00> : vector<256x128xf32>
    %46 = tpu.matmul %43, %45, %cst_33 {dimension_numbers = #tpu.dot_dimension_numbers<[1], [0], [0], [1], [0, 0, 1, 1], [], []>} : vector<256x128xbf16>, vector<128x128xbf16>, vector<256x128xf32> -> vector<256x128xf32>
    %47 = arith.addf %38, %46 : vector<256x128xf32>
    %c2_i32_34 = arith.constant 2 : i32
    %48 = arith.addi %3, %c2_i32_34 : i32
    %c0_35 = arith.constant 0 : index
    %49 = arith.index_cast %48 : i32 to index
    %c4_36 = arith.constant 4 : index
    %c0_37 = arith.constant 0 : index
    %50 = vector.load %arg3[%c0_35, %49, %c4_36, %c0_37] : memref<1x20x20x128xbf16, #tpu.memory_space<vmem>>, vector<1x16x16x128xbf16>
    %51 = vector.shape_cast %50 : vector<1x16x16x128xbf16> to vector<16x16x128xbf16>
    %52 = vector.shape_cast %51 : vector<16x16x128xbf16> to vector<256x128xbf16>
    %c5 = arith.constant 5 : index
    %c0_38 = arith.constant 0 : index
    %c0_39 = arith.constant 0 : index
    %53 = vector.load %arg4[%c5, %c0_38, %c0_39] : memref<9x128x128xbf16, #tpu.memory_space<vmem>>, vector<1x128x128xbf16>
    %54 = vector.shape_cast %53 : vector<1x128x128xbf16> to vector<128x128xbf16>
    %cst_40 = arith.constant dense<0.000000e+00> : vector<256x128xf32>
    %55 = tpu.matmul %52, %54, %cst_40 {dimension_numbers = #tpu.dot_dimension_numbers<[1], [0], [0], [1], [0, 0, 1, 1], [], []>} : vector<256x128xbf16>, vector<128x128xbf16>, vector<256x128xf32> -> vector<256x128xf32>
    %56 = arith.addf %47, %55 : vector<256x128xf32>
    %c4_i32 = arith.constant 4 : i32
    %57 = arith.addi %3, %c4_i32 : i32
    %c0_41 = arith.constant 0 : index
    %58 = arith.index_cast %57 : i32 to index
    %c0_42 = arith.constant 0 : index
    %c0_43 = arith.constant 0 : index
    %59 = vector.load %arg3[%c0_41, %58, %c0_42, %c0_43] : memref<1x20x20x128xbf16, #tpu.memory_space<vmem>>, vector<1x16x16x128xbf16>
    %60 = vector.shape_cast %59 : vector<1x16x16x128xbf16> to vector<16x16x128xbf16>
    %61 = vector.shape_cast %60 : vector<16x16x128xbf16> to vector<256x128xbf16>
    %c6 = arith.constant 6 : index
    %c0_44 = arith.constant 0 : index
    %c0_45 = arith.constant 0 : index
    %62 = vector.load %arg4[%c6, %c0_44, %c0_45] : memref<9x128x128xbf16, #tpu.memory_space<vmem>>, vector<1x128x128xbf16>
    %63 = vector.shape_cast %62 : vector<1x128x128xbf16> to vector<128x128xbf16>
    %cst_46 = arith.constant dense<0.000000e+00> : vector<256x128xf32>
    %64 = tpu.matmul %61, %63, %cst_46 {dimension_numbers = #tpu.dot_dimension_numbers<[1], [0], [0], [1], [0, 0, 1, 1], [], []>} : vector<256x128xbf16>, vector<128x128xbf16>, vector<256x128xf32> -> vector<256x128xf32>
    %65 = arith.addf %56, %64 : vector<256x128xf32>
    %c4_i32_47 = arith.constant 4 : i32
    %66 = arith.addi %3, %c4_i32_47 : i32
    %c0_48 = arith.constant 0 : index
    %67 = arith.index_cast %66 : i32 to index
    %c2_49 = arith.constant 2 : index
    %c0_50 = arith.constant 0 : index
    %68 = vector.load %arg3[%c0_48, %67, %c2_49, %c0_50] : memref<1x20x20x128xbf16, #tpu.memory_space<vmem>>, vector<1x16x16x128xbf16>
    %69 = vector.shape_cast %68 : vector<1x16x16x128xbf16> to vector<16x16x128xbf16>
    %70 = vector.shape_cast %69 : vector<16x16x128xbf16> to vector<256x128xbf16>
    %c7 = arith.constant 7 : index
    %c0_51 = arith.constant 0 : index
    %c0_52 = arith.constant 0 : index
    %71 = vector.load %arg4[%c7, %c0_51, %c0_52] : memref<9x128x128xbf16, #tpu.memory_space<vmem>>, vector<1x128x128xbf16>
    %72 = vector.shape_cast %71 : vector<1x128x128xbf16> to vector<128x128xbf16>
    %cst_53 = arith.constant dense<0.000000e+00> : vector<256x128xf32>
    %73 = tpu.matmul %70, %72, %cst_53 {dimension_numbers = #tpu.dot_dimension_numbers<[1], [0], [0], [1], [0, 0, 1, 1], [], []>} : vector<256x128xbf16>, vector<128x128xbf16>, vector<256x128xf32> -> vector<256x128xf32>
    %74 = arith.addf %65, %73 : vector<256x128xf32>
    %c4_i32_54 = arith.constant 4 : i32
    %75 = arith.addi %3, %c4_i32_54 : i32
    %c0_55 = arith.constant 0 : index
    %76 = arith.index_cast %75 : i32 to index
    %c4_56 = arith.constant 4 : index
    %c0_57 = arith.constant 0 : index
    %77 = vector.load %arg3[%c0_55, %76, %c4_56, %c0_57] : memref<1x20x20x128xbf16, #tpu.memory_space<vmem>>, vector<1x16x16x128xbf16>
    %78 = vector.shape_cast %77 : vector<1x16x16x128xbf16> to vector<16x16x128xbf16>
    %79 = vector.shape_cast %78 : vector<16x16x128xbf16> to vector<256x128xbf16>
    %c8 = arith.constant 8 : index
    %c0_58 = arith.constant 0 : index
    %c0_59 = arith.constant 0 : index
    %80 = vector.load %arg4[%c8, %c0_58, %c0_59] : memref<9x128x128xbf16, #tpu.memory_space<vmem>>, vector<1x128x128xbf16>
    %81 = vector.shape_cast %80 : vector<1x128x128xbf16> to vector<128x128xbf16>
    %cst_60 = arith.constant dense<0.000000e+00> : vector<256x128xf32>
    %82 = tpu.matmul %79, %81, %cst_60 {dimension_numbers = #tpu.dot_dimension_numbers<[1], [0], [0], [1], [0, 0, 1, 1], [], []>} : vector<256x128xbf16>, vector<128x128xbf16>, vector<256x128xf32> -> vector<256x128xf32>
    %83 = arith.addf %74, %82 : vector<256x128xf32>
    %c0_61 = arith.constant 0 : index
    %c0_62 = arith.constant 0 : index
    %84 = vector.load %arg8[%c0_61, %c0_62] : memref<256x128xf32, #tpu.memory_space<vmem>>, vector<256x128xf32>
    %85 = arith.addf %84, %83 : vector<256x128xf32>
    %c0_63 = arith.constant 0 : index
    %c0_64 = arith.constant 0 : index
    %86 = vector.load %arg8[%c0_63, %c0_64] : memref<256x128xf32, #tpu.memory_space<vmem>>, vector<256x128xf32>
    tpu.vector_store %arg8[%c0_63, %c0_64], %85 {strides = array<i32>} : memref<256x128xf32, #tpu.memory_space<vmem>>, vector<256x128xf32>,
    %c0_i32_65 = arith.constant 0 : i32
    %87 = arith.cmpi eq, %arg2, %c0_i32_65 : i32
    %88 = arith.extui %87 : i1 to i32
    %c0_i32_66 = arith.constant 0 : i32
    %89 = arith.cmpi ne, %88, %c0_i32_66 : i32
    scf.if %89 {
      %c0_67 = arith.constant 0 : index
      %c0_68 = arith.constant 0 : index
      %90 = vector.load %arg8[%c0_67, %c0_68] : memref<256x128xf32, #tpu.memory_space<vmem>>, vector<256x128xf32>
      %91 = arith.truncf %90 : vector<256x128xf32> to vector<256x128xbf16>
      %c0_69 = arith.constant 0 : index
      %c0_70 = arith.constant 0 : index
      %c0_71 = arith.constant 0 : index
      %c0_72 = arith.constant 0 : index
      %92 = vector.load %arg5[%c0_69, %c0_70, %c0_71, %c0_72] : memref<1x1x256x128xbf16, #tpu.memory_space<vmem>>, vector<1x1x256x128xbf16>
      %93 = vector.shape_cast %92 : vector<1x1x256x128xbf16> to vector<256x128xbf16>
      %94 = vector.shape_cast %91 : vector<256x128xbf16> to vector<1x1x256x128xbf16>
      tpu.vector_store %arg5[%c0_69, %c0_70, %c0_71, %c0_72], %94 {strides = array<i32>} : memref<1x1x256x128xbf16, #tpu.memory_space<vmem>>, vector<1x1x256x128xbf16>,
      %cst_73 = arith.constant dense<0.000000e+00> : vector<128xf32>
      %95 = vector.multi_reduction <add>, %90, %cst_73 [0] : vector<256x128xf32> to vector<128xf32>
      %96 = vector.shape_cast %95 : vector<128xf32> to vector<1x128xf32>
      %c0_74 = arith.constant 0 : index
      %c0_75 = arith.constant 0 : index
      %c0_76 = arith.constant 0 : index
      %c0_77 = arith.constant 0 : index
      %97 = vector.load %arg6[%c0_74, %c0_75, %c0_76, %c0_77] : memref<1x1x1x128xf32, #tpu.memory_space<vmem>>, vector<1x1x1x128xf32>
      %98 = vector.shape_cast %97 : vector<1x1x1x128xf32> to vector<1x128xf32>
      %99 = vector.shape_cast %96 : vector<1x128xf32> to vector<1x1x1x128xf32>
      tpu.vector_store %arg6[%c0_74, %c0_75, %c0_76, %c0_77], %99 {strides = array<i32>} : memref<1x1x1x128xf32, #tpu.memory_space<vmem>>, vector<1x1x1x128xf32>,
      %100 = arith.mulf %90, %90 : vector<256x128xf32>
      %cst_78 = arith.constant dense<0.000000e+00> : vector<128xf32>
      %101 = vector.multi_reduction <add>, %100, %cst_78 [0] : vector<256x128xf32> to vector<128xf32>
      %102 = vector.shape_cast %101 : vector<128xf32> to vector<1x128xf32>
      %c0_79 = arith.constant 0 : index
      %c0_80 = arith.constant 0 : index
      %c0_81 = arith.constant 0 : index
      %c0_82 = arith.constant 0 : index
      %103 = vector.load %arg7[%c0_79, %c0_80, %c0_81, %c0_82] : memref<1x1x1x128xf32, #tpu.memory_space<vmem>>, vector<1x1x1x128xf32>
      %104 = vector.shape_cast %103 : vector<1x1x1x128xf32> to vector<1x128xf32>
      %105 = vector.shape_cast %102 : vector<1x128xf32> to vector<1x1x1x128xf32>
      tpu.vector_store %arg7[%c0_79, %c0_80, %c0_81, %c0_82], %105 {strides = array<i32>} : memref<1x1x1x128xf32, #tpu.memory_space<vmem>>, vector<1x1x1x128xf32>,
    } else {
    }
    return
  }
  func.func @transform_0(%arg0: i32, %arg1: i32, %arg2: i32) -> (i32, i32, i32, i32) {
    %c0_i32 = arith.constant 0 : i32
    %c0_i32_0 = arith.constant 0 : i32
    %c0_i32_1 = arith.constant 0 : i32
    return %arg0, %c0_i32, %c0_i32_0, %arg2 : i32, i32, i32, i32
  }
  func.func @transform_1(%arg0: i32, %arg1: i32, %arg2: i32) -> (i32, i32, i32) {
    %c0_i32 = arith.constant 0 : i32
    %c0_i32_0 = arith.constant 0 : i32
    %c0_i32_1 = arith.constant 0 : i32
    return %c0_i32, %arg2, %c0_i32_0 : i32, i32, i32
  }
  func.func @transform_2(%arg0: i32, %arg1: i32, %arg2: i32) -> (i32, i32, i32, i32) {
    %c0_i32 = arith.constant 0 : i32
    %c0_i32_0 = arith.constant 0 : i32
    %c0_i32_1 = arith.constant 0 : i32
    return %arg0, %arg1, %c0_i32, %c0_i32_0 : i32, i32, i32, i32
  }
  func.func @transform_3(%arg0: i32, %arg1: i32, %arg2: i32) -> (i32, i32, i32, i32) {
    %c0_i32 = arith.constant 0 : i32
    %c0_i32_0 = arith.constant 0 : i32
    %c0_i32_1 = arith.constant 0 : i32
    return %arg0, %arg1, %c0_i32, %c0_i32_0 : i32, i32, i32, i32
  }
  func.func @transform_4(%arg0: i32, %arg1: i32, %arg2: i32) -> (i32, i32, i32, i32) {
    %c0_i32 = arith.constant 0 : i32
    %c0_i32_0 = arith.constant 0 : i32
    %c0_i32_1 = arith.constant 0 : i32
    return %arg0, %arg1, %c0_i32, %c0_i32_0 : i32, i32, i32, i32
  }
}

</mosaic_0001>

<bundles_post_ra>
// kernel: tpu_custom_call.1
= control target key start
LH: loop header
LB: loop body
LE: loop exit
PB: predicated region body
PF: predicated region fallthrough
CT: control target
= control target key end

     0   :  { %10 = vsyncpa [#allocation4], 0  ;;  %s7109_s0 = inlined_call_operand.vmem [shape: bf16[2,20,20,128], index: 0, kind: input, shape index: {}]   ;;  %s7110_s1 = inlined_call_operand.vmem [shape: bf16[9,128,128], index: 1, kind: input, shape index: {}]   ;;  %s7111_s2 = inlined_call_operand.hbm [shape: bf16[2,1,256,128], index: 2, kind: output, shape index: {0}]   ;;  %s7112_s3 = inlined_call_operand.hbm [shape: f32[2,1,1,128], index: 3, kind: output, shape index: {1}]   ;;  %s7113_s4 = inlined_call_operand.hbm [shape: f32[2,1,1,128], index: 4, kind: output, shape index: {2}]  }
   0x1   :  { %12 = vsyncpa [#allocation4 + $0x1], 0 }
   0x2   :  { %13 = vsyncpa [#allocation6], 0 }
   0x3   :  { %15 = vsyncpa [#allocation6 + $0x1], 0  ;;  %s5779_s15 = smov 0   ;;  %s5781_s16 = smov 0  }
   0x4   :  { %s5783_s17 = smov 0   ;;  %s5785_s18 = smov 0  }
   0x5   :  { %s5787_s19 = smov 0   ;;  %s5789_s20 = smov 0  }
   0x6 LB: > { %s4340_s21 = sadd.s32 4294967295, %s5750_s20   ;;  %s4341_s22 = sadd.s32 4294967294, %s5750_s20   ;;  %s5750_s20 = sphi %s5789_s20, %s21_s20   ;;  %s5746_s19 = sphi %s5787_s19, %s7128_s19   ;;  %s5742_s18 = sphi %s5785_s18, %s7127_s18   ;;  %s5738_s17 = sphi %s5783_s17, %s7126_s17   ;;  %s5734_s16 = sphi %s5781_s16, %s7125_s16   ;;  %s5730_s15 = sphi %s5779_s15, %s7124_s15  }
   0x7   : > { %s40_s23 = sadd.s32 1, %s5746_s19  ;;  %s103_s24 = sadd.s32 1, %s5738_s17 }
   0x8   : > { %p42_p0 = scmp.ge.s32.totalorder %s40_s23, 2  ;;  %p113_p1 = scmp.ne.s32.totalorder %s5738_s17, %s5734_s16 }
   0x9   : > { %p114_p2 = scmp.eq.s32.totalorder %s4340_s21, 1  ;;  %p119_p3 = scmp.ne.s32.totalorder %s5734_s16, %s5730_s15 }
   0xa   : > { %s7130_s23 = smov (%p42_p0, %s40_s23), 0  ;;  %p120_p5 = scmp.eq.s32.totalorder %s4341_s22, 1 }
   0xb   : > { %p5821_p4 = por %p114_p2, %p113_p1  ;;  %s98_s26 = ssub.s32 %s5746_s19, %s7130_s23 }
   0xc   : > { %p4345_p6 = scmp.ge.s32.totalorder %s5750_s20, 1  ;;  %p101_p7 = scmp.eq.s32.totalorder %s98_s26, 0 }
   0xd   : > { %p5830_p8 = por %p120_p5, %p119_p3  ;;  %p214_p9 = scmp.lt.s32.totalorder %s5750_s20, 3 }
   0xe   : > { %s5836_s28 = scalar_select %p101_p7, %s5738_s17, %s103_s24  }
   0xf   : > { %p215_p10 = pnand %p4345_p6, %p214_p9 }
  0x11   : > { %218 = sbr.rel (%p215_p10) target bundleno = 795 (0x31b), region = 28 }
  0x16   : > { %v5312_v0 = vld [vmem:[%s7110_s1 + $0x78] sm:$0xff]  ;;  %p256_p11 = scmp.lt.s32.totalorder %s5742_s18, 1  ;;  %v5311_v1 = vld [vmem:[%s7110_s1 + $0x70] sm:$0xff]  ;;  %v5310_v2 = vld [vmem:[%s7110_s1 + $0x68] sm:$0xff]  ;;  %vm438_vm0 = vcmask 1042432   ;;  %vm439_vm1 = vcmask 1046532  }
  0x17   : > { %5497 = vmatpush.bf16.msra.mxu1 %v5312_v0  ;;  %5498 = vmatpush.bf16.msra.mxu2 %v5312_v0  ;;  %v5309_v3 = vld [vmem:[%s7110_s1 + $0x60] sm:$0xff]  ;;  %v5308_v11 = vld [vmem:[%s7110_s1 + $0x58] sm:$0xff]  ;;  %v5307_v25 = vld [vmem:[%s7110_s1 + $0x50] sm:$0xff]  ;;  %vm1052_vm3 = vcmask 1041408   ;;  %vm1053_vm4 = vcmask 1045508  }
  0x18   : > { %s257_s7 = scalar_select %p256_p11, %s5742_s18, 1  ;;  %5499 = vmatpush.bf16.msra.mxu3 %v5312_v0  ;;  %682 = vmatpush.bf16.msra.mxu0 %v5312_v0  ;;  %vm5883_vm2 = vmor %vm438_vm0, %vm439_vm1  ;;  %v5306_v37 = vld [vmem:[%s7110_s1 + $0x48] sm:$0xff]  ;;  %v5305_v48 = vld [vmem:[%s7110_s1 + $0x40] sm:$0xff] }
  0x19   : > { %v5320_v54 = vld [vmem:[%s7110_s1 + $0xb8] sm:$0xff]  ;;  %vm6128_vm5 = vmor %vm1052_vm3, %vm1053_vm4 }
  0x1a   : > { %s5521_s8 = smul.u32 240, %s257_s7  ;;  %v5344_v56 = vld [vmem:[%s7110_s1 + $0xf8] sm:$0xff] }
  0x1b   : > { %5500 = vmatpush.bf16.msra.mxu1 %v5311_v1  ;;  %5501 = vmatpush.bf16.msra.mxu2 %v5311_v1  ;;  %v5304_v61 = vld [vmem:[%s7110_s1 + $0x38] sm:$0xff] }
  0x1c   : > { %5502 = vmatpush.bf16.msra.mxu3 %v5311_v1  ;;  %683 = vmatpush.bf16.msra.mxu0 %v5311_v1  ;;  %s5852_s13 = scalar_lea.vmem %s7109_s0, %s5521_s8  ;;  %s6840_s8 = sand.u32 1, %s5734_s16  }
  0x1d   : > { %v5858_v4 = vld [vmem:[%s5852_s13 + $0x34] sm:$0xf]  ;;  %v327_v5 = vld [vmem:[%s5852_s13 + $0x64] sm:$0xf]  ;;  %v366_v8 = vld [vmem:[%s5852_s13 + $0x30] sm:$0xe] }
  0x1e   : > { %v335_v6 = vld [vmem:[%s5852_s13 + $0x94] sm:$0xf]  ;;  %v5863_v7 = vld [vmem:[%s5852_s13 + $0x4] sm:$0xf]  ;;  %v367_v9 = vld [vmem:[%s5852_s13 + $0x38] sm:$0x1] }
  0x1f   : > { %5503 = vmatpush.bf16.msra.mxu1 %v5310_v2  ;;  %5504 = vmatpush.bf16.msra.mxu2 %v5310_v2  ;;  %v471_v10 = vrot.slane %v5858_v4, 5  ;;  %v374_v12 = vld [vmem:[%s5852_s13 + $0x60] sm:$0xe]  ;;  %v375_v13 = vld [vmem:[%s5852_s13 + $0x68] sm:$0x1]  ;;  %v499_v14 = vrot.slane %v327_v5, 5 }
  0x20   : > { %5505 = vmatpush.bf16.msra.mxu3 %v5310_v2  ;;  %684 = vmatpush.bf16.msra.mxu0 %v5310_v2  ;;  %v382_v15 = vld [vmem:[%s5852_s13 + $0x90] sm:$0xe]  ;;  %v383_v16 = vld [vmem:[%s5852_s13 + $0x98] sm:$0x1]  ;;  %v527_v17 = vrot.slane %v335_v6, 5  ;;  %v443_v18 = vrot.slane %v5863_v7, 5 }
  0x21   : > { %v358_v19 = vld [vmem:[%s5852_s13] sm:$0xe]  ;;  %v359_v20 = vld [vmem:[%s5852_s13 + $0x8] sm:$0x1]  ;;  %v4352_v21 = vrot.slane %v366_v8, 9  ;;  %v473_v22 = vrot.slane %v471_v10, 4 }
  0x22   : > { %v474_v23 = vrot.slane %v367_v9, 5  ;;  %v4356_v24 = vrot.slane %v374_v12, 9  ;;  %v501_v27 = vrot.slane %v499_v14, 4  ;;  %v502_v28 = vrot.slane %v375_v13, 5  ;;  %v5910_v53 = vld [vmem:[%s5852_s13 + $0x40] sm:$0xf] }
  0x23   : > { %5506 = vmatpush.bf16.msra.mxu1 %v5309_v3  ;;  %5507 = vmatpush.bf16.msra.mxu2 %v5309_v3  ;;  %v4360_v29 = vrot.slane %v382_v15, 9  ;;  %v530_v30 = vrot.slane %v383_v16, 5  ;;  %v529_v31 = vrot.slane %v527_v17, 4  ;;  %v4348_v32 = vrot.slane %v358_v19, 9  ;;  %v329_v55 = vld [vmem:[%s5852_s13 + $0x70] sm:$0xf] }
  0x24   : > { %5508 = vmatpush.bf16.msra.mxu3 %v5309_v3  ;;  %685 = vmatpush.bf16.msra.mxu0 %v5309_v3  ;;  %v445_v33 = vrot.slane %v443_v18, 4  ;;  %v446_v34 = vrot.slane %v359_v20, 5  ;;  %v472_v35 = vsel %vm5883_vm2, %v4352_v21, %v471_v10  ;;  %v475_v36 = vsel %vm5883_vm2, %v473_v22, %v474_v23  ;;  %v337_v57 = vld [vmem:[%s5852_s13 + $0xa0] sm:$0xf]  ;;  %v5921_v58 = vld [vmem:[%s5852_s13 + $0x10] sm:$0xf] }
  0x25   : > { %v500_v38 = vsel %vm5883_vm2, %v4356_v24, %v499_v14  ;;  %v503_v39 = vsel %vm5883_vm2, %v501_v27, %v502_v28  ;;  %v528_v40 = vsel %vm5883_vm2, %v4360_v29, %v527_v17  ;;  %v531_v41 = vsel %vm5883_vm2, %v529_v31, %v530_v30  ;;  %v368_v62 = vld [vmem:[%s5852_s13 + $0x3c] sm:$0xe]  ;;  %v369_v63 = vld [vmem:[%s5852_s13 + $0x44] sm:$0x1]  ;;  %v5319_v3 = vld [vmem:[%s7110_s1 + $0xb0] sm:$0xff]  ;;  %s4346_s9 = sshll.u32 %s6840_s8, 7 }
  0x26   : > { %v444_v42 = vsel %vm5883_vm2, %v4348_v32, %v443_v18  ;;  %v447_v43 = vsel %vm5883_vm2, %v445_v33, %v446_v34  ;;  %v578_v44 = vunpack.c.l.b16 %v472_v35  ;;  %v579_v45 = vunpack.c.l.b16 %v475_v36  ;;  %v5352_v5 = vld [vmem:[%s7110_s1 + $0x138] sm:$0xff]  ;;  %v376_v6 = vld [vmem:[%s5852_s13 + $0x6c] sm:$0xe]  ;;  %v377_v8 = vld [vmem:[%s5852_s13 + $0x74] sm:$0x1]  ;;  %s6851_s10 = scalar_lea.vmem [#allocation3], %s4346_s9 }
  0x27   : > { %5509 = vmatpush.bf16.msra.mxu1 %v5308_v11  ;;  %5510 = vmatpush.bf16.msra.mxu2 %v5308_v11  ;;  %v586_v46 = vunpack.c.l.b16 %v500_v38  ;;  %v587_v47 = vunpack.c.l.b16 %v503_v39  ;;  %v594_v49 = vunpack.c.l.b16 %v528_v40  ;;  %v595_v50 = vunpack.c.l.b16 %v531_v41  ;;  %v384_v10 = vld [vmem:[%s5852_s13 + $0x9c] sm:$0xe]  ;;  %v5343_v14 = vld [vmem:[%s7110_s1 + $0xf0] sm:$0xff]  ;;  %v360_v15 = vld [vmem:[%s5852_s13 + $0xc] sm:$0xe]  ;;  %s4147_s24 = sshll.u32 %s6851_s10, 4  ;;  %s4148_s24 = int_to_ptr.vmem [resolvable:$true] %s4147_s24 }
  0x28   : > { %5511 = vmatpush.bf16.msra.mxu3 %v5308_v11  ;;  %686 = vmatpush.bf16.msra.mxu0 %v5308_v11  ;;  %v570_v51 = vunpack.c.l.b16 %v444_v42  ;;  %v571_v52 = vunpack.c.l.b16 %v447_v43  ;;  %v606_v59 = vpack.c.b16 %v579_v45, %v578_v44  ;;  %v478_v0 = vrot.slane %v5910_v53, 5  ;;  %v385_v11 = vld [vmem:[%s5852_s13 + $0xa4] sm:$0x1]  ;;  %v361_v16 = vld [vmem:[%s5852_s13 + $0x14] sm:$0x1]  ;;  %v5318_v32 = vld [vmem:[%s7110_s1 + $0xa8] sm:$0xff] }
  0x29   : > { %v610_v60 = vpack.c.b16 %v587_v47, %v586_v46  ;;  %v614_v1 = vpack.c.b16 %v595_v50, %v594_v49  ;;  %v506_v9 = vrot.slane %v329_v55, 5  ;;  %v534_v12 = vrot.slane %v337_v57, 5  ;;  %v5351_v31 = vld [vmem:[%s7110_s1 + $0x130] sm:$0xff]  ;;  %v5342_v33 = vld [vmem:[%s7110_s1 + $0xe8] sm:$0xff]  ;;  %v5317_v44 = vld [vmem:[%s7110_s1 + $0xa0] sm:$0xff]  ;;  %s4125_s29 = scalar_lea.sflag [#allocation4], %s6840_s8 }
  0x2a   : > { %v602_v2 = vpack.c.b16 %v571_v52, %v570_v51  ;;  %v450_v13 = vrot.slane %v5921_v58, 5  ;;  %v4353_v17 = vrot.slane %v368_v62, 9  ;;  %v480_v18 = vrot.slane %v478_v0, 4  ;;  %v5302_v42 = vld [vmem:[%s7110_s1 + $0x28] sm:$0xff]  ;;  %v5341_v45 = vld [vmem:[%s7110_s1 + $0xe0] sm:$0xff]  ;;  %s5632_s9 = scalar_lea.hbm %s7111_s2, 256 }
  0x2b   : > { %5512 = vmatpush.bf16.msra.mxu1 %v5307_v25  ;;  %5513 = vmatpush.bf16.msra.mxu2 %v5307_v25  ;;  %v481_v19 = vrot.slane %v369_v63, 5  ;;  %v4357_v20 = vrot.slane %v376_v6, 9  ;;  %v508_v21 = vrot.slane %v506_v9, 4  ;;  %v509_v22 = vrot.slane %v377_v8, 5  ;;  %v5350_v43 = vld [vmem:[%s7110_s1 + $0x128] sm:$0xff]  ;;  %v5301_v55 = vld [vmem:[%s7110_s1 + $0x20] sm:$0xff] }
  0x2c   : > { %5514 = vmatpush.bf16.msra.mxu3 %v5307_v25  ;;  %687 = vmatpush.bf16.msra.mxu0 %v5307_v25  ;;  %v4361_v23 = vrot.slane %v384_v10, 9  ;;  %v537_v24 = vrot.slane %v385_v11, 5  ;;  %v5303_v25 = vld [vmem:[%s7110_s1 + $0x30] sm:$0xff]  ;;  %v536_v27 = vrot.slane %v534_v12, 4  ;;  %v4349_v28 = vrot.slane %v360_v15, 9  ;;  %v5316_v63 = vld [vmem:[%s7110_s1 + $0x98] sm:$0xff] }
  0x2d   : > { %v452_v29 = vrot.slane %v450_v13, 4  ;;  %v453_v30 = vrot.slane %v361_v16, 5  ;;  %v479_v34 = vsel %vm5883_vm2, %v4353_v17, %v478_v0  ;;  %v482_v35 = vsel %vm5883_vm2, %v480_v18, %v481_v19  ;;  %v331_v57 = vld [vmem:[%s5852_s13 + $0x7c] sm:$0xf]  ;;  %v371_v62 = vld [vmem:[%s5852_s13 + $0x50] sm:$0x1] }
  0x2e   : > { %v507_v36 = vsel %vm5883_vm2, %v4357_v20, %v506_v9  ;;  %v535_v38 = vsel %vm5883_vm2, %v4361_v23, %v534_v12  ;;  %v538_v39 = vsel %vm5883_vm2, %v536_v27, %v537_v24  ;;  %v451_v40 = vsel %vm5883_vm2, %v4349_v28, %v450_v13  ;;  %v6002_v0 = vld [vmem:[%s5852_s13 + $0x1c] sm:$0xf]  ;;  %v378_v6 = vld [vmem:[%s5852_s13 + $0x78] sm:$0xe]  ;;  %v379_v8 = vld [vmem:[%s5852_s13 + $0x80] sm:$0x1] }
  0x2f   : > { %5515 = vmatpush.bf16.msra.mxu1 %v5306_v37  ;;  %5516 = vmatpush.bf16.msra.mxu2 %v5306_v37  ;;  %v454_v41 = vsel %vm5883_vm2, %v452_v29, %v453_v30  ;;  %v580_v46 = vunpack.c.l.b16 %v479_v34  ;;  %v581_v47 = vunpack.c.l.b16 %v482_v35  ;;  %v596_v50 = vunpack.c.l.b16 %v535_v38  ;;  %v386_v12 = vld [vmem:[%s5852_s13 + $0xa8] sm:$0xe]  ;;  %v387_v13 = vld [vmem:[%s5852_s13 + $0xb0] sm:$0x1]  ;;  %v362_v15 = vld [vmem:[%s5852_s13 + $0x18] sm:$0xe] }
  0x30   : > { %5517 = vmatpush.bf16.msra.mxu3 %v5306_v37  ;;  %688 = vmatpush.bf16.msra.mxu0 %v5306_v37  ;;  %v510_v37 = vsel %vm5883_vm2, %v508_v21, %v509_v22  ;;  %v597_v51 = vunpack.c.l.b16 %v538_v39  ;;  %v572_v52 = vunpack.c.l.b16 %v451_v40  ;;  %v513_v11 = vrot.slane %v331_v57, 5  ;;  %v5300_v17 = vld [vmem:[%s7110_s1 + $0x18] sm:$0xff]  ;;  %v363_v19 = vld [vmem:[%s5852_s13 + $0x20] sm:$0x1]  ;;  %v5315_v20 = vld [vmem:[%s7110_s1 + $0x90] sm:$0xff] }
  0x31   : > { %v589_v49 = vunpack.c.l.b16 %v510_v37  ;;  %v457_v16 = vrot.slane %v6002_v0, 5  ;;  %v5348_v18 = vld [vmem:[%s7110_s1 + $0x118] sm:$0xff]  ;;  %v5339_v21 = vld [vmem:[%s7110_s1 + $0xd0] sm:$0xff]  ;;  %v488_v24 = vrot.slane %v371_v62, 5  ;;  %v516_v28 = vrot.slane %v379_v8, 5  ;;  %v5314_v37 = vld [vmem:[%s7110_s1 + $0x88] sm:$0xff] }
  0x32   : > { %v615_v9 = vpack.c.b16 %v597_v51, %v596_v50  ;;  %v515_v27 = vrot.slane %v513_v11, 4  ;;  %v4362_v29 = vrot.slane %v386_v12, 9  ;;  %v544_v30 = vrot.slane %v387_v13, 5  ;;  %v5299_v35 = vld [vmem:[%s7110_s1 + $0x10] sm:$0xff]  ;;  %v5338_v38 = vld [vmem:[%s7110_s1 + $0xc8] sm:$0xff]  ;;  %v5337_v50 = vld [vmem:[%s7110_s1 + $0xc0] sm:$0xff] }
  0x33   : > { %5518 = vmatpush.bf16.msra.mxu1 %v5305_v48  ;;  %5519 = vmatpush.bf16.msra.mxu2 %v5305_v48  ;;  %v460_v34 = vrot.slane %v363_v19, 5  ;;  %v6068_v62 = vld [vmem:[%s5852_s13 + $0x58] sm:$0xf] }
  0x34   : > { %5520 = vmatpush.bf16.msra.mxu3 %v5305_v48  ;;  %689 = vmatpush.bf16.msra.mxu0 %v5305_v48  ;;  %v588_v48 = vunpack.c.l.b16 %v507_v36  ;;  %v5347_v36 = vld [vmem:[%s7110_s1 + $0x110] sm:$0xff] }
  0x36   : > { %710 = vmatmul.bf16.vlgmr.msra.gmra.mxu1 %v606_v59  ;;  %730 = vmatmul.bf16.vlgmr.msra.gmra.mxu2 %v610_v60  ;;  %v339_v59 = vld [vmem:[%s5852_s13 + $0xac] sm:$0xf]  ;;  %v5349_v60 = vld [vmem:[%s7110_s1 + $0x120] sm:$0xff] }
  0x37   : > { %1296 = vmatpush.bf16.msrb.mxu2 %v5320_v54  ;;  %750 = vmatmul.bf16.vlgmr.msra.gmra.mxu3 %v614_v1  ;;  %v573_v54 = vunpack.c.l.b16 %v454_v41  ;;  %v5340_v1 = vld [vmem:[%s7110_s1 + $0xd8] sm:$0xff] }
  0x38   : > { %1614 = vmatpush.bf16.msrb.mxu3 %v5344_v56  ;;  %690 = vmatmul.bf16.vlgmr.msra.gmra.mxu0 %v602_v2  ;;  %v5989_v56 = vld [vmem:[%s5852_s13 + $0x4c] sm:$0xf]  ;;  %v607_v2 = vpack.c.b16 %v581_v47, %v580_v46 }
  0x39   : > { %899 = vmatpush.bf16.msrb.mxu1 %v5304_v61  ;;  %2072 = vmatpush.bf16.msrb.mxu0 %v5352_v5  ;;  %v370_v61 = vld [vmem:[%s5852_s13 + $0x48] sm:$0xe]  ;;  %v485_v5 = vrot.slane %v5989_v56, 5  ;;  %v603_v10 = vpack.c.b16 %v573_v54, %v572_v52 }
  0x3a   : > { %v4354_v22 = vrot.slane %v370_v61, 9  ;;  %v5298_v47 = vld [vmem:[%s7110_s1 + $0x8] sm:$0xff] }
  0x3b   : > { %1297 = vmatpush.bf16.msrb.mxu2 %v5319_v3  ;;  %v611_v3 = vpack.c.b16 %v589_v49, %v588_v48  ;;  %v487_v23 = vrot.slane %v485_v5, 4  ;;  %v5346_v48 = vld [vmem:[%s7110_s1 + $0x108] sm:$0xff]  ;;  %v5313_v49 = vld [vmem:[%s7110_s1 + $0x80] sm:$0xff] }
  0x3c   : > { %1615 = vmatpush.bf16.msrb.mxu3 %v5343_v14  ;;  %v541_v14 = vrot.slane %v339_v59, 5  ;;  %v486_v39 = vsel %vm5883_vm2, %v4354_v22, %v485_v5  ;;  %v6081_v5 = vld [vmem:[%s5852_s13 + $0x28] sm:$0xf]  ;;  %v364_v22 = vld [vmem:[%s5852_s13 + $0x24] sm:$0xe] }
  0x3d   : > { %900 = vmatpush.bf16.msrb.mxu1 %v5303_v25  ;;  %2073 = vmatpush.bf16.msrb.mxu0 %v5351_v31  ;;  %v4358_v25 = vrot.slane %v378_v6, 9  ;;  %v489_v40 = vsel %vm5883_vm2, %v487_v23, %v488_v24  ;;  %v582_v51 = vunpack.c.l.b16 %v486_v39  ;;  %v365_v23 = vld [vmem:[%s5852_s13 + $0x2c] sm:$0x1]  ;;  %v5400_v39 = vld [vmem:[%s7110_s1 + $0x238] sm:$0xff] }
  0x3e   : > { %v543_v31 = vrot.slane %v541_v14, 4  ;;  %v583_v52 = vunpack.c.l.b16 %v489_v40 }
  0x3f   : > { %1298 = vmatpush.bf16.msrb.mxu2 %v5318_v32  ;;  %v4350_v32 = vrot.slane %v362_v15, 9  ;;  %v514_v41 = vsel %vm5883_vm2, %v4358_v25, %v513_v11  ;;  %v380_v15 = vld [vmem:[%s5852_s13 + $0x84] sm:$0xe] }
  0x40   : > { %1616 = vmatpush.bf16.msrb.mxu3 %v5342_v33  ;;  %v459_v33 = vrot.slane %v457_v16, 4  ;;  %v590_v54 = vunpack.c.l.b16 %v514_v41  ;;  %v608_v6 = vpack.c.b16 %v583_v52, %v582_v51 }
  0x41   : > { %901 = vmatpush.bf16.msrb.mxu1 %v5302_v42  ;;  %2074 = vmatpush.bf16.msrb.mxu0 %v5350_v43  ;;  %v517_v42 = vsel %vm5883_vm2, %v515_v27, %v516_v28  ;;  %v542_v43 = vsel %vm5883_vm2, %v4362_v29, %v541_v14  ;;  %v373_v14 = vld [vmem:[%s5852_s13 + $0x5c] sm:$0x1]  ;;  %v4359_v27 = vrot.slane %v380_v15, 9 }
  0x42   : > { %v461_v46 = vsel %vm5883_vm2, %v459_v33, %v460_v34  ;;  %v598_v57 = vunpack.c.l.b16 %v542_v43  ;;  %v495_v25 = vrot.slane %v373_v14, 5  ;;  %v5392_v33 = vld [vmem:[%s7110_s1 + $0x1f8] sm:$0xff] }
  0x43   : > { %1299 = vmatpush.bf16.msrb.mxu2 %v5317_v44  ;;  %v545_v44 = vsel %vm5883_vm2, %v543_v31, %v544_v30  ;;  %v575_v61 = vunpack.c.l.b16 %v461_v46  ;;  %v5360_v34 = vld [vmem:[%s7110_s1 + $0x178] sm:$0xff] }
  0x44   : > { %1617 = vmatpush.bf16.msrb.mxu3 %v5341_v45  ;;  %v458_v45 = vsel %vm5883_vm2, %v4350_v32, %v457_v16  ;;  %v599_v59 = vunpack.c.l.b16 %v545_v44  ;;  %v381_v16 = vld [vmem:[%s5852_s13 + $0x8c] sm:$0x1]  ;;  %v5384_v32 = vld [vmem:[%s7110_s1 + $0x1b8] sm:$0xff] }
  0x45   : > { %902 = vmatpush.bf16.msrb.mxu1 %v5301_v55  ;;  %2075 = vmatpush.bf16.msrb.mxu0 %v5349_v60  ;;  %v591_v55 = vunpack.c.l.b16 %v517_v42  ;;  %v574_v60 = vunpack.c.l.b16 %v458_v45  ;;  %v523_v29 = vrot.slane %v381_v16, 5 }
  0x46   : > { %715 = vmatmul.bf16.gmra.mxu1 %v607_v2  ;;  %735 = vmatmul.bf16.gmra.mxu2 %v611_v3  ;;  %v5345_v2 = vld [vmem:[%s7110_s1 + $0x100] sm:$0xff]  ;;  %v341_v3 = vld [vmem:[%s5852_s13 + $0xb8] sm:$0xf]  ;;  %v616_v12 = vpack.c.b16 %v599_v59, %v598_v57  ;;  %v4717_v59 = vld [vmem:[%s5852_s13 + $0x1c] sm:$0xf] }
  0x47   : > { %1300 = vmatpush.bf16.msrb.mxu2 %v5316_v63  ;;  %755 = vmatmul.bf16.gmra.mxu3 %v615_v9  ;;  %v6071_v63 = vld [vmem:[%s5852_s13 + $0x88] sm:$0xf]  ;;  %v612_v8 = vpack.c.b16 %v591_v55, %v590_v54  ;;  %v372_v9 = vld [vmem:[%s5852_s13 + $0x54] sm:$0xe]  ;;  %v604_v13 = vpack.c.b16 %v575_v61, %v574_v60  ;;  %v548_v19 = vrot.slane %v341_v3, 5 }
  0x48   : > { %1618 = vmatpush.bf16.msrb.mxu3 %v5340_v1  ;;  %695 = vmatmul.bf16.gmra.mxu0 %v603_v10  ;;  %v5297_v1 = vld [vmem:[%s7110_s1] sm:$0xff]  ;;  %v492_v10 = vrot.slane %v6068_v62, 5  ;;  %v520_v11 = vrot.slane %v6071_v63, 5 }
  0x49   : > { %903 = vmatpush.bf16.msrb.mxu1 %v5300_v17  ;;  %2076 = vmatpush.bf16.msrb.mxu0 %v5348_v18  ;;  %v388_v17 = vld [vmem:[%s5852_s13 + $0xb4] sm:$0xe]  ;;  %v389_v18 = vld [vmem:[%s5852_s13 + $0xbc] sm:$0x1] }
  0x4a   : > { %v494_v24 = vrot.slane %v492_v10, 4  ;;  %v522_v28 = vrot.slane %v520_v11, 4  ;;  %v4363_v30 = vrot.slane %v388_v17, 9  ;;  %v551_v31 = vrot.slane %v389_v18, 5 }
  0x4b   : > { %1301 = vmatpush.bf16.msrb.mxu2 %v5315_v20  ;;  %v464_v20 = vrot.slane %v6081_v5, 5  ;;  %v521_v42 = vsel %vm5883_vm2, %v4359_v27, %v520_v11  ;;  %v4718_v11 = vld [vmem:[%s5852_s13 + $0x20] sm:$0x1]  ;;  %v4720_v27 = vld [vmem:[%s5852_s13 + $0x28] sm:$0xf] }
  0x4c   : > { %1619 = vmatpush.bf16.msrb.mxu3 %v5339_v21  ;;  %v4355_v21 = vrot.slane %v372_v9, 9  ;;  %v496_v41 = vsel %vm5883_vm2, %v494_v24, %v495_v25  ;;  %v524_v43 = vsel %vm5883_vm2, %v522_v28, %v523_v29  ;;  %v549_v44 = vsel %vm5883_vm2, %v4363_v30, %v548_v19  ;;  %v5281_v28 = vld [vmem:[%s5852_s13] sm:$0xff]  ;;  %v5321_v30 = vld [vmem:[%s5852_s13 + $0x18] sm:$0xff] }
  0x4d   : > { %904 = vmatpush.bf16.msrb.mxu1 %v5299_v35  ;;  %2077 = vmatpush.bf16.msrb.mxu0 %v5347_v36  ;;  %v550_v35 = vrot.slane %v548_v19, 4  ;;  %v4351_v36 = vrot.slane %v364_v22, 9  ;;  %v593_v51 = vunpack.c.l.b16 %v524_v43  ;;  %v600_v52 = vunpack.c.l.b16 %v549_v44 }
  0x4e   : > { %v493_v40 = vsel %vm5883_vm2, %v4355_v21, %v492_v10  ;;  %v1833_v9 = vrot.slane %v4717_v59, 5  ;;  %v4716_v10 = vld [vmem:[%s5852_s13 + $0x18] sm:$0xe]  ;;  %v1836_v17 = vrot.slane %v4718_v11, 5  ;;  %v5282_v59 = vld [vmem:[%s5852_s13 + $0xc] sm:$0xff] }
  0x4f   : > { %1302 = vmatpush.bf16.msrb.mxu2 %v5314_v37  ;;  %v466_v37 = vrot.slane %v464_v20, 4  ;;  %v552_v45 = vsel %vm5883_vm2, %v550_v35, %v551_v31  ;;  %v465_v46 = vsel %vm5883_vm2, %v4351_v36, %v464_v20  ;;  %v4764_v15 = vrot.slane %v4716_v10, 9  ;;  %v4719_v36 = vld [vmem:[%s5852_s13 + $0x24] sm:$0xe]  ;;  %v4724_v10 = vld [vmem:[%s5852_s13 + $0x38] sm:$0x1] }
  0x50   : > { %1620 = vmatpush.bf16.msrb.mxu3 %v5338_v38  ;;  %v467_v38 = vrot.slane %v365_v23, 5  ;;  %v601_v54 = vunpack.c.l.b16 %v552_v45  ;;  %v576_v55 = vunpack.c.l.b16 %v465_v46  ;;  %v1835_v16 = vrot.slane %v1833_v9, 4  ;;  %v5399_v46 = vld [vmem:[%s7110_s1 + $0x230] sm:$0xff] }
  0x51   : > { %905 = vmatpush.bf16.msrb.mxu1 %v5298_v47  ;;  %2078 = vmatpush.bf16.msrb.mxu0 %v5346_v48  ;;  %v584_v48 = vunpack.c.l.b16 %v493_v40  ;;  %v1834_v20 = vsel %vm5883_vm2, %v4764_v15, %v1833_v9  ;;  %v1840_v35 = vrot.slane %v4720_v27, 5  ;;  %v4765_v43 = vrot.slane %v4719_v36, 9  ;;  %v4722_v9 = vld [vmem:[%s5852_s13 + $0x30] sm:$0xe] }
  0x52   : > { %v468_v47 = vsel %vm5883_vm2, %v466_v37, %v467_v38  ;;  %v1837_v21 = vsel %vm5883_vm2, %v1835_v16, %v1836_v17  ;;  %v1960_v24 = vunpack.c.l.b16 %v1834_v20  ;;  %v4721_v37 = vld [vmem:[%s5852_s13 + $0x2c] sm:$0x1]  ;;  %v1850_v16 = vrot.slane %v4724_v10, 5 }
  0x53   : > { %1303 = vmatpush.bf16.msrb.mxu2 %v5313_v49  ;;  %v585_v49 = vunpack.c.l.b16 %v496_v41  ;;  %v577_v57 = vunpack.c.l.b16 %v468_v47  ;;  %v1961_v25 = vunpack.c.l.b16 %v1837_v21  ;;  %v5383_v41 = vld [vmem:[%s7110_s1 + $0x1b0] sm:$0xff]  ;;  %v1842_v44 = vrot.slane %v1840_v35, 4 }
  0x54   : > { %1621 = vmatpush.bf16.msrb.mxu3 %v5337_v50  ;;  %v592_v50 = vunpack.c.l.b16 %v521_v42  ;;  %v5359_v42 = vld [vmem:[%s7110_s1 + $0x170] sm:$0xff]  ;;  %v1843_v45 = vrot.slane %v4721_v37, 5 }
  0x55   : > { %906 = vmatpush.bf16.msrb.mxu1 %v5297_v1  ;;  %2079 = vmatpush.bf16.msrb.mxu0 %v5345_v2  ;;  %v609_v60 = vpack.c.b16 %v585_v49, %v584_v48  ;;  %v1057_v1 = vrot.slane %v5863_v7, 6  ;;  %v617_v2 = vpack.c.b16 %v601_v54, %v600_v52  ;;  %v605_v3 = vpack.c.b16 %v577_v57, %v576_v55  ;;  %v4723_v57 = vld [vmem:[%s5852_s13 + $0x34] sm:$0xf] }
  0x56   : > { %720 = vmatmul.bf16.gmra.mxu1 %v608_v6  ;;  %740 = vmatmul.bf16.gmra.mxu2 %v612_v8  ;;  %v613_v61 = vpack.c.b16 %v593_v51, %v592_v50  ;;  %v988_v6 = vld [vmem:[%s5852_s13] sm:$0xc]  ;;  %v989_v8 = vld [vmem:[%s5852_s13 + $0x8] sm:$0x3]  ;;  %v1992_v31 = vpack.c.b16 %v1961_v25, %v1960_v24  ;;  %v1841_v49 = vsel %vm5883_vm2, %v4765_v43, %v1840_v35  ;;  %v5283_v25 = vld [vmem:[%s5852_s13 + $0x18] sm:$0xff] }
  0x57   : > { %760 = vmatmul.bf16.gmra.mxu3 %v616_v12  ;;  %2816 = vmatpush.bf16.msra.mxu2 %v5384_v32  ;;  %v4508_v12 = vrot.slane %v988_v6, 10  ;;  %v1060_v14 = vrot.slane %v989_v8, 6  ;;  %v1064_v32 = vrot.slane %v5921_v58, 6  ;;  %v5391_v58 = vld [vmem:[%s7110_s1 + $0x1f0] sm:$0xff]  ;;  %v1844_v50 = vsel %vm5883_vm2, %v1842_v44, %v1843_v45  ;;  %v993_v6 = vld [vmem:[%s5852_s13 + $0x20] sm:$0x3] }
  0x58   : > { %700 = vmatmul.bf16.gmra.mxu0 %v604_v13  ;;  %3274 = vmatpush.bf16.msra.mxu3 %v5392_v33  ;;  %v1059_v13 = vrot.slane %v1057_v1, 4  ;;  %v990_v33 = vld [vmem:[%s5852_s13 + $0xc] sm:$0xc]  ;;  %v1962_v54 = vunpack.c.l.b16 %v1841_v49  ;;  %v1963_v55 = vunpack.c.l.b16 %v1844_v50  ;;  %v1847_v8 = vrot.slane %v4723_v57, 5  ;;  %v4726_v24 = vld [vmem:[%s5852_s13 + $0x40] sm:$0xf] }
  0x59   : > { %2498 = vmatpush.bf16.msra.mxu1 %v5360_v34  ;;  %3700 = vmatpush.bf16.msra.mxu0 %v5400_v39  ;;  %v1058_v18 = vsel %vm6128_vm5, %v4508_v12, %v1057_v1  ;;  %v991_v34 = vld [vmem:[%s5852_s13 + $0x14] sm:$0x3]  ;;  %v4509_v38 = vrot.slane %v990_v33, 10  ;;  %v1066_v39 = vrot.slane %v1064_v32, 4  ;;  %v1854_v33 = vrot.slane %v4726_v24, 5  ;;  %v5324_v57 = vld [vmem:[%s5852_s13 + $0x3c] sm:$0xff] }
  0x5a   : > { %v1061_v19 = vsel %vm6128_vm5, %v1059_v13, %v1060_v14  ;;  %v1184_v22 = vunpack.c.l.b16 %v1058_v18  ;;  %v1067_v40 = vrot.slane %v991_v34, 6  ;;  %v1993_v1 = vpack.c.b16 %v1963_v55, %v1962_v54  ;;  %v4725_v34 = vld [vmem:[%s5852_s13 + $0x3c] sm:$0xe]  ;;  %v4727_v35 = vld [vmem:[%s5852_s13 + $0x44] sm:$0x1]  ;;  %v5325_v24 = vld [vmem:[%s5852_s13 + $0x48] sm:$0xff] }
  0x5b   : > { %v1185_v23 = vunpack.c.l.b16 %v1061_v19  ;;  %2817 = vmatpush.bf16.msra.mxu2 %v5383_v41  ;;  %v1065_v47 = vsel %vm6128_vm5, %v4509_v38, %v1064_v32  ;;  %v1074_v13 = vrot.slane %v993_v6, 6  ;;  %v4766_v14 = vrot.slane %v4722_v9, 9  ;;  %v995_v32 = vld [vmem:[%s5852_s13 + $0x2c] sm:$0x3]  ;;  %v5284_v54 = vld [vmem:[%s5852_s13 + $0x24] sm:$0xff] }
  0x5c   : > { %3275 = vmatpush.bf16.msra.mxu3 %v5391_v58  ;;  %v1068_v48 = vsel %vm6128_vm5, %v1066_v39, %v1067_v40  ;;  %v1186_v51 = vunpack.c.l.b16 %v1065_v47  ;;  %v1849_v15 = vrot.slane %v1847_v8, 4  ;;  %v1081_v38 = vrot.slane %v995_v32, 6  ;;  %v5382_v39 = vld [vmem:[%s7110_s1 + $0x1a8] sm:$0xff]  ;;  %v4730_v6 = vld [vmem:[%s5852_s13 + $0x50] sm:$0x1] }
  0x5d   : > { %v1216_v29 = vpack.c.b16 %v1185_v23, %v1184_v22  ;;  %2499 = vmatpush.bf16.msra.mxu1 %v5359_v42  ;;  %3701 = vmatpush.bf16.msra.mxu0 %v5399_v46  ;;  %v1187_v52 = vunpack.c.l.b16 %v1068_v48  ;;  %v1848_v18 = vsel %vm5883_vm2, %v4766_v14, %v1847_v8  ;;  %v4767_v40 = vrot.slane %v4725_v34, 9  ;;  %v5358_v42 = vld [vmem:[%s7110_s1 + $0x168] sm:$0xff]  ;;  %v4731_v32 = vld [vmem:[%s5852_s13 + $0x54] sm:$0xe] }
  0x5e   : > { %v1851_v19 = vsel %vm5883_vm2, %v1849_v15, %v1850_v16  ;;  %v1964_v22 = vunpack.c.l.b16 %v1848_v18  ;;  %v1856_v41 = vrot.slane %v1854_v33, 4  ;;  %v1857_v58 = vrot.slane %v4727_v35, 5  ;;  %v5398_v47 = vld [vmem:[%s7110_s1 + $0x228] sm:$0xff] }
  0x5f   : > { %v1965_v23 = vunpack.c.l.b16 %v1851_v19  ;;  %2818 = vmatpush.bf16.msra.mxu2 %v5382_v39  ;;  %v1855_v45 = vsel %vm5883_vm2, %v4767_v40, %v1854_v33  ;;  %v4733_v33 = vld [vmem:[%s5852_s13 + $0x5c] sm:$0x1] }
  0x60   : > { %v1858_v46 = vsel %vm5883_vm2, %v1856_v41, %v1857_v58  ;;  %v1966_v50 = vunpack.c.l.b16 %v1855_v45  ;;  %v5357_v58 = vld [vmem:[%s7110_s1 + $0x160] sm:$0xff] }
  0x61   : > { %2500 = vmatpush.bf16.msra.mxu1 %v5358_v42  ;;  %3702 = vmatpush.bf16.msra.mxu0 %v5398_v47 }
  0x65   : > { %2501 = vmatpush.bf16.msra.mxu1 %v5357_v58  ;;  %v1003_v58 = vld [vmem:[%s5852_s13 + $0x5c] sm:$0x3] }
  0x66   : > { %725 = vmatmul.bf16.gmra.mxu1 %v609_v60  ;;  %745 = vmatmul.bf16.gmra.mxu2 %v613_v61  ;;  %v1217_v60 = vpack.c.b16 %v1187_v52, %v1186_v51  ;;  %v5322_v61 = vld [vmem:[%s5852_s13 + $0x24] sm:$0xff]  ;;  %v1967_v51 = vunpack.c.l.b16 %v1858_v46  ;;  %v4729_v52 = vld [vmem:[%s5852_s13 + $0x4c] sm:$0xf] }
  0x67   : > { %765 = vmatmul.bf16.gmra.mxu3 %v617_v2  ;;  %v1071_v2 = vrot.slane %v6002_v0, 6 }
  0x68   : > { %705 = vmatmul.bf16.gmra.mxu0 %v605_v3  ;;  %v992_v3 = vld [vmem:[%s5852_s13 + $0x18] sm:$0xc] }
  0x69   : > { %v4510_v11 = vrot.slane %v992_v3, 10  ;;  %v1073_v12 = vrot.slane %v1071_v2, 4  ;;  %v4728_v3 = vld [vmem:[%s5852_s13 + $0x48] sm:$0xe] }
  0x6b   : > { %v1072_v0 = vsel %vm6128_vm5, %v4510_v11, %v1071_v2  ;;  %v1075_v17 = vsel %vm6128_vm5, %v1073_v12, %v1074_v13  ;;  %v1861_v2 = vrot.slane %v4729_v52, 5  ;;  %v4768_v11 = vrot.slane %v4728_v3, 9 }
  0x6c   : > { %v1188_v20 = vunpack.c.l.b16 %v1072_v0  ;;  %v1189_v21 = vunpack.c.l.b16 %v1075_v17  ;;  %v1864_v13 = vrot.slane %v4730_v6, 5  ;;  %v1099_v3 = vrot.slane %v5989_v56, 6 }
  0x6d   : > { %v1863_v12 = vrot.slane %v1861_v2, 4  ;;  %v1862_v15 = vsel %vm5883_vm2, %v4768_v11, %v1861_v2  ;;  %v4734_v11 = vld [vmem:[%s5852_s13 + $0x60] sm:$0xe] }
  0x6e   : > { %v1218_v27 = vpack.c.b16 %v1189_v21, %v1188_v20  ;;  %v1968_v18 = vunpack.c.l.b16 %v1862_v15  ;;  %v4732_v20 = vld [vmem:[%s5852_s13 + $0x58] sm:$0xf]  ;;  %v5285_v21 = vld [vmem:[%s5852_s13 + $0x30] sm:$0xff]  ;;  %v4770_v15 = vrot.slane %v4734_v11, 9 }
  0x6f   : > { %v1865_v16 = vsel %vm5883_vm2, %v1863_v12, %v1864_v13  ;;  %v4736_v12 = vld [vmem:[%s5852_s13 + $0x68] sm:$0x1]  ;;  %v5356_v11 = vld [vmem:[%s7110_s1 + $0x158] sm:$0xff] }
  0x70   : > { %v1969_v19 = vunpack.c.l.b16 %v1865_v16  ;;  %2502 = vmatpush.bf16.msra.mxu1 %v5356_v11 }
  0x76   : > { %907 = vmatmul.bf16.vlgmr.msrb.gmra.mxu1 %v5281_v28  ;;  %1304 = vmatmul.bf16.vlgmr.msrb.gmra.mxu2 %v1216_v29  ;;  %v5323_v28 = vld [vmem:[%s5852_s13 + $0x30] sm:$0xff]  ;;  %v1994_v29 = vpack.c.b16 %v1965_v23, %v1964_v22 }
  0x77   : > { %1622 = vmatmul.bf16.vlgmr.msrb.gmra.mxu3 %v5321_v30  ;;  %v1078_v30 = vrot.slane %v6081_v5, 6  ;;  %v5390_v5 = vld [vmem:[%s7110_s1 + $0x1e8] sm:$0xff] }
  0x78   : > { %2080 = vmatmul.bf16.vlgmr.msrb.gmra.mxu0 %v1992_v31  ;;  %v994_v31 = vld [vmem:[%s5852_s13 + $0x24] sm:$0xc]  ;;  %3276 = vmatpush.bf16.msra.mxu3 %v5390_v5  ;;  %v1871_v5 = vrot.slane %v4733_v33, 5 }
  0x79   : > { %v4511_v36 = vrot.slane %v994_v31, 10  ;;  %v1080_v37 = vrot.slane %v1078_v30, 4  ;;  %v1868_v31 = vrot.slane %v4732_v20, 5 }
  0x7b   : > { %v1079_v43 = vsel %vm6128_vm5, %v4511_v36, %v1078_v30  ;;  %v1082_v44 = vsel %vm6128_vm5, %v1080_v37, %v1081_v38  ;;  %v999_v30 = vld [vmem:[%s5852_s13 + $0x44] sm:$0x3]  ;;  %v4769_v38 = vrot.slane %v4731_v32, 9  ;;  %v1870_v39 = vrot.slane %v1868_v31, 4  ;;  %v4738_v32 = vld [vmem:[%s5852_s13 + $0x70] sm:$0xf] }
  0x7c   : > { %v1190_v48 = vunpack.c.l.b16 %v1079_v43  ;;  %v1191_v49 = vunpack.c.l.b16 %v1082_v44  ;;  %v1095_v36 = vrot.slane %v999_v30, 6  ;;  %v5381_v37 = vld [vmem:[%s7110_s1 + $0x1a0] sm:$0xff] }
  0x7d   : > { %2819 = vmatpush.bf16.msra.mxu2 %v5381_v37  ;;  %v1869_v46 = vsel %vm5883_vm2, %v4769_v38, %v1868_v31  ;;  %v1872_v47 = vsel %vm5883_vm2, %v1870_v39, %v1871_v5  ;;  %v5327_v37 = vld [vmem:[%s5852_s13 + $0x60] sm:$0xff]  ;;  %v1106_v38 = vrot.slane %v6068_v62, 6  ;;  %v1002_v5 = vld [vmem:[%s5852_s13 + $0x54] sm:$0xc]  ;;  %v5388_v62 = vld [vmem:[%s7110_s1 + $0x1d8] sm:$0xff] }
  0x7e   : > { %v1219_v55 = vpack.c.b16 %v1191_v49, %v1190_v48  ;;  %v5397_v48 = vld [vmem:[%s7110_s1 + $0x220] sm:$0xff]  ;;  %v1971_v52 = vunpack.c.l.b16 %v1872_v47  ;;  %v4515_v47 = vrot.slane %v1002_v5, 10 }
  0x7f   : > { %3703 = vmatpush.bf16.msra.mxu0 %v5397_v48  ;;  %v1108_v48 = vrot.slane %v1106_v38, 4 }
  0x86   : > { %912 = vmatmul.bf16.gmra.mxu1 %v5282_v59  ;;  %1309 = vmatmul.bf16.gmra.mxu2 %v1217_v60  ;;  %v1995_v59 = vpack.c.b16 %v1967_v51, %v1966_v50  ;;  %v1085_v60 = vrot.slane %v5858_v4, 6  ;;  %v1970_v51 = vunpack.c.l.b16 %v1869_v46  ;;  %v4739_v46 = vld [vmem:[%s5852_s13 + $0x74] sm:$0x1] }
  0x87   : > { %1627 = vmatmul.bf16.gmra.mxu3 %v5322_v61  ;;  %v996_v61 = vld [vmem:[%s5852_s13 + $0x30] sm:$0xc] }
  0x88   : > { %2085 = vmatmul.bf16.gmra.mxu0 %v1993_v1  ;;  %v997_v1 = vld [vmem:[%s5852_s13 + $0x38] sm:$0x3]  ;;  %v4512_v8 = vrot.slane %v996_v61, 10  ;;  %v1087_v9 = vrot.slane %v1085_v60, 4  ;;  %v1997_v2 = vpack.c.b16 %v1971_v52, %v1970_v51 }
  0x89   : > { %v1088_v10 = vrot.slane %v997_v1, 6  ;;  %v5326_v1 = vld [vmem:[%s5852_s13 + $0x54] sm:$0xff] }
  0x8a   : > { %v1086_v4 = vsel %vm6128_vm5, %v4512_v8, %v1085_v60  ;;  %v1000_v8 = vld [vmem:[%s5852_s13 + $0x48] sm:$0xc] }
  0x8b   : > { %v1089_v14 = vsel %vm6128_vm5, %v1087_v9, %v1088_v10  ;;  %v1192_v0 = vunpack.c.l.b16 %v1086_v4  ;;  %v1001_v9 = vld [vmem:[%s5852_s13 + $0x50] sm:$0x3]  ;;  %v4514_v13 = vrot.slane %v1000_v8, 10  ;;  %v1101_v4 = vrot.slane %v1099_v3, 4 }
  0x8c   : > { %v1193_v17 = vunpack.c.l.b16 %v1089_v14  ;;  %v1102_v14 = vrot.slane %v1001_v9, 6 }
  0x8e   : > { %v1220_v22 = vpack.c.b16 %v1193_v17, %v1192_v0  ;;  %v1878_v0 = vrot.slane %v4736_v12, 5  ;;  %v1103_v20 = vsel %vm6128_vm5, %v1101_v4, %v1102_v14  ;;  %v5396_v12 = vld [vmem:[%s7110_s1 + $0x218] sm:$0xff] }
  0x8f   : > { %3704 = vmatpush.bf16.msra.mxu0 %v5396_v12 }
  0x96   : > { %917 = vmatmul.bf16.gmra.mxu1 %v5283_v25  ;;  %1314 = vmatmul.bf16.gmra.mxu2 %v1218_v27  ;;  %v1996_v25 = vpack.c.b16 %v1969_v19, %v1968_v18  ;;  %v1092_v27 = vrot.slane %v5910_v53, 6  ;;  %v5389_v53 = vld [vmem:[%s7110_s1 + $0x1e0] sm:$0xff]  ;;  %v1100_v19 = vsel %vm6128_vm5, %v4514_v13, %v1099_v3 }
  0x97   : > { %1632 = vmatmul.bf16.gmra.mxu3 %v5323_v28 }
  0x98   : > { %2090 = vmatmul.bf16.gmra.mxu0 %v1994_v29  ;;  %v998_v29 = vld [vmem:[%s5852_s13 + $0x3c] sm:$0xc]  ;;  %v1094_v35 = vrot.slane %v1092_v27, 4  ;;  %3277 = vmatpush.bf16.msra.mxu3 %v5389_v53 }
  0x99   : > { %v4513_v34 = vrot.slane %v998_v29, 10 }
  0x9a   : > { %v1096_v44 = vsel %vm6128_vm5, %v1094_v35, %v1095_v36 }
  0x9b   : > { %v1093_v43 = vsel %vm6128_vm5, %v4513_v34, %v1092_v27  ;;  %v1195_v50 = vunpack.c.l.b16 %v1096_v44  ;;  %v1197_v27 = vunpack.c.l.b16 %v1103_v20  ;;  %v5287_v34 = vld [vmem:[%s5852_s13 + $0x48] sm:$0xff]  ;;  %v5288_v20 = vld [vmem:[%s5852_s13 + $0x54] sm:$0xff] }
  0x9c   : > { %v1194_v49 = vunpack.c.l.b16 %v1093_v43  ;;  %v1882_v43 = vrot.slane %v4738_v32, 5  ;;  %v4737_v44 = vld [vmem:[%s5852_s13 + $0x6c] sm:$0xe]  ;;  %3278 = vmatpush.bf16.msra.mxu3 %v5388_v62 }
  0x9d   : > { %v4771_v51 = vrot.slane %v4737_v44, 9 }
  0x9e   : > { %v1221_v60 = vpack.c.b16 %v1195_v50, %v1194_v49  ;;  %v1109_v49 = vrot.slane %v1003_v58, 6  ;;  %v5380_v50 = vld [vmem:[%s7110_s1 + $0x198] sm:$0xff]  ;;  %v1884_v52 = vrot.slane %v1882_v43, 4 }
  0x9f   : > { %2820 = vmatpush.bf16.msra.mxu2 %v5380_v50  ;;  %v1883_v9 = vsel %vm5883_vm2, %v4771_v51, %v1882_v43 }
  0xa0   : > { %v1110_v3 = vsel %vm6128_vm5, %v1108_v48, %v1109_v49  ;;  %v1974_v14 = vunpack.c.l.b16 %v1883_v9 }
  0xa1   : > { %v1199_v4 = vunpack.c.l.b16 %v1110_v3 }
  0xa6   : > { %922 = vmatmul.bf16.gmra.mxu1 %v5284_v54  ;;  %1319 = vmatmul.bf16.gmra.mxu2 %v1219_v55  ;;  %v4735_v55 = vld [vmem:[%s5852_s13 + $0x64] sm:$0xf] }
  0xa7   : > { %1637 = vmatmul.bf16.gmra.mxu3 %v5324_v57  ;;  %v1875_v10 = vrot.slane %v4735_v55, 5  ;;  %v1885_v55 = vrot.slane %v4739_v46, 5 }
  0xa8   : > { %2095 = vmatmul.bf16.gmra.mxu0 %v1995_v59  ;;  %v5286_v59 = vld [vmem:[%s5852_s13 + $0x3c] sm:$0xff] }
  0xa9   : > { %v1877_v16 = vrot.slane %v1875_v10, 4 }
  0xb3   : > { %v6230_v23 = vpop.f32.mrf.mxu1 }
  0xb5   : > { %v6234_v28 = vpop.f32.mrf.mxu0 }
  0xb6   : > { %927 = vmatmul.bf16.gmra.mxu1 %v5285_v21  ;;  %1324 = vmatmul.bf16.gmra.mxu2 %v1220_v22  ;;  %v1876_v22 = vsel %vm5883_vm2, %v4770_v15, %v1875_v10  ;;  %v1886_v10 = vsel %vm5883_vm2, %v1884_v52, %v1885_v55 }
  0xb7   : > { %1642 = vmatmul.bf16.gmra.mxu3 %v5325_v24  ;;  %v1879_v24 = vsel %vm5883_vm2, %v1877_v16, %v1878_v0  ;;  %v1972_v29 = vunpack.c.l.b16 %v1876_v22  ;;  %v1975_v15 = vunpack.c.l.b16 %v1886_v10  ;;  %v4741_v0 = vld [vmem:[%s5852_s13 + $0x7c] sm:$0xf] }
  0xb8   : > { %2100 = vmatmul.bf16.gmra.mxu0 %v1996_v25  ;;  %v1196_v25 = vunpack.c.l.b16 %v1100_v19  ;;  %v1973_v30 = vunpack.c.l.b16 %v1879_v24  ;;  %v5589_v24 = vld [vmem:[%s5852_s13 + $0x64] sm:$0xf] }
  0xb9   : > { %v6246_v40 = vpop.f32.mrf.mxu2 }
  0xba   : > { %v6248_v41 = vpop.f32.mrf.mxu3  ;;  %v1222_v35 = vpack.c.b16 %v1197_v27, %v1196_v25  ;;  %v1998_v53 = vpack.c.b16 %v1973_v30, %v1972_v29  ;;  %v1113_v25 = vrot.slane %v5589_v24, 6  ;;  %v5328_v29 = vld [vmem:[%s5852_s13 + $0x6c] sm:$0xff]  ;;  %v1999_v30 = vpack.c.b16 %v1975_v15, %v1974_v14  ;;  %v5289_v14 = vld [vmem:[%s5852_s13 + $0x60] sm:$0xff]  ;;  %v5329_v24 = vld [vmem:[%s5852_s13 + $0x78] sm:$0xff] }
  0xbb   : > { %v6253_v42 = vpop.f32.mrf.mxu1 }
  0xbc   : > { %v1115_v58 = vrot.slane %v1113_v25, 4 }
  0xbd   : > { %v6259_v45 = vpop.f32.mrf.mxu0 }
  0xc1   : > { %v6268_v54 = vpop.f32.mrf.mxu2 }
  0xc2   : > { %v6271_v57 = vpop.f32.mrf.mxu3 }
  0xc3   : > { %v6274_v61 = vpop.f32.mrf.mxu1 }
  0xc5   : > { %v6278_v6 = vpop.f32.mrf.mxu0 }
  0xc6   : > { %932 = vmatmul.bf16.gmra.mxu1 %v5286_v59  ;;  %1329 = vmatmul.bf16.gmra.mxu2 %v1221_v60 }
  0xc7   : > { %1647 = vmatmul.bf16.gmra.mxu3 %v5326_v1 }
  0xc8   : > { %2105 = vmatmul.bf16.gmra.mxu0 %v1997_v2  ;;  %v1107_v2 = vsel %vm6128_vm5, %v4515_v47, %v1106_v38  ;;  %v4742_v38 = vld [vmem:[%s5852_s13 + $0x80] sm:$0x1] }
  0xc9   : > { %v6284_v56 = vpop.f32.mrf.mxu2  ;;  %v1198_v13 = vunpack.c.l.b16 %v1107_v2  ;;  %v1892_v47 = vrot.slane %v4742_v38, 5  ;;  %v4745_v38 = vld [vmem:[%s5852_s13 + $0x8c] sm:$0x1] }
  0xca   : > { %v6286_v17 = vpop.f32.mrf.mxu3 }
  0xcb   : > { %v6288_v18 = vpop.f32.mrf.mxu1  ;;  %v1223_v22 = vpack.c.b16 %v1199_v4, %v1198_v13  ;;  %v4744_v13 = vld [vmem:[%s5852_s13 + $0x88] sm:$0xf] }
  0xcd   : > { %v6294_v21 = vpop.f32.mrf.mxu0 }
  0xd1   : > { %v6300_v31 = vpop.f32.mrf.mxu2 }
  0xd2   : > { %v6303_v33 = vpop.f32.mrf.mxu3 }
  0xd3   : > { %v6306_v36 = vpop.f32.mrf.mxu1 }
  0xd5   : > { %v6310_v39 = vpop.f32.mrf.mxu0 }
  0xd6   : > { %937 = vmatmul.bf16.gmra.mxu1 %v5287_v34  ;;  %1334 = vmatmul.bf16.gmra.mxu2 %v1222_v35  ;;  %v1004_v34 = vld [vmem:[%s5852_s13 + $0x60] sm:$0xc]  ;;  %v1005_v35 = vld [vmem:[%s5852_s13 + $0x68] sm:$0x3] }
  0xd7   : > { %1652 = vmatmul.bf16.gmra.mxu3 %v5327_v37  ;;  %v1889_v37 = vrot.slane %v4741_v0, 5  ;;  %v4516_v5 = vrot.slane %v1004_v34, 10  ;;  %v1116_v43 = vrot.slane %v1005_v35, 6  ;;  %v5590_v0 = vld [vmem:[%s5852_s13 + $0x70] sm:$0xf] }
  0xd8   : > { %2110 = vmatmul.bf16.gmra.mxu0 %v1998_v53  ;;  %v4740_v53 = vld [vmem:[%s5852_s13 + $0x78] sm:$0xe]  ;;  %v1006_v34 = vld [vmem:[%s5852_s13 + $0x6c] sm:$0xc]  ;;  %v1007_v35 = vld [vmem:[%s5852_s13 + $0x74] sm:$0x3] }
  0xd9   : > { %v6322_v59 = vpop.f32.mrf.mxu2  ;;  %v4772_v44 = vrot.slane %v4740_v53, 9  ;;  %v1891_v46 = vrot.slane %v1889_v37, 4  ;;  %v1114_v62 = vsel %vm6128_vm5, %v4516_v5, %v1113_v25  ;;  %v1117_v51 = vsel %vm6128_vm5, %v1115_v58, %v1116_v43  ;;  %v4743_v53 = vld [vmem:[%s5852_s13 + $0x84] sm:$0xe] }
  0xda   : > { %v6324_v60 = vpop.f32.mrf.mxu3  ;;  %v1200_v3 = vunpack.c.l.b16 %v1114_v62  ;;  %v1201_v9 = vunpack.c.l.b16 %v1117_v51  ;;  %v4517_v5 = vrot.slane %v1006_v34, 10  ;;  %v1123_v43 = vrot.slane %v1007_v35, 6 }
  0xdb   : > { %v6326_v1 = vpop.f32.mrf.mxu1  ;;  %v1890_v55 = vsel %vm5883_vm2, %v4772_v44, %v1889_v37  ;;  %v1893_v2 = vsel %vm5883_vm2, %v1891_v46, %v1892_v47  ;;  %v1896_v37 = vrot.slane %v4744_v13, 5  ;;  %v5379_v44 = vld [vmem:[%s7110_s1 + $0x190] sm:$0xff]  ;;  %v4773_v46 = vrot.slane %v4743_v53, 9 }
  0xdc   : > { %v1976_v10 = vunpack.c.l.b16 %v1890_v55  ;;  %v1977_v11 = vunpack.c.l.b16 %v1893_v2  ;;  %v1224_v15 = vpack.c.b16 %v1201_v9, %v1200_v3  ;;  %v1899_v62 = vrot.slane %v4745_v38, 5  ;;  %2821 = vmatpush.bf16.msra.mxu2 %v5379_v44 }
  0xdd   : > { %v6332_v8 = vpop.f32.mrf.mxu0  ;;  %v1898_v47 = vrot.slane %v1896_v37, 4 }
  0xde   : > { %v2000_v25 = vpack.c.b16 %v1977_v11, %v1976_v10 }
  0xe1   : > { %v6344_v16 = vpop.f32.mrf.mxu2 }
  0xe2   : > { %v6347_v19 = vpop.f32.mrf.mxu3 }
  0xe3   : > { %v6351_v27 = vpop.f32.mrf.mxu1 }
  0xe5   : > { %v6354_v32 = vpop.f32.mrf.mxu0 }
  0xe6   : > { %942 = vmatmul.bf16.gmra.mxu1 %v5288_v20  ;;  %1339 = vmatmul.bf16.gmra.mxu2 %v1223_v22  ;;  %v1120_v20 = vrot.slane %v5590_v0, 6  ;;  %v1900_v0 = vsel %vm5883_vm2, %v1898_v47, %v1899_v62 }
  0xe7   : > { %1657 = vmatmul.bf16.gmra.mxu3 %v5328_v29  ;;  %v1979_v34 = vunpack.c.l.b16 %v1900_v0 }
  0xe8   : > { %2115 = vmatmul.bf16.gmra.mxu0 %v1999_v30  ;;  %v1122_v58 = vrot.slane %v1120_v20, 4  ;;  %v1121_v9 = vsel %vm6128_vm5, %v4517_v5, %v1120_v20  ;;  %v5355_v20 = vld [vmem:[%s7110_s1 + $0x150] sm:$0xff] }
  0xe9   : > { %v6360_v48 = vpop.f32.mrf.mxu2  ;;  %2503 = vmatpush.bf16.msra.mxu1 %v5355_v20  ;;  %v5290_v5 = vld [vmem:[%s5852_s13 + $0x6c] sm:$0xff] }
  0xea   : > { %v6362_v49 = vpop.f32.mrf.mxu3  ;;  %v1124_v10 = vsel %vm6128_vm5, %v1122_v58, %v1123_v43  ;;  %v5591_v43 = vld [vmem:[%s5852_s13 + $0x7c] sm:$0xf] }
  0xeb   : > { %v6364_v50 = vpop.f32.mrf.mxu1  ;;  %v1127_v44 = vrot.slane %v5591_v43, 6 }
  0xed   : > { %v6370_v52 = vpop.f32.mrf.mxu0 }
  0xf1   : > { %v6376_v12 = vpop.f32.mrf.mxu2 }
  0xf2   : > { %v6379_v4 = vpop.f32.mrf.mxu3 }
  0xf3   : > { %v908_v22 = vpop.f32.mrf.mxu1 }
  0xf4   : > { %v909_v29 = vadd.f32 %v908_v22, %v6234_v28  ;;  %v5387_v28 = vld [vmem:[%s7110_s1 + $0x1d0] sm:$0xff] }
  0xf5   : > { %v2081_v30 = vpop.f32.mrf.mxu0  ;;  %3279 = vmatpush.bf16.msra.mxu3 %v5387_v28  ;;  %v5395_v22 = vld [vmem:[%s7110_s1 + $0x210] sm:$0xff] }
  0xf6   : > { %947 = vmatmul.bf16.gmra.mxu1 %v5289_v14  ;;  %1344 = vmatmul.bf16.gmra.mxu2 %v1224_v15  ;;  %v1897_v15 = vsel %vm5883_vm2, %v4773_v46, %v1896_v37  ;;  %v4747_v37 = vld [vmem:[%s5852_s13 + $0x94] sm:$0xf]  ;;  %v5330_v46 = vld [vmem:[%s5852_s13 + $0x84] sm:$0xff] }
  0xf7   : > { %1662 = vmatmul.bf16.gmra.mxu3 %v5329_v24  ;;  %v1202_v24 = vunpack.c.l.b16 %v1121_v9  ;;  %3705 = vmatpush.bf16.msra.mxu0 %v5395_v22  ;;  %v4746_v9 = vld [vmem:[%s5852_s13 + $0x90] sm:$0xe] }
  0xf8   : > { %2120 = vmatmul.bf16.gmra.mxu0 %v2000_v25  ;;  %v4774_v20 = vrot.slane %v4746_v9, 9 }
  0xf9   : > { %v1305_v51 = vpop.f32.mrf.mxu2 }
  0xfa   : > { %v1385_v55 = vadd.f32 %v1305_v51, %v909_v29  ;;  %v1623_v2 = vpop.f32.mrf.mxu3  ;;  %v1978_v29 = vunpack.c.l.b16 %v1897_v15  ;;  %v1129_v15 = vrot.slane %v1127_v44, 4 }
  0xfb   : > { %v910_v3 = vpop.f32.mrf.mxu1 }
  0xfc   : > { %v1703_v11 = vadd.f32 %v1623_v2, %v1385_v55  ;;  %v911_v13 = vadd.f32 %v910_v3, %v6259_v45  ;;  %v1203_v45 = vunpack.c.l.b16 %v1124_v10  ;;  %v2001_v47 = vpack.c.b16 %v1979_v34, %v1978_v29  ;;  %v1008_v55 = vld [vmem:[%s5852_s13 + $0x78] sm:$0xc]  ;;  %v1009_v2 = vld [vmem:[%s5852_s13 + $0x80] sm:$0x3]  ;;  %v4748_v10 = vld [vmem:[%s5852_s13 + $0x98] sm:$0x1] }
  0xfd   : > { %v2083_v14 = vpop.f32.mrf.mxu0  ;;  %v1903_v3 = vrot.slane %v4747_v37, 5  ;;  %v1130_v0 = vrot.slane %v1009_v2, 6  ;;  %v5291_v2 = vld [vmem:[%s5852_s13 + $0x78] sm:$0xff] }
  0xfe   : > { %v6410_v25 = vadd.f32 %v2081_v30, %v1703_v11  ;;  %v1225_v58 = vpack.c.b16 %v1203_v45, %v1202_v24  ;;  %v1906_v24 = vrot.slane %v4748_v10, 5 }
  0xff   : > { %v1905_v22 = vrot.slane %v1903_v3, 4 }
 0x101   : > { %v1307_v35 = vpop.f32.mrf.mxu2 }
 0x102   : > { %v1386_v53 = vadd.f32 %v1307_v35, %v911_v13  ;;  %v1625_v38 = vpop.f32.mrf.mxu3  ;;  %v4518_v13 = vrot.slane %v1008_v55, 10 }
 0x103   : > { %v913_v28 = vpop.f32.mrf.mxu1 }
 0x104   : > { %v1704_v62 = vadd.f32 %v1625_v38, %v1386_v53  ;;  %v914_v30 = vadd.f32 %v913_v28, %v6278_v6  ;;  %v1128_v35 = vsel %vm6128_vm5, %v4518_v13, %v1127_v44  ;;  %v5331_v13 = vld [vmem:[%s5852_s13 + $0x90] sm:$0xff] }
 0x105   : > { %v2086_v51 = vpop.f32.mrf.mxu0  ;;  %v1204_v43 = vunpack.c.l.b16 %v1128_v35 }
 0x106   : > { %952 = vmatmul.bf16.gmra.mxu1 %v5290_v5  ;;  %1349 = vmatmul.bf16.gmra.mxu2 %v1225_v58  ;;  %v6421_v11 = vadd.f32 %v2083_v14, %v1704_v62  ;;  %v1131_v14 = vsel %vm6128_vm5, %v1129_v15, %v1130_v0  ;;  %v1904_v5 = vsel %vm5883_vm2, %v4774_v20, %v1903_v3  ;;  %v1134_v3 = vrot.slane %v6071_v63, 6 }
 0x107   : > { %1667 = vmatmul.bf16.gmra.mxu3 %v5330_v46  ;;  %v1907_v58 = vsel %vm5883_vm2, %v1905_v22, %v1906_v24  ;;  %v1205_v28 = vunpack.c.l.b16 %v1131_v14  ;;  %v1980_v44 = vunpack.c.l.b16 %v1904_v5  ;;  %v1010_v22 = vld [vmem:[%s5852_s13 + $0x84] sm:$0xc]  ;;  %v1011_v24 = vld [vmem:[%s5852_s13 + $0x8c] sm:$0x3] }
 0x108   : > { %2125 = vmatmul.bf16.gmra.mxu0 %v2001_v47  ;;  %v1981_v47 = vunpack.c.l.b16 %v1907_v58  ;;  %v4519_v35 = vrot.slane %v1010_v22, 10  ;;  %v1136_v63 = vrot.slane %v1134_v3, 4  ;;  %v1137_v14 = vrot.slane %v1011_v24, 6  ;;  %v4753_v24 = vld [vmem:[%s5852_s13 + $0xac] sm:$0xf] }
 0x109   : > { %v1310_v45 = vpop.f32.mrf.mxu2  ;;  %v1226_v9 = vpack.c.b16 %v1205_v28, %v1204_v43 }
 0x10a   : > { %v1387_v6 = vadd.f32 %v1310_v45, %v914_v30  ;;  %v1628_v29 = vpop.f32.mrf.mxu3  ;;  %v4750_v30 = vld [vmem:[%s5852_s13 + $0xa0] sm:$0xf]  ;;  %v2002_v15 = vpack.c.b16 %v1981_v47, %v1980_v44  ;;  %v1135_v47 = vsel %vm6128_vm5, %v4519_v35, %v1134_v3  ;;  %v5354_v3 = vld [vmem:[%s7110_s1 + $0x148] sm:$0xff] }
 0x10b   : > { %v915_v34 = vpop.f32.mrf.mxu1  ;;  %v1910_v45 = vrot.slane %v4750_v30, 5  ;;  %2504 = vmatpush.bf16.msra.mxu1 %v5354_v3 }
 0x10c   : > { %v1705_v37 = vadd.f32 %v1628_v29, %v1387_v6  ;;  %v916_v53 = vadd.f32 %v915_v34, %v6294_v21  ;;  %v4749_v6 = vld [vmem:[%s5852_s13 + $0x9c] sm:$0xe]  ;;  %v4751_v29 = vld [vmem:[%s5852_s13 + $0xa4] sm:$0x1] }
 0x10d   : > { %v2088_v38 = vpop.f32.mrf.mxu0  ;;  %v1912_v5 = vrot.slane %v1910_v45, 4  ;;  %v1913_v58 = vrot.slane %v4751_v29, 5  ;;  %v5292_v29 = vld [vmem:[%s5852_s13 + $0x84] sm:$0xff] }
 0x10e   : > { %v6432_v46 = vadd.f32 %v2086_v51, %v1705_v37  ;;  %v5378_v37 = vld [vmem:[%s7110_s1 + $0x188] sm:$0xff] }
 0x10f   : > { %2822 = vmatpush.bf16.msra.mxu2 %v5378_v37 }
 0x111   : > { %v1312_v62 = vpop.f32.mrf.mxu2 }
 0x112   : > { %v1388_v21 = vadd.f32 %v1312_v62, %v916_v53  ;;  %v1630_v55 = vpop.f32.mrf.mxu3  ;;  %v4775_v53 = vrot.slane %v4749_v6, 9  ;;  %v1138_v62 = vsel %vm6128_vm5, %v1136_v63, %v1137_v14  ;;  %v5592_v63 = vld [vmem:[%s5852_s13 + $0x94] sm:$0xf] }
 0x113   : > { %v918_v10 = vpop.f32.mrf.mxu1  ;;  %v1141_v14 = vrot.slane %v5592_v63, 6 }
 0x114   : > { %v1706_v0 = vadd.f32 %v1630_v55, %v1388_v21  ;;  %v919_v51 = vadd.f32 %v918_v10, %v6310_v39  ;;  %v5386_v39 = vld [vmem:[%s7110_s1 + $0x1c8] sm:$0xff] }
 0x115   : > { %v2091_v20 = vpop.f32.mrf.mxu0  ;;  %3280 = vmatpush.bf16.msra.mxu3 %v5386_v39  ;;  %v5394_v10 = vld [vmem:[%s7110_s1 + $0x208] sm:$0xff]  ;;  %v5332_v39 = vld [vmem:[%s5852_s13 + $0x9c] sm:$0xff] }
 0x116   : > { %957 = vmatmul.bf16.gmra.mxu1 %v5291_v2  ;;  %1354 = vmatmul.bf16.gmra.mxu2 %v1226_v9  ;;  %v6443_v34 = vadd.f32 %v2088_v38, %v1706_v0  ;;  %v1911_v2 = vsel %vm5883_vm2, %v4775_v53, %v1910_v45  ;;  %v1914_v9 = vsel %vm5883_vm2, %v1912_v5, %v1913_v58 }
 0x117   : > { %1672 = vmatmul.bf16.gmra.mxu3 %v5331_v13  ;;  %v1206_v13 = vunpack.c.l.b16 %v1135_v47  ;;  %3706 = vmatpush.bf16.msra.mxu0 %v5394_v10  ;;  %v1982_v0 = vunpack.c.l.b16 %v1911_v2  ;;  %v4754_v47 = vld [vmem:[%s5852_s13 + $0xb0] sm:$0x1] }
 0x118   : > { %2130 = vmatmul.bf16.gmra.mxu0 %v2002_v15  ;;  %v1920_v10 = vrot.slane %v4754_v47, 5 }
 0x119   : > { %v1315_v43 = vpop.f32.mrf.mxu2 }
 0x11a   : > { %v1389_v38 = vadd.f32 %v1315_v43, %v919_v51  ;;  %v1633_v28 = vpop.f32.mrf.mxu3  ;;  %v1983_v51 = vunpack.c.l.b16 %v1914_v9  ;;  %v1012_v43 = vld [vmem:[%s5852_s13 + $0x90] sm:$0xc] }
 0x11b   : > { %v920_v44 = vpop.f32.mrf.mxu1 }
 0x11c   : > { %v1707_v30 = vadd.f32 %v1633_v28, %v1389_v38  ;;  %v921_v21 = vadd.f32 %v920_v44, %v6332_v8  ;;  %v1207_v8 = vunpack.c.l.b16 %v1138_v62  ;;  %v2003_v53 = vpack.c.b16 %v1983_v51, %v1982_v0  ;;  %v1013_v38 = vld [vmem:[%s5852_s13 + $0x98] sm:$0x3]  ;;  %v4752_v44 = vld [vmem:[%s5852_s13 + $0xa8] sm:$0xe] }
 0x11d   : > { %v2093_v55 = vpop.f32.mrf.mxu0  ;;  %v1917_v28 = vrot.slane %v4753_v24, 5  ;;  %v1144_v2 = vrot.slane %v1013_v38, 6  ;;  %v4776_v9 = vrot.slane %v4752_v44, 9 }
 0x11e   : > { %v6466_v15 = vadd.f32 %v2091_v20, %v1707_v30  ;;  %v1227_v35 = vpack.c.b16 %v1207_v8, %v1206_v13  ;;  %v4520_v30 = vrot.slane %v1012_v43, 10  ;;  %v5293_v43 = vld [vmem:[%s5852_s13 + $0x90] sm:$0xff] }
 0x11f   : > { %v1919_v3 = vrot.slane %v1917_v28, 4 }
 0x120   : > { %v1142_v51 = vsel %vm6128_vm5, %v4520_v30, %v1141_v14  ;;  %v5333_v30 = vld [vmem:[%s5852_s13 + $0xa8] sm:$0xff] }
 0x121   : > { %v1317_v22 = vpop.f32.mrf.mxu2 }
 0x122   : > { %v1390_v45 = vadd.f32 %v1317_v22, %v921_v21  ;;  %v1635_v6 = vpop.f32.mrf.mxu3  ;;  %v1143_v21 = vrot.slane %v1141_v14, 4 }
 0x123   : > { %v923_v37 = vpop.f32.mrf.mxu1 }
 0x124   : > { %v1708_v5 = vadd.f32 %v1635_v6, %v1390_v45  ;;  %v924_v20 = vadd.f32 %v923_v37, %v6354_v32  ;;  %v1918_v6 = vsel %vm5883_vm2, %v4776_v9, %v1917_v28  ;;  %v5593_v28 = vld [vmem:[%s5852_s13 + $0xa0] sm:$0xf]  ;;  %v1014_v9 = vld [vmem:[%s5852_s13 + $0x9c] sm:$0xc] }
 0x125   : > { %v2096_v58 = vpop.f32.mrf.mxu0  ;;  %v1984_v14 = vunpack.c.l.b16 %v1918_v6  ;;  %v1148_v44 = vrot.slane %v5593_v28, 6  ;;  %v5353_v28 = vld [vmem:[%s7110_s1 + $0x140] sm:$0xff] }
 0x126   : > { %962 = vmatmul.bf16.gmra.mxu1 %v5292_v29  ;;  %1359 = vmatmul.bf16.gmra.mxu2 %v1227_v35  ;;  %v6477_v62 = vadd.f32 %v2093_v55, %v1708_v5  ;;  %v1145_v55 = vsel %vm6128_vm5, %v1143_v21, %v1144_v2  ;;  %v1921_v29 = vsel %vm5883_vm2, %v1919_v3, %v1920_v10  ;;  %v1208_v35 = vunpack.c.l.b16 %v1142_v51  ;;  %v4756_v5 = vld [vmem:[%s5852_s13 + $0xb8] sm:$0xf]  ;;  %v1015_v3 = vld [vmem:[%s5852_s13 + $0xa4] sm:$0x3] }
 0x127   : > { %1677 = vmatmul.bf16.gmra.mxu3 %v5332_v39  ;;  %v1209_v63 = vunpack.c.l.b16 %v1145_v55  ;;  %v1985_v39 = vunpack.c.l.b16 %v1921_v29  ;;  %v1924_v10 = vrot.slane %v4756_v5, 5  ;;  %v1150_v51 = vrot.slane %v1148_v44, 4  ;;  %2505 = vmatpush.bf16.msra.mxu1 %v5353_v28 }
 0x128   : > { %2135 = vmatmul.bf16.gmra.mxu0 %v2003_v53  ;;  %v1151_v55 = vrot.slane %v1015_v3, 6 }
 0x129   : > { %v1320_v13 = vpop.f32.mrf.mxu2  ;;  %v1228_v38 = vpack.c.b16 %v1209_v63, %v1208_v35  ;;  %v2004_v21 = vpack.c.b16 %v1985_v39, %v1984_v14  ;;  %v1926_v35 = vrot.slane %v1924_v10, 4 }
 0x12a   : > { %v1391_v32 = vadd.f32 %v1320_v13, %v924_v20  ;;  %v1638_v8 = vpop.f32.mrf.mxu3  ;;  %v4755_v13 = vld [vmem:[%s5852_s13 + $0xb4] sm:$0xe] }
 0x12b   : > { %v925_v0 = vpop.f32.mrf.mxu1  ;;  %v4777_v29 = vrot.slane %v4755_v13, 9  ;;  %v4759_v13 = vld [vmem:[%s5852_s13 + $0xc4] sm:$0xf] }
 0x12c   : > { %v1709_v22 = vadd.f32 %v1638_v8, %v1391_v32  ;;  %v926_v24 = vadd.f32 %v925_v0, %v6370_v52  ;;  %v4757_v32 = vld [vmem:[%s5852_s13 + $0xbc] sm:$0x1]  ;;  %v4521_v0 = vrot.slane %v1014_v9, 10 }
 0x12d   : > { %v2098_v45 = vpop.f32.mrf.mxu0  ;;  %v1927_v63 = vrot.slane %v4757_v32, 5 }
 0x12e   : > { %v6488_v37 = vadd.f32 %v2096_v58, %v1709_v22  ;;  %v5377_v22 = vld [vmem:[%s7110_s1 + $0x180] sm:$0xff]  ;;  %v1149_v5 = vsel %vm6128_vm5, %v4521_v0, %v1148_v44 }
 0x12f   : > { %2823 = vmatpush.bf16.msra.mxu2 %v5377_v22  ;;  %v5393_v44 = vld [vmem:[%s7110_s1 + $0x200] sm:$0xff]  ;;  %v5594_v22 = vld [vmem:[%s5852_s13 + $0xac] sm:$0xf] }
 0x130   : > { %3707 = vmatpush.bf16.msra.mxu0 %v5393_v44 }
 0x131   : > { %v1322_v53 = vpop.f32.mrf.mxu2 }
 0x132   : > { %v1392_v52 = vadd.f32 %v1322_v53, %v926_v24  ;;  %v1640_v20 = vpop.f32.mrf.mxu3  ;;  %v5385_v24 = vld [vmem:[%s7110_s1 + $0x1c0] sm:$0xff] }
 0x133   : > { %v928_v47 = vpop.f32.mrf.mxu1  ;;  %3281 = vmatpush.bf16.msra.mxu3 %v5385_v24  ;;  %v1155_v24 = vrot.slane %v5594_v22, 6 }
 0x134   : > { %v1710_v2 = vadd.f32 %v1640_v20, %v1392_v52  ;;  %v929_v6 = vadd.f32 %v928_v47, %v6230_v23  ;;  %v1152_v52 = vsel %vm6128_vm5, %v1150_v51, %v1151_v55  ;;  %v1925_v23 = vsel %vm5883_vm2, %v4777_v29, %v1924_v10  ;;  %v5294_v51 = vld [vmem:[%s5852_s13 + $0x9c] sm:$0xff]  ;;  %v5334_v29 = vld [vmem:[%s5852_s13 + $0xb4] sm:$0xff] }
 0x135   : > { %v2101_v58 = vpop.f32.mrf.mxu0  ;;  %v1210_v47 = vunpack.c.l.b16 %v1149_v5  ;;  %v4758_v5 = vld [vmem:[%s5852_s13 + $0xc0] sm:$0xe] }
 0x136   : > { %967 = vmatmul.bf16.gmra.mxu1 %v5293_v43  ;;  %1364 = vmatmul.bf16.gmra.mxu2 %v1228_v38  ;;  %v6498_v8 = vadd.f32 %v2098_v45, %v1710_v2  ;;  %v1928_v38 = vsel %vm5883_vm2, %v1926_v35, %v1927_v63  ;;  %v1986_v2 = vunpack.c.l.b16 %v1925_v23  ;;  %v4778_v28 = vrot.slane %v4758_v5, 9 }
 0x137   : > { %1682 = vmatmul.bf16.gmra.mxu3 %v5333_v30  ;;  %v1211_v30 = vunpack.c.l.b16 %v1152_v52  ;;  %v1987_v9 = vunpack.c.l.b16 %v1928_v38 }
 0x138   : > { %2140 = vmatmul.bf16.gmra.mxu0 %v2004_v21 }
 0x139   : > { %v1325_v45 = vpop.f32.mrf.mxu2  ;;  %v1229_v55 = vpack.c.b16 %v1211_v30, %v1210_v47 }
 0x13a   : > { %v1393_v14 = vadd.f32 %v1325_v45, %v929_v6  ;;  %v1643_v39 = vpop.f32.mrf.mxu3  ;;  %v1016_v45 = vld [vmem:[%s5852_s13 + $0xa8] sm:$0xc] }
 0x13b   : > { %v930_v53 = vpop.f32.mrf.mxu1  ;;  %v4522_v52 = vrot.slane %v1016_v45, 10 }
 0x13c   : > { %v1711_v20 = vadd.f32 %v1643_v39, %v1393_v14  ;;  %v931_v3 = vadd.f32 %v930_v53, %v6253_v42  ;;  %v1017_v14 = vld [vmem:[%s5852_s13 + $0xb0] sm:$0x3]  ;;  %v1931_v39 = vrot.slane %v4759_v13, 5  ;;  %v4760_v42 = vld [vmem:[%s5852_s13 + $0xc8] sm:$0x1] }
 0x13d   : > { %v2103_v43 = vpop.f32.mrf.mxu0  ;;  %v1158_v23 = vrot.slane %v1017_v14, 6  ;;  %v1934_v47 = vrot.slane %v4760_v42, 5  ;;  %v5595_v42 = vld [vmem:[%s5852_s13 + $0xb8] sm:$0xf] }
 0x13e   : > { %v6521_v21 = vadd.f32 %v2101_v58, %v1711_v20  ;;  %v2005_v58 = vpack.c.b16 %v1987_v9, %v1986_v2  ;;  %v1157_v20 = vrot.slane %v1155_v24, 4  ;;  %v1933_v44 = vrot.slane %v1931_v39, 4 }
 0x141   : > { %v1327_v10 = vpop.f32.mrf.mxu2 }
 0x142   : > { %v1394_v32 = vadd.f32 %v1327_v10, %v931_v3  ;;  %v1645_v0 = vpop.f32.mrf.mxu3  ;;  %v1156_v10 = vsel %vm6128_vm5, %v4522_v52, %v1155_v24  ;;  %v1162_v52 = vrot.slane %v5595_v42, 6 }
 0x143   : > { %v933_v6 = vpop.f32.mrf.mxu1 }
 0x144   : > { %v1712_v35 = vadd.f32 %v1645_v0, %v1394_v32  ;;  %v934_v38 = vadd.f32 %v933_v6, %v6274_v61  ;;  %v1932_v61 = vsel %vm5883_vm2, %v4778_v28, %v1931_v39  ;;  %v1935_v0 = vsel %vm5883_vm2, %v1933_v44, %v1934_v47  ;;  %v5295_v39 = vld [vmem:[%s5852_s13 + $0xa8] sm:$0xff]  ;;  %v1018_v44 = vld [vmem:[%s5852_s13 + $0xb4] sm:$0xc]  ;;  %v1019_v47 = vld [vmem:[%s5852_s13 + $0xbc] sm:$0x3] }
 0x145   : > { %v2106_v63 = vpop.f32.mrf.mxu0  ;;  %v1988_v6 = vunpack.c.l.b16 %v1932_v61  ;;  %v1989_v24 = vunpack.c.l.b16 %v1935_v0 }
 0x146   : > { %972 = vmatmul.bf16.gmra.mxu1 %v5294_v51  ;;  %1369 = vmatmul.bf16.gmra.mxu2 %v1229_v55  ;;  %v6532_v53 = vadd.f32 %v2103_v43, %v1712_v35  ;;  %v1159_v43 = vsel %vm6128_vm5, %v1157_v20, %v1158_v23  ;;  %v1212_v51 = vunpack.c.l.b16 %v1156_v10  ;;  %v4762_v35 = vld [vmem:[%s5852_s13 + $0xd0] sm:$0xf]  ;;  %v5335_v23 = vld [vmem:[%s5852_s13 + $0xc0] sm:$0xff]  ;;  %v1164_v10 = vrot.slane %v1162_v52, 4 }
 0x147   : > { %1687 = vmatmul.bf16.gmra.mxu3 %v5334_v29  ;;  %v1213_v55 = vunpack.c.l.b16 %v1159_v43  ;;  %v1165_v43 = vrot.slane %v1019_v47, 6 }
 0x148   : > { %2145 = vmatmul.bf16.gmra.mxu0 %v2005_v58 }
 0x149   : > { %v1330_v30 = vpop.f32.mrf.mxu2  ;;  %v1230_v5 = vpack.c.b16 %v1213_v55, %v1212_v51 }
 0x14a   : > { %v1395_v2 = vadd.f32 %v1330_v30, %v934_v38  ;;  %v1648_v9 = vpop.f32.mrf.mxu3  ;;  %v1938_v30 = vrot.slane %v4762_v35, 5 }
 0x14b   : > { %v935_v3 = vpop.f32.mrf.mxu1 }
 0x14c   : > { %v1713_v13 = vadd.f32 %v1648_v9, %v1395_v2  ;;  %v936_v29 = vadd.f32 %v935_v3, %v6288_v18  ;;  %v4761_v2 = vld [vmem:[%s5852_s13 + $0xcc] sm:$0xe]  ;;  %v4763_v18 = vld [vmem:[%s5852_s13 + $0xd4] sm:$0x1]  ;;  %v4523_v3 = vrot.slane %v1018_v44, 10  ;;  %v1940_v0 = vrot.slane %v1938_v30, 4 }
 0x14d   : > { %v2108_v32 = vpop.f32.mrf.mxu0  ;;  %v4779_v61 = vrot.slane %v4761_v2, 9  ;;  %v1941_v51 = vrot.slane %v4763_v18, 5  ;;  %v5596_v44 = vld [vmem:[%s5852_s13 + $0x1c] sm:$0xf]  ;;  %v5296_v18 = vld [vmem:[%s5852_s13 + $0xb4] sm:$0xff] }
 0x14e   : > { %v6543_v22 = vadd.f32 %v2106_v63, %v1713_v13  ;;  %v2006_v63 = vpack.c.b16 %v1989_v24, %v1988_v6  ;;  %v2259_v47 = vrot.slane %v5596_v44, 6 }
 0x151   : > { %v1332_v58 = vpop.f32.mrf.mxu2 }
 0x152   : > { %v1396_v45 = vadd.f32 %v1332_v58, %v936_v29  ;;  %v1650_v14 = vpop.f32.mrf.mxu3  ;;  %v1166_v58 = vsel %vm6128_vm5, %v1164_v10, %v1165_v43 }
 0x153   : > { %v938_v20 = vpop.f32.mrf.mxu1 }
 0x154   : > { %v1714_v38 = vadd.f32 %v1650_v14, %v1396_v45  ;;  %v939_v13 = vadd.f32 %v938_v20, %v6306_v36  ;;  %v1939_v36 = vsel %vm5883_vm2, %v4779_v61, %v1938_v30  ;;  %v1942_v14 = vsel %vm5883_vm2, %v1940_v0, %v1941_v51  ;;  %v4829_v61 = vld [vmem:[%s5852_s13 + $0x20] sm:$0x3] }
 0x155   : > { %v2111_v28 = vpop.f32.mrf.mxu0  ;;  %v1991_v20 = vunpack.c.l.b16 %v1942_v14  ;;  %v2262_v14 = vrot.slane %v4829_v61, 6 }
 0x156   : > { %977 = vmatmul.bf16.gmra.mxu1 %v5295_v39  ;;  %1374 = vmatmul.bf16.gmra.mxu2 %v1230_v5  ;;  %v6554_v9 = vadd.f32 %v2108_v32, %v1714_v38  ;;  %v1163_v32 = vsel %vm6128_vm5, %v4523_v3, %v1162_v52  ;;  %v1215_v5 = vunpack.c.l.b16 %v1166_v58  ;;  %v1990_v52 = vunpack.c.l.b16 %v1939_v36 }
 0x157   : > { %1692 = vmatmul.bf16.gmra.mxu3 %v5335_v23  ;;  %v1214_v39 = vunpack.c.l.b16 %v1163_v32  ;;  %v5181_v32 = vld [vmem:[%s5852_s13 + $0x38] sm:$0x3]  ;;  %v2261_v58 = vrot.slane %v2259_v47, 4 }
 0x158   : > { %2150 = vmatmul.bf16.gmra.mxu0 %v2006_v63  ;;  %v5069_v63 = vld [vmem:[%s5852_s13 + $0x34] sm:$0xf]  ;;  %v2007_v43 = vpack.c.b16 %v1991_v20, %v1990_v52  ;;  %v3464_v44 = vrot.slane %v5181_v32, 6 }
 0x159   : > { %v1335_v55 = vpop.f32.mrf.mxu2  ;;  %v1231_v3 = vpack.c.b16 %v1215_v5, %v1214_v39  ;;  %v3035_v0 = vrot.slane %v5069_v63, 5 }
 0x15a   : > { %v1397_v6 = vadd.f32 %v1335_v55, %v939_v13  ;;  %v1653_v24 = vpop.f32.mrf.mxu3  ;;  %v4828_v13 = vld [vmem:[%s5852_s13 + $0x18] sm:$0xc]  ;;  %v5068_v55 = vld [vmem:[%s5852_s13 + $0x30] sm:$0xe] }
 0x15b   : > { %v940_v29 = vpop.f32.mrf.mxu1  ;;  %v5116_v39 = vrot.slane %v5068_v55, 9  ;;  %v3037_v5 = vrot.slane %v3035_v0, 4 }
 0x15c   : > { %v1715_v35 = vadd.f32 %v1653_v24, %v1397_v6  ;;  %v941_v23 = vadd.f32 %v940_v29, %v6326_v1  ;;  %v5070_v6 = vld [vmem:[%s5852_s13 + $0x38] sm:$0x1]  ;;  %v3461_v24 = vrot.slane %v5069_v63, 6  ;;  %v5180_v29 = vld [vmem:[%s5852_s13 + $0x30] sm:$0xc] }
 0x15d   : > { %v2113_v45 = vpop.f32.mrf.mxu0  ;;  %v3038_v52 = vrot.slane %v5070_v6, 5 }
 0x15e   : > { %v6565_v42 = vadd.f32 %v2111_v28, %v1715_v35  ;;  %v5336_v28 = vld [vmem:[%s5852_s13 + $0xcc] sm:$0xff]  ;;  %v4860_v35 = vrot.slane %v4828_v13, 10 }
 0x160   : > { %7120 = vst [vmem:[#allocation10_spill] sm:$0xff] %v6565_v42 }
 0x161   : > { %v1337_v38 = vpop.f32.mrf.mxu2 }
 0x162   : > { %v1398_v30 = vadd.f32 %v1337_v38, %v941_v23  ;;  %v1655_v2 = vpop.f32.mrf.mxu3  ;;  %v5212_v23 = vrot.slane %v5180_v29, 10  ;;  %v3463_v38 = vrot.slane %v3461_v24, 4 }
 0x163   : > { %v943_v10 = vpop.f32.mrf.mxu1 }
 0x164   : > { %v1716_v51 = vadd.f32 %v1655_v2, %v1398_v30  ;;  %v944_v20 = vadd.f32 %v943_v10, %v6351_v27  ;;  %v3039_v10 = vsel %vm5883_vm2, %v3037_v5, %v3038_v52  ;;  %v3465_v13 = vsel %vm6128_vm5, %v3463_v38, %v3464_v44  ;;  %v5361_v52 = vld [vmem:[%s5852_s13 + $0x30] sm:$0xff]  ;;  %v4830_v44 = vld [vmem:[%s5852_s13 + $0x24] sm:$0xc] }
 0x165   : > { %v2116_v1 = vpop.f32.mrf.mxu0  ;;  %v3589_v29 = vunpack.c.l.b16 %v3465_v13 }
 0x166   : > { %982 = vmatmul.bf16.gmra.mxu1 %v5296_v18  ;;  %1379 = vmatmul.bf16.gmra.mxu2 %v1231_v3  ;;  %v6578_v36 = vadd.f32 %v2113_v45, %v1716_v51  ;;  %v2260_v18 = vsel %vm6128_vm5, %v4860_v35, %v2259_v47  ;;  %v2263_v45 = vsel %vm6128_vm5, %v2261_v58, %v2262_v14  ;;  %v5072_v58 = vld [vmem:[%s5852_s13 + $0x40] sm:$0xf] }
 0x167   : > { %1697 = vmatmul.bf16.gmra.mxu3 %v5336_v28  ;;  %v3036_v3 = vsel %vm5883_vm2, %v5116_v39, %v3035_v0  ;;  %v2386_v47 = vunpack.c.l.b16 %v2260_v18  ;;  %v2387_v61 = vunpack.c.l.b16 %v2263_v45  ;;  %v3163_v0 = vunpack.c.l.b16 %v3039_v10  ;;  %v5073_v18 = vld [vmem:[%s5852_s13 + $0x44] sm:$0x1] }
 0x168   : > { %2155 = vmatmul.bf16.gmra.mxu0 %v2007_v43  ;;  %v3462_v43 = vsel %vm6128_vm5, %v5212_v23, %v3461_v24  ;;  %v3162_v55 = vunpack.c.l.b16 %v3036_v3  ;;  %v5597_v24 = vld [vmem:[%s5852_s13 + $0x28] sm:$0xf]  ;;  %v3468_v45 = vrot.slane %v5072_v58, 6  ;;  %v5182_v3 = vld [vmem:[%s5852_s13 + $0x3c] sm:$0xc]  ;;  %v4861_v10 = vrot.slane %v4830_v44, 10 }
 0x169   : > { %v1340_v63 = vpop.f32.mrf.mxu2  ;;  %v3588_v6 = vunpack.c.l.b16 %v3462_v43  ;;  %v2266_v14 = vrot.slane %v5597_v24, 6 }
 0x16a   : > { %v1399_v30 = vadd.f32 %v1340_v63, %v944_v20  ;;  %v1658_v2 = vpop.f32.mrf.mxu3  ;;  %v3194_v23 = vpack.c.b16 %v3163_v0, %v3162_v55  ;;  %v4831_v63 = vld [vmem:[%s5852_s13 + $0x2c] sm:$0x3]  ;;  %v3045_v0 = vrot.slane %v5073_v18, 5 }
 0x16b   : > { %v945_v42 = vpop.f32.mrf.mxu1  ;;  %v3620_v38 = vpack.c.b16 %v3589_v29, %v3588_v6  ;;  %v2268_v43 = vrot.slane %v2266_v14, 4  ;;  %v5213_v29 = vrot.slane %v5182_v3, 10 }
 0x16c   : > { %v1717_v28 = vadd.f32 %v1658_v2, %v1399_v30  ;;  %v946_v32 = vadd.f32 %v945_v42, %v6364_v50  ;;  %v3042_v30 = vrot.slane %v5072_v58, 5  ;;  %v5071_v42 = vld [vmem:[%s5852_s13 + $0x3c] sm:$0xe] }
 0x16d   : > { %v2118_v27 = vpop.f32.mrf.mxu0 }
 0x16e   : > { %v6593_v51 = vadd.f32 %v2116_v1, %v1717_v28  ;;  %v2418_v1 = vpack.c.b16 %v2387_v61, %v2386_v47  ;;  %v5183_v28 = vld [vmem:[%s5852_s13 + $0x44] sm:$0x3]  ;;  %v2269_v47 = vrot.slane %v4831_v63, 6  ;;  %v5117_v61 = vrot.slane %v5071_v42, 9 }
 0x16f   : > { %v3044_v55 = vrot.slane %v3042_v30, 4 }
 0x171   : > { %v1342_v35 = vpop.f32.mrf.mxu2 }
 0x172   : > { %v1400_v39 = vadd.f32 %v1342_v35, %v946_v32  ;;  %v1660_v5 = vpop.f32.mrf.mxu3  ;;  %v3470_v32 = vrot.slane %v3468_v45, 4  ;;  %v3471_v35 = vrot.slane %v5183_v28, 6 }
 0x173   : > { %v948_v20 = vpop.f32.mrf.mxu1 }
 0x174   : > { %v1718_v2 = vadd.f32 %v1660_v5, %v1400_v39  ;;  %v949_v6 = vadd.f32 %v948_v20, %v6246_v40  ;;  %v3046_v20 = vsel %vm5883_vm2, %v3044_v55, %v3045_v0  ;;  %v3472_v44 = vsel %vm6128_vm5, %v3470_v32, %v3471_v35  ;;  %v5362_v0 = vld [vmem:[%s5852_s13 + $0x3c] sm:$0xff]  ;;  %v4832_v35 = vld [vmem:[%s5852_s13 + $0x30] sm:$0xc] }
 0x175   : > { %v2121_v50 = vpop.f32.mrf.mxu0  ;;  %v3591_v3 = vunpack.c.l.b16 %v3472_v44 }
 0x176   : > { %2506 = vmatmul.bf16.vlgmr.msra.gmra.mxu1 %v2418_v1  ;;  %2824 = vmatmul.bf16.vlgmr.msra.gmra.mxu2 %v5361_v52  ;;  %v6605_v13 = vadd.f32 %v2118_v27, %v1718_v2  ;;  %v2267_v1 = vsel %vm6128_vm5, %v4861_v10, %v2266_v14  ;;  %v2270_v27 = vsel %vm6128_vm5, %v2268_v43, %v2269_v47  ;;  %v5075_v10 = vld [vmem:[%s5852_s13 + $0x4c] sm:$0xf] }
 0x177   : > { %3282 = vmatmul.bf16.vlgmr.msra.gmra.mxu3 %v3194_v23  ;;  %v3043_v52 = vsel %vm5883_vm2, %v5117_v61, %v3042_v30  ;;  %v2388_v14 = vunpack.c.l.b16 %v2267_v1  ;;  %v2389_v63 = vunpack.c.l.b16 %v2270_v27  ;;  %v3165_v30 = vunpack.c.l.b16 %v3046_v20  ;;  %v5076_v1 = vld [vmem:[%s5852_s13 + $0x50] sm:$0x1] }
 0x178   : > { %3708 = vmatmul.bf16.vlgmr.msra.gmra.mxu0 %v3620_v38  ;;  %v3469_v38 = vsel %vm6128_vm5, %v5213_v29, %v3468_v45  ;;  %v3164_v42 = vunpack.c.l.b16 %v3043_v52  ;;  %v5598_v45 = vld [vmem:[%s5852_s13 + $0x34] sm:$0xf]  ;;  %v3475_v27 = vrot.slane %v5075_v10, 6  ;;  %v5184_v52 = vld [vmem:[%s5852_s13 + $0x48] sm:$0xc]  ;;  %v4862_v20 = vrot.slane %v4832_v35, 10 }
 0x179   : > { %v1345_v58 = vpop.f32.mrf.mxu2  ;;  %v3590_v18 = vunpack.c.l.b16 %v3469_v38  ;;  %v2273_v47 = vrot.slane %v5598_v45, 6 }
 0x17a   : > { %v1401_v24 = vadd.f32 %v1345_v58, %v949_v6  ;;  %v1663_v39 = vpop.f32.mrf.mxu3  ;;  %v3195_v29 = vpack.c.b16 %v3165_v30, %v3164_v42  ;;  %v4833_v58 = vld [vmem:[%s5852_s13 + $0x38] sm:$0x3]  ;;  %v3052_v30 = vrot.slane %v5076_v1, 5 }
 0x17b   : > { %v950_v5 = vpop.f32.mrf.mxu1  ;;  %v3621_v32 = vpack.c.b16 %v3591_v3, %v3590_v18  ;;  %v2275_v38 = vrot.slane %v2273_v47, 4  ;;  %v5214_v3 = vrot.slane %v5184_v52, 10 }
 0x17c   : > { %v1719_v23 = vadd.f32 %v1663_v39, %v1401_v24  ;;  %v951_v28 = vadd.f32 %v950_v5, %v6268_v54  ;;  %v3049_v24 = vrot.slane %v5075_v10, 5  ;;  %v5074_v5 = vld [vmem:[%s5852_s13 + $0x48] sm:$0xe] }
 0x17d   : > { %v2123_v40 = vpop.f32.mrf.mxu0 }
 0x17e   : > { %v6620_v2 = vadd.f32 %v2121_v50, %v1719_v23  ;;  %v2419_v50 = vpack.c.b16 %v2389_v63, %v2388_v14  ;;  %v5185_v23 = vld [vmem:[%s5852_s13 + $0x50] sm:$0x3]  ;;  %v2276_v14 = vrot.slane %v4833_v58, 6  ;;  %v5118_v63 = vrot.slane %v5074_v5, 9 }
 0x17f   : > { %v3051_v42 = vrot.slane %v3049_v24, 4 }
 0x181   : > { %v1347_v43 = vpop.f32.mrf.mxu2 }
 0x182   : > { %v1402_v61 = vadd.f32 %v1347_v43, %v951_v28  ;;  %v1665_v55 = vpop.f32.mrf.mxu3  ;;  %v3477_v28 = vrot.slane %v3475_v27, 4  ;;  %v3478_v43 = vrot.slane %v5185_v23, 6 }
 0x183   : > { %v953_v6 = vpop.f32.mrf.mxu1 }
 0x184   : > { %v1720_v39 = vadd.f32 %v1665_v55, %v1402_v61  ;;  %v954_v18 = vadd.f32 %v953_v6, %v6284_v56  ;;  %v3053_v6 = vsel %vm5883_vm2, %v3051_v42, %v3052_v30  ;;  %v3479_v35 = vsel %vm6128_vm5, %v3477_v28, %v3478_v43  ;;  %v5363_v30 = vld [vmem:[%s5852_s13 + $0x48] sm:$0xff]  ;;  %v4834_v43 = vld [vmem:[%s5852_s13 + $0x3c] sm:$0xc] }
 0x185   : > { %v2126_v54 = vpop.f32.mrf.mxu0  ;;  %v3593_v52 = vunpack.c.l.b16 %v3479_v35 }
 0x186   : > { %2511 = vmatmul.bf16.gmra.mxu1 %v2419_v50  ;;  %2829 = vmatmul.bf16.gmra.mxu2 %v5362_v0  ;;  %v6632_v44 = vadd.f32 %v2123_v40, %v1720_v39  ;;  %v2274_v50 = vsel %vm6128_vm5, %v4862_v20, %v2273_v47  ;;  %v2277_v40 = vsel %vm6128_vm5, %v2275_v38, %v2276_v14  ;;  %v5078_v20 = vld [vmem:[%s5852_s13 + $0x58] sm:$0xf] }
 0x187   : > { %3287 = vmatmul.bf16.gmra.mxu3 %v3195_v29  ;;  %v3050_v0 = vsel %vm5883_vm2, %v5118_v63, %v3049_v24  ;;  %v2390_v47 = vunpack.c.l.b16 %v2274_v50  ;;  %v2391_v58 = vunpack.c.l.b16 %v2277_v40  ;;  %v3167_v24 = vunpack.c.l.b16 %v3053_v6  ;;  %v5079_v50 = vld [vmem:[%s5852_s13 + $0x5c] sm:$0x1] }
 0x188   : > { %3713 = vmatmul.bf16.gmra.mxu0 %v3621_v32  ;;  %v3476_v32 = vsel %vm6128_vm5, %v5214_v3, %v3475_v27  ;;  %v3166_v5 = vunpack.c.l.b16 %v3050_v0  ;;  %v5599_v27 = vld [vmem:[%s5852_s13 + $0x40] sm:$0xf]  ;;  %v3482_v40 = vrot.slane %v5078_v20, 6  ;;  %v5186_v0 = vld [vmem:[%s5852_s13 + $0x54] sm:$0xc]  ;;  %v4863_v6 = vrot.slane %v4834_v43, 10 }
 0x189   : > { %v1350_v10 = vpop.f32.mrf.mxu2  ;;  %v3592_v1 = vunpack.c.l.b16 %v3476_v32  ;;  %v2280_v14 = vrot.slane %v5599_v27, 6 }
 0x18a   : > { %v1403_v45 = vadd.f32 %v1350_v10, %v954_v18  ;;  %v1668_v61 = vpop.f32.mrf.mxu3  ;;  %v3196_v3 = vpack.c.b16 %v3167_v24, %v3166_v5  ;;  %v4835_v10 = vld [vmem:[%s5852_s13 + $0x44] sm:$0x3]  ;;  %v3059_v24 = vrot.slane %v5079_v50, 5 }
 0x18b   : > { %v955_v55 = vpop.f32.mrf.mxu1  ;;  %v3622_v28 = vpack.c.b16 %v3593_v52, %v3592_v1  ;;  %v2282_v32 = vrot.slane %v2280_v14, 4  ;;  %v5215_v52 = vrot.slane %v5186_v0, 10 }
 0x18c   : > { %v1721_v29 = vadd.f32 %v1668_v61, %v1403_v45  ;;  %v956_v23 = vadd.f32 %v955_v55, %v6300_v31  ;;  %v3056_v45 = vrot.slane %v5078_v20, 5  ;;  %v5077_v55 = vld [vmem:[%s5852_s13 + $0x54] sm:$0xe] }
 0x18d   : > { %v2128_v56 = vpop.f32.mrf.mxu0 }
 0x18e   : > { %v6647_v39 = vadd.f32 %v2126_v54, %v1721_v29  ;;  %v2420_v54 = vpack.c.b16 %v2391_v58, %v2390_v47  ;;  %v5187_v29 = vld [vmem:[%s5852_s13 + $0x5c] sm:$0x3]  ;;  %v2283_v47 = vrot.slane %v4835_v10, 6  ;;  %v5119_v58 = vrot.slane %v5077_v55, 9 }
 0x18f   : > { %v3058_v5 = vrot.slane %v3056_v45, 4 }
 0x191   : > { %v1352_v38 = vpop.f32.mrf.mxu2 }
 0x192   : > { %v1404_v63 = vadd.f32 %v1352_v38, %v956_v23  ;;  %v1670_v42 = vpop.f32.mrf.mxu3  ;;  %v3484_v23 = vrot.slane %v3482_v40, 4  ;;  %v3485_v38 = vrot.slane %v5187_v29, 6 }
 0x193   : > { %v958_v18 = vpop.f32.mrf.mxu1 }
 0x194   : > { %v1722_v61 = vadd.f32 %v1670_v42, %v1404_v63  ;;  %v959_v1 = vadd.f32 %v958_v18, %v6322_v59  ;;  %v3060_v18 = vsel %vm5883_vm2, %v3058_v5, %v3059_v24  ;;  %v3486_v43 = vsel %vm6128_vm5, %v3484_v23, %v3485_v38  ;;  %v5364_v24 = vld [vmem:[%s5852_s13 + $0x54] sm:$0xff]  ;;  %v4836_v38 = vld [vmem:[%s5852_s13 + $0x48] sm:$0xc] }
 0x195   : > { %v2131_v31 = vpop.f32.mrf.mxu0  ;;  %v3595_v0 = vunpack.c.l.b16 %v3486_v43 }
 0x196   : > { %2516 = vmatmul.bf16.gmra.mxu1 %v2420_v54  ;;  %2834 = vmatmul.bf16.gmra.mxu2 %v5363_v30  ;;  %v6659_v35 = vadd.f32 %v2128_v56, %v1722_v61  ;;  %v2281_v54 = vsel %vm6128_vm5, %v4863_v6, %v2280_v14  ;;  %v2284_v56 = vsel %vm6128_vm5, %v2282_v32, %v2283_v47  ;;  %v5081_v6 = vld [vmem:[%s5852_s13 + $0x64] sm:$0xf] }
 0x197   : > { %3292 = vmatmul.bf16.gmra.mxu3 %v3196_v3  ;;  %v3057_v30 = vsel %vm5883_vm2, %v5119_v58, %v3056_v45  ;;  %v2392_v14 = vunpack.c.l.b16 %v2281_v54  ;;  %v2393_v10 = vunpack.c.l.b16 %v2284_v56  ;;  %v3169_v45 = vunpack.c.l.b16 %v3060_v18  ;;  %v5082_v54 = vld [vmem:[%s5852_s13 + $0x68] sm:$0x1] }
 0x198   : > { %3718 = vmatmul.bf16.gmra.mxu0 %v3622_v28  ;;  %v3483_v28 = vsel %vm6128_vm5, %v5215_v52, %v3482_v40  ;;  %v3168_v55 = vunpack.c.l.b16 %v3057_v30  ;;  %v5600_v40 = vld [vmem:[%s5852_s13 + $0x4c] sm:$0xf]  ;;  %v3489_v56 = vrot.slane %v5081_v6, 6  ;;  %v5188_v30 = vld [vmem:[%s5852_s13 + $0x60] sm:$0xc]  ;;  %v4864_v18 = vrot.slane %v4836_v38, 10 }
 0x199   : > { %v1355_v20 = vpop.f32.mrf.mxu2  ;;  %v3594_v50 = vunpack.c.l.b16 %v3483_v28  ;;  %v2287_v47 = vrot.slane %v5600_v40, 6 }
 0x19a   : > { %v1405_v27 = vadd.f32 %v1355_v20, %v959_v1  ;;  %v1673_v63 = vpop.f32.mrf.mxu3  ;;  %v3197_v52 = vpack.c.b16 %v3169_v45, %v3168_v55  ;;  %v4837_v20 = vld [vmem:[%s5852_s13 + $0x50] sm:$0x3]  ;;  %v3066_v45 = vrot.slane %v5082_v54, 5 }
 0x19b   : > { %v960_v42 = vpop.f32.mrf.mxu1  ;;  %v3623_v23 = vpack.c.b16 %v3595_v0, %v3594_v50  ;;  %v2289_v28 = vrot.slane %v2287_v47, 4  ;;  %v5216_v0 = vrot.slane %v5188_v30, 10 }
 0x19c   : > { %v1723_v3 = vadd.f32 %v1673_v63, %v1405_v27  ;;  %v961_v29 = vadd.f32 %v960_v42, %v6344_v16  ;;  %v3063_v27 = vrot.slane %v5081_v6, 5  ;;  %v5080_v42 = vld [vmem:[%s5852_s13 + $0x60] sm:$0xe] }
 0x19d   : > { %v2133_v59 = vpop.f32.mrf.mxu0 }
 0x19e   : > { %v6674_v61 = vadd.f32 %v2131_v31, %v1723_v3  ;;  %v2421_v31 = vpack.c.b16 %v2393_v10, %v2392_v14  ;;  %v5189_v3 = vld [vmem:[%s5852_s13 + $0x68] sm:$0x3]  ;;  %v2290_v14 = vrot.slane %v4837_v20, 6  ;;  %v5120_v10 = vrot.slane %v5080_v42, 9 }
 0x19f   : > { %v3065_v55 = vrot.slane %v3063_v27, 4 }
 0x1a1   : > { %v1357_v32 = vpop.f32.mrf.mxu2 }
 0x1a2   : > { %v1406_v58 = vadd.f32 %v1357_v32, %v961_v29  ;;  %v1675_v5 = vpop.f32.mrf.mxu3  ;;  %v3491_v29 = vrot.slane %v3489_v56, 4  ;;  %v3492_v32 = vrot.slane %v5189_v3, 6 }
 0x1a3   : > { %v963_v1 = vpop.f32.mrf.mxu1 }
 0x1a4   : > { %v1724_v63 = vadd.f32 %v1675_v5, %v1406_v58  ;;  %v964_v50 = vadd.f32 %v963_v1, %v6360_v48  ;;  %v3067_v1 = vsel %vm5883_vm2, %v3065_v55, %v3066_v45  ;;  %v3493_v38 = vsel %vm6128_vm5, %v3491_v29, %v3492_v32  ;;  %v5365_v45 = vld [vmem:[%s5852_s13 + $0x60] sm:$0xff]  ;;  %v4838_v32 = vld [vmem:[%s5852_s13 + $0x54] sm:$0xc] }
 0x1a5   : > { %v2136_v16 = vpop.f32.mrf.mxu0  ;;  %v3597_v30 = vunpack.c.l.b16 %v3493_v38 }
 0x1a6   : > { %2521 = vmatmul.bf16.gmra.mxu1 %v2421_v31  ;;  %2839 = vmatmul.bf16.gmra.mxu2 %v5364_v24  ;;  %v6686_v43 = vadd.f32 %v2133_v59, %v1724_v63  ;;  %v2288_v31 = vsel %vm6128_vm5, %v4864_v18, %v2287_v47  ;;  %v2291_v59 = vsel %vm6128_vm5, %v2289_v28, %v2290_v14  ;;  %v5084_v18 = vld [vmem:[%s5852_s13 + $0x70] sm:$0xf] }
 0x1a7   : > { %3297 = vmatmul.bf16.gmra.mxu3 %v3197_v52  ;;  %v3064_v24 = vsel %vm5883_vm2, %v5120_v10, %v3063_v27  ;;  %v2394_v47 = vunpack.c.l.b16 %v2288_v31  ;;  %v2395_v20 = vunpack.c.l.b16 %v2291_v59  ;;  %v3171_v27 = vunpack.c.l.b16 %v3067_v1  ;;  %v5085_v31 = vld [vmem:[%s5852_s13 + $0x74] sm:$0x1] }
 0x1a8   : > { %3723 = vmatmul.bf16.gmra.mxu0 %v3623_v23  ;;  %v3490_v23 = vsel %vm6128_vm5, %v5216_v0, %v3489_v56  ;;  %v3170_v42 = vunpack.c.l.b16 %v3064_v24  ;;  %v5601_v56 = vld [vmem:[%s5852_s13 + $0x58] sm:$0xf]  ;;  %v3496_v59 = vrot.slane %v5084_v18, 6  ;;  %v5190_v24 = vld [vmem:[%s5852_s13 + $0x6c] sm:$0xc]  ;;  %v4865_v1 = vrot.slane %v4838_v32, 10 }
 0x1a9   : > { %v1360_v6 = vpop.f32.mrf.mxu2  ;;  %v3596_v54 = vunpack.c.l.b16 %v3490_v23  ;;  %v2294_v14 = vrot.slane %v5601_v56, 6 }
 0x1aa   : > { %v1407_v40 = vadd.f32 %v1360_v6, %v964_v50  ;;  %v1678_v58 = vpop.f32.mrf.mxu3  ;;  %v3198_v0 = vpack.c.b16 %v3171_v27, %v3170_v42  ;;  %v4839_v6 = vld [vmem:[%s5852_s13 + $0x5c] sm:$0x3]  ;;  %v3073_v27 = vrot.slane %v5085_v31, 5 }
 0x1ab   : > { %v965_v5 = vpop.f32.mrf.mxu1  ;;  %v3624_v29 = vpack.c.b16 %v3597_v30, %v3596_v54  ;;  %v2296_v23 = vrot.slane %v2294_v14, 4  ;;  %v5217_v30 = vrot.slane %v5190_v24, 10 }
 0x1ac   : > { %v1725_v52 = vadd.f32 %v1678_v58, %v1407_v40  ;;  %v966_v3 = vadd.f32 %v965_v5, %v6376_v12  ;;  %v3070_v40 = vrot.slane %v5084_v18, 5  ;;  %v5083_v5 = vld [vmem:[%s5852_s13 + $0x6c] sm:$0xe] }
 0x1ad   : > { %v2138_v48 = vpop.f32.mrf.mxu0 }
 0x1ae   : > { %v6701_v63 = vadd.f32 %v2136_v16, %v1725_v52  ;;  %v2422_v16 = vpack.c.b16 %v2395_v20, %v2394_v47  ;;  %v5191_v52 = vld [vmem:[%s5852_s13 + $0x74] sm:$0x3]  ;;  %v2297_v47 = vrot.slane %v4839_v6, 6  ;;  %v5121_v20 = vrot.slane %v5083_v5, 9 }
 0x1af   : > { %v3072_v42 = vrot.slane %v3070_v40, 4 }
 0x1b1   : > { %v1362_v28 = vpop.f32.mrf.mxu2 }
 0x1b2   : > { %v1408_v10 = vadd.f32 %v1362_v28, %v966_v3  ;;  %v1680_v55 = vpop.f32.mrf.mxu3  ;;  %v3498_v3 = vrot.slane %v3496_v59, 4  ;;  %v3499_v28 = vrot.slane %v5191_v52, 6 }
 0x1b3   : > { %v968_v50 = vpop.f32.mrf.mxu1 }
 0x1b4   : > { %v1726_v58 = vadd.f32 %v1680_v55, %v1408_v10  ;;  %v969_v54 = vadd.f32 %v968_v50, %v6248_v41  ;;  %v3074_v50 = vsel %vm5883_vm2, %v3072_v42, %v3073_v27  ;;  %v3500_v32 = vsel %vm6128_vm5, %v3498_v3, %v3499_v28  ;;  %v5366_v27 = vld [vmem:[%s5852_s13 + $0x6c] sm:$0xff]  ;;  %v4840_v28 = vld [vmem:[%s5852_s13 + $0x60] sm:$0xc] }
 0x1b5   : > { %v2141_v12 = vpop.f32.mrf.mxu0  ;;  %v3599_v24 = vunpack.c.l.b16 %v3500_v32 }
 0x1b6   : > { %2526 = vmatmul.bf16.gmra.mxu1 %v2422_v16  ;;  %2844 = vmatmul.bf16.gmra.mxu2 %v5365_v45  ;;  %v6713_v38 = vadd.f32 %v2138_v48, %v1726_v58  ;;  %v2295_v16 = vsel %vm6128_vm5, %v4865_v1, %v2294_v14  ;;  %v2298_v48 = vsel %vm6128_vm5, %v2296_v23, %v2297_v47  ;;  %v5087_v1 = vld [vmem:[%s5852_s13 + $0x7c] sm:$0xf] }
 0x1b7   : > { %3302 = vmatmul.bf16.gmra.mxu3 %v3198_v0  ;;  %v3071_v45 = vsel %vm5883_vm2, %v5121_v20, %v3070_v40  ;;  %v2396_v14 = vunpack.c.l.b16 %v2295_v16  ;;  %v2397_v6 = vunpack.c.l.b16 %v2298_v48  ;;  %v3173_v40 = vunpack.c.l.b16 %v3074_v50  ;;  %v5088_v16 = vld [vmem:[%s5852_s13 + $0x80] sm:$0x1] }
 0x1b8   : > { %3728 = vmatmul.bf16.gmra.mxu0 %v3624_v29  ;;  %v3497_v29 = vsel %vm6128_vm5, %v5217_v30, %v3496_v59  ;;  %v3172_v5 = vunpack.c.l.b16 %v3071_v45  ;;  %v5602_v59 = vld [vmem:[%s5852_s13 + $0x64] sm:$0xf]  ;;  %v3503_v48 = vrot.slane %v5087_v1, 6  ;;  %v5192_v45 = vld [vmem:[%s5852_s13 + $0x78] sm:$0xc]  ;;  %v4866_v50 = vrot.slane %v4840_v28, 10 }
 0x1b9   : > { %v1365_v18 = vpop.f32.mrf.mxu2  ;;  %v3598_v31 = vunpack.c.l.b16 %v3497_v29  ;;  %v2301_v47 = vrot.slane %v5602_v59, 6 }
 0x1ba   : > { %v1409_v56 = vadd.f32 %v1365_v18, %v969_v54  ;;  %v1683_v10 = vpop.f32.mrf.mxu3  ;;  %v3199_v30 = vpack.c.b16 %v3173_v40, %v3172_v5  ;;  %v4841_v18 = vld [vmem:[%s5852_s13 + $0x68] sm:$0x3]  ;;  %v3080_v40 = vrot.slane %v5088_v16, 5 }
 0x1bb   : > { %v970_v55 = vpop.f32.mrf.mxu1  ;;  %v3625_v3 = vpack.c.b16 %v3599_v24, %v3598_v31  ;;  %v2303_v29 = vrot.slane %v2301_v47, 4  ;;  %v5218_v24 = vrot.slane %v5192_v45, 10 }
 0x1bc   : > { %v1727_v0 = vadd.f32 %v1683_v10, %v1409_v56  ;;  %v971_v52 = vadd.f32 %v970_v55, %v6271_v57  ;;  %v3077_v56 = vrot.slane %v5087_v1, 5  ;;  %v5086_v55 = vld [vmem:[%s5852_s13 + $0x78] sm:$0xe] }
 0x1bd   : > { %v2143_v41 = vpop.f32.mrf.mxu0 }
 0x1be   : > { %v6728_v58 = vadd.f32 %v2141_v12, %v1727_v0  ;;  %v2423_v12 = vpack.c.b16 %v2397_v6, %v2396_v14  ;;  %v5193_v0 = vld [vmem:[%s5852_s13 + $0x80] sm:$0x3]  ;;  %v2304_v14 = vrot.slane %v4841_v18, 6  ;;  %v5122_v6 = vrot.slane %v5086_v55, 9 }
 0x1bf   : > { %v3079_v5 = vrot.slane %v3077_v56, 4 }
 0x1c1   : > { %v1367_v23 = vpop.f32.mrf.mxu2 }
 0x1c2   : > { %v1410_v20 = vadd.f32 %v1367_v23, %v971_v52  ;;  %v1685_v42 = vpop.f32.mrf.mxu3  ;;  %v3505_v52 = vrot.slane %v3503_v48, 4  ;;  %v3506_v23 = vrot.slane %v5193_v0, 6 }
 0x1c3   : > { %v973_v54 = vpop.f32.mrf.mxu1 }
 0x1c4   : > { %v1728_v10 = vadd.f32 %v1685_v42, %v1410_v20  ;;  %v974_v31 = vadd.f32 %v973_v54, %v6286_v17  ;;  %v3081_v54 = vsel %vm5883_vm2, %v3079_v5, %v3080_v40  ;;  %v3507_v28 = vsel %vm6128_vm5, %v3505_v52, %v3506_v23  ;;  %v5367_v40 = vld [vmem:[%s5852_s13 + $0x78] sm:$0xff]  ;;  %v4842_v23 = vld [vmem:[%s5852_s13 + $0x6c] sm:$0xc] }
 0x1c5   : > { %v2146_v57 = vpop.f32.mrf.mxu0  ;;  %v3601_v45 = vunpack.c.l.b16 %v3507_v28 }
 0x1c6   : > { %2531 = vmatmul.bf16.gmra.mxu1 %v2423_v12  ;;  %2849 = vmatmul.bf16.gmra.mxu2 %v5366_v27  ;;  %v6740_v32 = vadd.f32 %v2143_v41, %v1728_v10  ;;  %v2302_v12 = vsel %vm6128_vm5, %v4866_v50, %v2301_v47  ;;  %v2305_v41 = vsel %vm6128_vm5, %v2303_v29, %v2304_v14  ;;  %v5090_v50 = vld [vmem:[%s5852_s13 + $0x88] sm:$0xf] }
 0x1c7   : > { %3307 = vmatmul.bf16.gmra.mxu3 %v3199_v30  ;;  %v3078_v27 = vsel %vm5883_vm2, %v5122_v6, %v3077_v56  ;;  %v2398_v47 = vunpack.c.l.b16 %v2302_v12  ;;  %v2399_v18 = vunpack.c.l.b16 %v2305_v41  ;;  %v3175_v56 = vunpack.c.l.b16 %v3081_v54  ;;  %v5091_v12 = vld [vmem:[%s5852_s13 + $0x8c] sm:$0x1] }
 0x1c8   : > { %3733 = vmatmul.bf16.gmra.mxu0 %v3625_v3  ;;  %v3504_v3 = vsel %vm6128_vm5, %v5218_v24, %v3503_v48  ;;  %v3174_v55 = vunpack.c.l.b16 %v3078_v27  ;;  %v5603_v48 = vld [vmem:[%s5852_s13 + $0x70] sm:$0xf]  ;;  %v3510_v41 = vrot.slane %v5090_v50, 6  ;;  %v5194_v27 = vld [vmem:[%s5852_s13 + $0x84] sm:$0xc]  ;;  %v4867_v54 = vrot.slane %v4842_v23, 10 }
 0x1c9   : > { %v1370_v1 = vpop.f32.mrf.mxu2  ;;  %v3600_v16 = vunpack.c.l.b16 %v3504_v3  ;;  %v2308_v14 = vrot.slane %v5603_v48, 6 }
 0x1ca   : > { %v1411_v59 = vadd.f32 %v1370_v1, %v974_v31  ;;  %v1688_v20 = vpop.f32.mrf.mxu3  ;;  %v3200_v24 = vpack.c.b16 %v3175_v56, %v3174_v55  ;;  %v4843_v1 = vld [vmem:[%s5852_s13 + $0x74] sm:$0x3]  ;;  %v3087_v56 = vrot.slane %v5091_v12, 5 }
 0x1cb   : > { %v975_v42 = vpop.f32.mrf.mxu1  ;;  %v3626_v52 = vpack.c.b16 %v3601_v45, %v3600_v16  ;;  %v2310_v3 = vrot.slane %v2308_v14, 4  ;;  %v5219_v45 = vrot.slane %v5194_v27, 10 }
 0x1cc   : > { %v1729_v30 = vadd.f32 %v1688_v20, %v1411_v59  ;;  %v976_v0 = vadd.f32 %v975_v42, %v6303_v33  ;;  %v3084_v59 = vrot.slane %v5090_v50, 5  ;;  %v5089_v42 = vld [vmem:[%s5852_s13 + $0x84] sm:$0xe] }
 0x1cd   : > { %v2148_v17 = vpop.f32.mrf.mxu0 }
 0x1ce   : > { %v6755_v10 = vadd.f32 %v2146_v57, %v1729_v30  ;;  %v2424_v57 = vpack.c.b16 %v2399_v18, %v2398_v47  ;;  %v5195_v30 = vld [vmem:[%s5852_s13 + $0x8c] sm:$0x3]  ;;  %v2311_v47 = vrot.slane %v4843_v1, 6  ;;  %v5123_v18 = vrot.slane %v5089_v42, 9 }
 0x1cf   : > { %v3086_v55 = vrot.slane %v3084_v59, 4 }
 0x1d1   : > { %v1372_v29 = vpop.f32.mrf.mxu2 }
 0x1d2   : > { %v1412_v6 = vadd.f32 %v1372_v29, %v976_v0  ;;  %v1690_v5 = vpop.f32.mrf.mxu3  ;;  %v3512_v0 = vrot.slane %v3510_v41, 4  ;;  %v3513_v29 = vrot.slane %v5195_v30, 6 }
 0x1d3   : > { %v978_v31 = vpop.f32.mrf.mxu1 }
 0x1d4   : > { %v1730_v20 = vadd.f32 %v1690_v5, %v1412_v6  ;;  %v979_v16 = vadd.f32 %v978_v31, %v6324_v60  ;;  %v3088_v60 = vsel %vm5883_vm2, %v3086_v55, %v3087_v56  ;;  %v3511_v31 = vsel %vm6128_vm5, %v5219_v45, %v3510_v41  ;;  %v5368_v55 = vld [vmem:[%s5852_s13 + $0x84] sm:$0xff] }
 0x1d5   : > { %v2151_v33 = vpop.f32.mrf.mxu0  ;;  %v3602_v12 = vunpack.c.l.b16 %v3511_v31 }
 0x1d6   : > { %2536 = vmatmul.bf16.gmra.mxu1 %v2424_v57  ;;  %2854 = vmatmul.bf16.gmra.mxu2 %v5367_v40  ;;  %v6767_v28 = vadd.f32 %v2148_v17, %v1730_v20  ;;  %v2309_v57 = vsel %vm6128_vm5, %v4867_v54, %v2308_v14  ;;  %v2312_v17 = vsel %vm6128_vm5, %v2310_v3, %v2311_v47  ;;  %v5093_v54 = vld [vmem:[%s5852_s13 + $0x94] sm:$0xf] }
 0x1d7   : > { %3312 = vmatmul.bf16.gmra.mxu3 %v3200_v24  ;;  %v3085_v40 = vsel %vm5883_vm2, %v5123_v18, %v3084_v59  ;;  %v3514_v14 = vsel %vm6128_vm5, %v3512_v0, %v3513_v29  ;;  %v2400_v23 = vunpack.c.l.b16 %v2309_v57  ;;  %v2401_v1 = vunpack.c.l.b16 %v2312_v17  ;;  %v4844_v29 = vld [vmem:[%s5852_s13 + $0x78] sm:$0xc]  ;;  %v5094_v57 = vld [vmem:[%s5852_s13 + $0x98] sm:$0x1] }
 0x1d8   : > { %3738 = vmatmul.bf16.gmra.mxu0 %v3626_v52  ;;  %v3176_v42 = vunpack.c.l.b16 %v3085_v40  ;;  %v3177_v59 = vunpack.c.l.b16 %v3088_v60  ;;  %v3603_v27 = vunpack.c.l.b16 %v3514_v14  ;;  %v3517_v17 = vrot.slane %v5093_v54, 6  ;;  %v5196_v40 = vld [vmem:[%s5852_s13 + $0x90] sm:$0xc] }
 0x1d9   : > { %v1375_v50 = vpop.f32.mrf.mxu2  ;;  %v2425_v18 = vpack.c.b16 %v2401_v1, %v2400_v23  ;;  %v4868_v60 = vrot.slane %v4844_v29, 10 }
 0x1da   : > { %v1413_v48 = vadd.f32 %v1375_v50, %v979_v16  ;;  %v1693_v6 = vpop.f32.mrf.mxu3  ;;  %v3201_v45 = vpack.c.b16 %v3177_v59, %v3176_v42  ;;  %v3627_v0 = vpack.c.b16 %v3603_v27, %v3602_v12  ;;  %v4845_v50 = vld [vmem:[%s5852_s13 + $0x80] sm:$0x3]  ;;  %v3094_v59 = vrot.slane %v5094_v57, 5 }
 0x1db   : > { %v980_v5 = vpop.f32.mrf.mxu1  ;;  %v2318_v23 = vrot.slane %v4845_v50, 6  ;;  %v5220_v27 = vrot.slane %v5196_v40, 10 }
 0x1dc   : > { %v1731_v24 = vadd.f32 %v1693_v6, %v1413_v48  ;;  %v981_v30 = vadd.f32 %v980_v5, %v6347_v19  ;;  %v3091_v48 = vrot.slane %v5093_v54, 5  ;;  %v5092_v5 = vld [vmem:[%s5852_s13 + $0x90] sm:$0xe] }
 0x1dd   : > { %v2153_v52 = vpop.f32.mrf.mxu0  ;;  %v5124_v1 = vrot.slane %v5092_v5, 9 }
 0x1de   : > { %v6782_v20 = vadd.f32 %v2151_v33, %v1731_v24  ;;  %v5604_v33 = vld [vmem:[%s5852_s13 + $0x7c] sm:$0xf]  ;;  %v5197_v24 = vld [vmem:[%s5852_s13 + $0x98] sm:$0x3]  ;;  %v3093_v42 = vrot.slane %v3091_v48, 4 }
 0x1df   : > { %v2315_v56 = vrot.slane %v5604_v33, 6  ;;  %v3092_v33 = vsel %vm5883_vm2, %v5124_v1, %v3091_v48 }
 0x1e0   : > { %v3178_v5 = vunpack.c.l.b16 %v3092_v33  ;;  %v5198_v33 = vld [vmem:[%s5852_s13 + $0x9c] sm:$0xc] }
 0x1e1   : > { %v1377_v3 = vpop.f32.mrf.mxu2  ;;  %v2317_v31 = vrot.slane %v2315_v56, 4 }
 0x1e2   : > { %v1414_v41 = vadd.f32 %v1377_v3, %v981_v30  ;;  %v1695_v47 = vpop.f32.mrf.mxu3  ;;  %v3519_v30 = vrot.slane %v3517_v17, 4  ;;  %v3520_v3 = vrot.slane %v5197_v24, 6 }
 0x1e3   : > { %v983_v16 = vpop.f32.mrf.mxu1 }
 0x1e4   : > { %v1732_v6 = vadd.f32 %v1695_v47, %v1414_v41  ;;  %v984_v12 = vadd.f32 %v983_v16, %v6362_v49  ;;  %v3095_v49 = vsel %vm5883_vm2, %v3093_v42, %v3094_v59  ;;  %v3518_v16 = vsel %vm6128_vm5, %v5220_v27, %v3517_v17  ;;  %v5369_v42 = vld [vmem:[%s5852_s13 + $0x90] sm:$0xff]  ;;  %v4846_v27 = vld [vmem:[%s5852_s13 + $0x84] sm:$0xc] }
 0x1e5   : > { %v2156_v19 = vpop.f32.mrf.mxu0  ;;  %v3521_v29 = vsel %vm6128_vm5, %v3519_v30, %v3520_v3  ;;  %v3179_v48 = vunpack.c.l.b16 %v3095_v49  ;;  %v3604_v57 = vunpack.c.l.b16 %v3518_v16  ;;  %v5605_v30 = vld [vmem:[%s5852_s13 + $0x88] sm:$0xf]  ;;  %v4869_v49 = vrot.slane %v4846_v27, 10 }
 0x1e6   : > { %2541 = vmatmul.bf16.gmra.mxu1 %v2425_v18  ;;  %2859 = vmatmul.bf16.gmra.mxu2 %v5368_v55  ;;  %v6794_v14 = vadd.f32 %v2153_v52, %v1732_v6  ;;  %v2316_v55 = vsel %vm6128_vm5, %v4868_v60, %v2315_v56  ;;  %v2319_v52 = vsel %vm6128_vm5, %v2317_v31, %v2318_v23  ;;  %v3605_v40 = vunpack.c.l.b16 %v3521_v29  ;;  %v5096_v60 = vld [vmem:[%s5852_s13 + $0xa0] sm:$0xf] }
 0x1e7   : > { %3317 = vmatmul.bf16.gmra.mxu3 %v3201_v45  ;;  %v2402_v56 = vunpack.c.l.b16 %v2316_v55  ;;  %v2403_v50 = vunpack.c.l.b16 %v2319_v52  ;;  %v3202_v59 = vpack.c.b16 %v3179_v48, %v3178_v5  ;;  %v2322_v3 = vrot.slane %v5605_v30, 6  ;;  %v5097_v52 = vld [vmem:[%s5852_s13 + $0xa4] sm:$0x1] }
 0x1e8   : > { %3743 = vmatmul.bf16.gmra.mxu0 %v3627_v0  ;;  %v3524_v55 = vrot.slane %v5096_v60, 6  ;;  %v3101_v48 = vrot.slane %v5097_v52, 5 }
 0x1e9   : > { %v1380_v54 = vpop.f32.mrf.mxu2  ;;  %v2426_v1 = vpack.c.b16 %v2403_v50, %v2402_v56  ;;  %v2324_v29 = vrot.slane %v2322_v3, 4 }
 0x1ea   : > { %v1415_v41 = vadd.f32 %v1380_v54, %v984_v12  ;;  %v1698_v47 = vpop.f32.mrf.mxu3  ;;  %v3628_v12 = vpack.c.b16 %v3605_v40, %v3604_v57  ;;  %v3098_v54 = vrot.slane %v5096_v60, 5  ;;  %v5221_v57 = vrot.slane %v5198_v33, 10  ;;  %v5099_v33 = vld [vmem:[%s5852_s13 + $0xac] sm:$0xf] }
 0x1eb   : > { %v985_v18 = vpop.f32.mrf.mxu1  ;;  %v3526_v40 = vrot.slane %v3524_v55, 4 }
 0x1ec   : > { %v1733_v45 = vadd.f32 %v1698_v47, %v1415_v41  ;;  %v986_v24 = vadd.f32 %v985_v18, %v6379_v4  ;;  %v4847_v47 = vld [vmem:[%s5852_s13 + $0x8c] sm:$0x3]  ;;  %v5095_v18 = vld [vmem:[%s5852_s13 + $0x9c] sm:$0xe]  ;;  %v3100_v5 = vrot.slane %v3098_v54, 4 }
 0x1ed   : > { %v2158_v0 = vpop.f32.mrf.mxu0  ;;  %v2325_v56 = vrot.slane %v4847_v47, 6  ;;  %v5125_v50 = vrot.slane %v5095_v18, 9 }
 0x1ee   : > { %v6809_v6 = vadd.f32 %v2156_v19, %v1733_v45  ;;  %v5199_v45 = vld [vmem:[%s5852_s13 + $0xa4] sm:$0x3] }
 0x1f1   : > { %v1382_v31 = vpop.f32.mrf.mxu2 }
 0x1f2   : > { %v1416_v17 = vadd.f32 %v1382_v31, %v986_v24  ;;  %v1700_v23 = vpop.f32.mrf.mxu3  ;;  %v3527_v24 = vrot.slane %v5199_v45, 6 }
 0x1f3   : > { %v2507_v19 = vpop.f32.mrf.mxu1 }
 0x1f4   : > { %v1734_v41 = vadd.f32 %v1700_v23, %v1416_v17  ;;  %v2587_v60 = vadd.f32 %v2507_v19, %v6410_v25  ;;  %v3102_v25 = vsel %vm5883_vm2, %v3100_v5, %v3101_v48  ;;  %v3525_v19 = vsel %vm6128_vm5, %v5221_v57, %v3524_v55  ;;  %v5606_v55 = vld [vmem:[%s5852_s13 + $0x94] sm:$0xf]  ;;  %v5370_v48 = vld [vmem:[%s5852_s13 + $0x9c] sm:$0xff]  ;;  %v4848_v57 = vld [vmem:[%s5852_s13 + $0x90] sm:$0xc] }
 0x1f5   : > { %v3709_v4 = vpop.f32.mrf.mxu0  ;;  %v3528_v27 = vsel %vm6128_vm5, %v3526_v40, %v3527_v24  ;;  %v3181_v18 = vunpack.c.l.b16 %v3102_v25  ;;  %v4849_v40 = vld [vmem:[%s5852_s13 + $0x98] sm:$0x3]  ;;  %v3105_v24 = vrot.slane %v5099_v33, 5  ;;  %v5200_v25 = vld [vmem:[%s5852_s13 + $0xa8] sm:$0xc] }
 0x1f6   : > { %2546 = vmatmul.bf16.gmra.mxu1 %v2426_v1  ;;  %2864 = vmatmul.bf16.gmra.mxu2 %v5369_v42  ;;  %v6821_v16 = vadd.f32 %v2158_v0, %v1734_v41  ;;  %v2323_v0 = vsel %vm6128_vm5, %v4869_v49, %v2322_v3  ;;  %v2326_v42 = vsel %vm6128_vm5, %v2324_v29, %v2325_v56  ;;  %v3607_v52 = vunpack.c.l.b16 %v3528_v27 }
 0x1f7   : > { %3322 = vmatmul.bf16.gmra.mxu3 %v3202_v59  ;;  %v3099_v59 = vsel %vm5883_vm2, %v5125_v50, %v3098_v54  ;;  %v2404_v30 = vunpack.c.l.b16 %v2323_v0  ;;  %v2405_v3 = vunpack.c.l.b16 %v2326_v42  ;;  %v3606_v54 = vunpack.c.l.b16 %v3525_v19  ;;  %v5201_v19 = vld [vmem:[%s5852_s13 + $0xb0] sm:$0x3] }
 0x1f8   : > { %7121 = vst [vmem:[#allocation11_spill] sm:$0xff] %v6821_v16  ;;  %3748 = vmatmul.bf16.gmra.mxu0 %v3628_v12  ;;  %v3180_v41 = vunpack.c.l.b16 %v3099_v59  ;;  %v2329_v29 = vrot.slane %v5606_v55, 6  ;;  %v3531_v0 = vrot.slane %v5099_v33, 6  ;;  %v4870_v27 = vrot.slane %v4848_v57, 10 }
 0x1f9   : > { %v2825_v31 = vpop.f32.mrf.mxu2  ;;  %v2427_v5 = vpack.c.b16 %v2405_v3, %v2404_v30  ;;  %v2332_v30 = vrot.slane %v4849_v40, 6  ;;  %v3107_v55 = vrot.slane %v3105_v24, 4 }
 0x1fa   : > { %v3283_v17 = vpop.f32.mrf.mxu3  ;;  %v2905_v23 = vadd.f32 %v2825_v31, %v2587_v60 }
 0x1fb   : > { %v2509_v1 = vpop.f32.mrf.mxu1 }
 0x1fc   : > { %v3363_v47 = vadd.f32 %v3283_v17, %v2905_v23  ;;  %v2588_v45 = vadd.f32 %v2509_v1, %v6421_v11  ;;  %v3203_v11 = vpack.c.b16 %v3181_v18, %v3180_v41  ;;  %v3629_v17 = vpack.c.b16 %v3607_v52, %v3606_v54  ;;  %v5098_v23 = vld [vmem:[%s5852_s13 + $0xa8] sm:$0xe]  ;;  %v5100_v1 = vld [vmem:[%s5852_s13 + $0xb0] sm:$0x1] }
 0x1fd   : > { %v3711_v12 = vpop.f32.mrf.mxu0  ;;  %v5222_v41 = vrot.slane %v5200_v25, 10  ;;  %v3533_v18 = vrot.slane %v3531_v0, 4  ;;  %v3534_v54 = vrot.slane %v5201_v19, 6 }
 0x1fe   : > { %v3789_v60 = vadd.f32 %v3709_v4, %v3363_v47  ;;  %v3108_v4 = vrot.slane %v5100_v1, 5 }
 0x1ff   : > { %v3535_v1 = vsel %vm6128_vm5, %v3533_v18, %v3534_v54 }
 0x200   : > { %v4054_v47 = vmul.f32 %v3789_v60, %v3789_v60 }
 0x201   : > { %v2827_v49 = vpop.f32.mrf.mxu2 }
 0x202   : > { %v2906_v56 = vadd.f32 %v2827_v49, %v2588_v45  ;;  %v3285_v50 = vpop.f32.mrf.mxu3  ;;  %v2331_v45 = vrot.slane %v2329_v29, 4  ;;  %v5126_v49 = vrot.slane %v5098_v23, 9  ;;  %v3532_v23 = vsel %vm6128_vm5, %v5222_v41, %v3531_v0 }
 0x203   : > { %v2512_v31 = vpop.f32.mrf.mxu1 }
 0x204   : > { %v3364_v42 = vadd.f32 %v3285_v50, %v2906_v56  ;;  %v2589_v50 = vadd.f32 %v2512_v31, %v6432_v46 }
 0x205   : > { %v3714_v59 = vpop.f32.mrf.mxu0 }
 0x206   : > { %v3790_v3 = vadd.f32 %v3711_v12, %v3364_v42  ;;  %2551 = vmatmul.bf16.gmra.mxu1 %v2427_v5  ;;  %2869 = vmatmul.bf16.gmra.mxu2 %v5370_v48  ;;  %v2330_v48 = vsel %vm6128_vm5, %v4870_v27, %v2329_v29 }
 0x207   : > { %3327 = vmatmul.bf16.gmra.mxu3 %v3203_v11  ;;  %v2333_v11 = vsel %vm6128_vm5, %v2331_v45, %v2332_v30  ;;  %v2406_v29 = vunpack.c.l.b16 %v2330_v48  ;;  %v3609_v45 = vunpack.c.l.b16 %v3535_v1  ;;  %v5102_v30 = vld [vmem:[%s5852_s13 + $0xb8] sm:$0xf]  ;;  %v5101_v48 = vld [vmem:[%s5852_s13 + $0xb4] sm:$0xe] }
 0x208   : > { %3753 = vmatmul.bf16.gmra.mxu0 %v3629_v17  ;;  %v5405_v52 = vpack.c.bf16 %v3790_v3, %v3789_v60  ;;  %v4016_v33 = vadd.f32 %v3790_v3, %v3789_v60  ;;  %v4055_v56 = vmul.f32 %v3790_v3, %v3790_v3  ;;  %v3106_v60 = vsel %vm5883_vm2, %v5126_v49, %v3105_v24 }
 0x209   : > { %v2830_v57 = vpop.f32.mrf.mxu2  ;;  %v3109_v17 = vsel %vm5883_vm2, %v3107_v55, %v3108_v4  ;;  %v2407_v25 = vunpack.c.l.b16 %v2333_v11  ;;  %v3182_v19 = vunpack.c.l.b16 %v3106_v60  ;;  %v3608_v24 = vunpack.c.l.b16 %v3532_v23  ;;  %v5607_v4 = vld [vmem:[%s5852_s13 + $0xa0] sm:$0xf]  ;;  %v5103_v60 = vld [vmem:[%s5852_s13 + $0xbc] sm:$0x1] }
 0x20a   : > { %v4086_v16 = vadd.f32 %v4055_v56, %v4054_v47  ;;  %v2907_v40 = vadd.f32 %v2830_v57, %v2589_v50  ;;  %v3288_v12 = vpop.f32.mrf.mxu3  ;;  %5406 = vst [vmem:[%s6851_s10] sm:$0xff] %v5405_v52   ;;  %v3183_v27 = vunpack.c.l.b16 %v3109_v17  ;;  %v2336_v47 = vrot.slane %v5607_v4, 6  ;;  %v5371_v52 = vld [vmem:[%s5852_s13 + $0xa8] sm:$0xff]  ;;  %v4850_v56 = vld [vmem:[%s5852_s13 + $0x9c] sm:$0xc]  ;;  %v5203_v17 = vld [vmem:[%s5852_s13 + $0xbc] sm:$0x3] }
 0x20b   : > { %v2514_v5 = vpop.f32.mrf.mxu1  ;;  %v2428_v54 = vpack.c.b16 %v2407_v25, %v2406_v29  ;;  %v3112_v50 = vrot.slane %v5102_v30, 5  ;;  %v3538_v11 = vrot.slane %v5102_v30, 6  ;;  %v5127_v25 = vrot.slane %v5101_v48, 9 }
 0x20c   : > { %v3365_v46 = vadd.f32 %v3288_v12, %v2907_v40  ;;  %v2590_v55 = vadd.f32 %v2514_v5, %v6443_v34  ;;  %v3630_v40 = vpack.c.b16 %v3609_v45, %v3608_v24  ;;  %v4851_v12 = vld [vmem:[%s5852_s13 + $0xa4] sm:$0x3]  ;;  %v2338_v23 = vrot.slane %v2336_v47, 4 }
 0x20d   : > { %v3716_v31 = vpop.f32.mrf.mxu0  ;;  %v2339_v29 = vrot.slane %v4851_v12, 6  ;;  %v3540_v24 = vrot.slane %v3538_v11, 4  ;;  %v3541_v45 = vrot.slane %v5203_v17, 6  ;;  %v5105_v17 = vld [vmem:[%s5852_s13 + $0xc4] sm:$0xf] }
 0x20e   : > { %v3791_v42 = vadd.f32 %v3714_v59, %v3365_v46  ;;  %v5202_v46 = vld [vmem:[%s5852_s13 + $0xb4] sm:$0xc] }
 0x210   : > { %v4017_v3 = vadd.f32 %v4016_v33, %v3791_v42  ;;  %v4056_v49 = vmul.f32 %v3791_v42, %v3791_v42  ;;  %v3204_v33 = vpack.c.b16 %v3183_v27, %v3182_v19  ;;  %v3115_v19 = vrot.slane %v5103_v60, 5 }
 0x211   : > { %v2832_v0 = vpop.f32.mrf.mxu2  ;;  %v5223_v27 = vrot.slane %v5202_v46, 10 }
 0x212   : > { %v4087_v59 = vadd.f32 %v4086_v16, %v4056_v49  ;;  %v2908_v41 = vadd.f32 %v2832_v0, %v2590_v55  ;;  %v3290_v18 = vpop.f32.mrf.mxu3  ;;  %v4871_v16 = vrot.slane %v4850_v56, 10  ;;  %v3114_v49 = vrot.slane %v3112_v50, 4 }
 0x213   : > { %v2517_v57 = vpop.f32.mrf.mxu1 }
 0x214   : > { %v3366_v34 = vadd.f32 %v3290_v18, %v2908_v41  ;;  %v2591_v4 = vadd.f32 %v2517_v57, %v6466_v15  ;;  %v2337_v56 = vsel %vm6128_vm5, %v4871_v16, %v2336_v47  ;;  %v3116_v15 = vsel %vm5883_vm2, %v3114_v49, %v3115_v19 }
 0x215   : > { %v3719_v5 = vpop.f32.mrf.mxu0  ;;  %v3542_v57 = vsel %vm6128_vm5, %v3540_v24, %v3541_v45  ;;  %v2408_v47 = vunpack.c.l.b16 %v2337_v56  ;;  %v3185_v60 = vunpack.c.l.b16 %v3116_v15  ;;  %v5372_v24 = vld [vmem:[%s5852_s13 + $0xb4] sm:$0xff]  ;;  %v4852_v45 = vld [vmem:[%s5852_s13 + $0xa8] sm:$0xc]  ;;  %v5106_v56 = vld [vmem:[%s5852_s13 + $0xc8] sm:$0x1] }
 0x216   : > { %v3792_v1 = vadd.f32 %v3716_v31, %v3366_v34  ;;  %2556 = vmatmul.bf16.gmra.mxu1 %v2428_v54  ;;  %2874 = vmatmul.bf16.gmra.mxu2 %v5371_v52  ;;  %v3611_v46 = vunpack.c.l.b16 %v3542_v57 }
 0x217   : > { %3332 = vmatmul.bf16.gmra.mxu3 %v3204_v33  ;;  %v2340_v33 = vsel %vm6128_vm5, %v2338_v23, %v2339_v29  ;;  %v5608_v29 = vld [vmem:[%s5852_s13 + $0xac] sm:$0xf] }
 0x218   : > { %3758 = vmatmul.bf16.gmra.mxu0 %v3630_v40  ;;  %v5410_v30 = vpack.c.bf16 %v3792_v1, %v3791_v42  ;;  %v4018_v55 = vadd.f32 %v4017_v3, %v3792_v1  ;;  %v4057_v0 = vmul.f32 %v3792_v1, %v3792_v1  ;;  %v3113_v42 = vsel %vm5883_vm2, %v5127_v25, %v3112_v50 }
 0x219   : > { %v2835_v41 = vpop.f32.mrf.mxu2  ;;  %v2409_v48 = vunpack.c.l.b16 %v2340_v33  ;;  %v3184_v34 = vunpack.c.l.b16 %v3113_v42  ;;  %v2343_v25 = vrot.slane %v5608_v29, 6  ;;  %v5204_v33 = vld [vmem:[%s5852_s13 + $0xc0] sm:$0xc]  ;;  %v5205_v42 = vld [vmem:[%s5852_s13 + $0xc8] sm:$0x3] }
 0x21a   : > { %v4088_v18 = vadd.f32 %v4087_v59, %v4057_v0  ;;  %v2909_v31 = vadd.f32 %v2835_v41, %v2591_v4  ;;  %v3293_v54 = vpop.f32.mrf.mxu3  ;;  %5482 = vst [vmem:[%s6851_s10 + $0x8] sm:$0xff] %v5410_v30   ;;  %v3539_v59 = vsel %vm6128_vm5, %v5223_v27, %v3538_v11  ;;  %v3119_v30 = vrot.slane %v5105_v17, 5  ;;  %v4853_v41 = vld [vmem:[%s5852_s13 + $0xb0] sm:$0x3] }
 0x21b   : > { %v2519_v52 = vpop.f32.mrf.mxu1  ;;  %v3610_v50 = vunpack.c.l.b16 %v3539_v59  ;;  %v2429_v27 = vpack.c.b16 %v2409_v48, %v2408_v47  ;;  %v2346_v59 = vrot.slane %v4853_v41, 6  ;;  %v3122_v48 = vrot.slane %v5106_v56, 5  ;;  %v5108_v56 = vld [vmem:[%s5852_s13 + $0xd0] sm:$0xf] }
 0x21c   : > { %v3367_v3 = vadd.f32 %v3293_v54, %v2909_v31  ;;  %v2592_v1 = vadd.f32 %v2519_v52, %v6477_v62  ;;  %v5104_v31 = vld [vmem:[%s5852_s13 + $0xc0] sm:$0xe]  ;;  %v3545_v54 = vrot.slane %v5105_v17, 6  ;;  %v3121_v47 = vrot.slane %v3119_v30, 4 }
 0x21d   : > { %v3721_v40 = vpop.f32.mrf.mxu0  ;;  %v3631_v4 = vpack.c.b16 %v3611_v46, %v3610_v50  ;;  %v5128_v57 = vrot.slane %v5104_v31, 9  ;;  %v3548_v50 = vrot.slane %v5205_v42, 6 }
 0x21e   : > { %v3793_v12 = vadd.f32 %v3719_v5, %v3367_v3  ;;  %v2345_v3 = vrot.slane %v2343_v25, 4 }
 0x220   : > { %v4019_v16 = vadd.f32 %v4018_v55, %v3793_v12  ;;  %v4058_v23 = vmul.f32 %v3793_v12, %v3793_v12  ;;  %v3205_v55 = vpack.c.b16 %v3185_v60, %v3184_v34  ;;  %v5224_v34 = vrot.slane %v5204_v33, 10 }
 0x221   : > { %v2837_v11 = vpop.f32.mrf.mxu2  ;;  %v3547_v60 = vrot.slane %v3545_v54, 4 }
 0x222   : > { %v4089_v5 = vadd.f32 %v4088_v18, %v4058_v23  ;;  %v2910_v49 = vadd.f32 %v2837_v11, %v2592_v1  ;;  %v3295_v19 = vpop.f32.mrf.mxu3  ;;  %v4872_v18 = vrot.slane %v4852_v45, 10 }
 0x223   : > { %v2522_v0 = vpop.f32.mrf.mxu1 }
 0x224   : > { %v3368_v62 = vadd.f32 %v3295_v19, %v2910_v49  ;;  %v2593_v1 = vadd.f32 %v2522_v0, %v6488_v37  ;;  %v3123_v37 = vsel %vm5883_vm2, %v3121_v47, %v3122_v48  ;;  %v3549_v0 = vsel %vm6128_vm5, %v3547_v60, %v3548_v50  ;;  %v5373_v48 = vld [vmem:[%s5852_s13 + $0xc0] sm:$0xff] }
 0x225   : > { %v3724_v52 = vpop.f32.mrf.mxu0  ;;  %v3187_v31 = vunpack.c.l.b16 %v3123_v37  ;;  %v3126_v60 = vrot.slane %v5108_v56, 5 }
 0x226   : > { %v3794_v15 = vadd.f32 %v3721_v40, %v3368_v62  ;;  %2561 = vmatmul.bf16.gmra.mxu1 %v2429_v27  ;;  %2879 = vmatmul.bf16.gmra.mxu2 %v5372_v24  ;;  %v2344_v27 = vsel %vm6128_vm5, %v4872_v18, %v2343_v25  ;;  %v2347_v24 = vsel %vm6128_vm5, %v2345_v3, %v2346_v59  ;;  %v3613_v62 = vunpack.c.l.b16 %v3549_v0  ;;  %v5609_v3 = vld [vmem:[%s5852_s13 + $0xb8] sm:$0xf] }
 0x227   : > { %3337 = vmatmul.bf16.gmra.mxu3 %v3205_v55  ;;  %v2410_v25 = vunpack.c.l.b16 %v2344_v27  ;;  %v5207_v27 = vld [vmem:[%s5852_s13 + $0xd4] sm:$0x3] }
 0x228   : > { %3763 = vmatmul.bf16.gmra.mxu0 %v3631_v4  ;;  %v5415_v46 = vpack.c.bf16 %v3794_v15, %v3793_v12  ;;  %v4020_v17 = vadd.f32 %v4019_v16, %v3794_v15  ;;  %v4059_v23 = vmul.f32 %v3794_v15, %v3794_v15  ;;  %v3120_v12 = vsel %vm5883_vm2, %v5128_v57, %v3119_v30 }
 0x229   : > { %v2840_v11 = vpop.f32.mrf.mxu2  ;;  %v2411_v4 = vunpack.c.l.b16 %v2347_v24  ;;  %v3186_v41 = vunpack.c.l.b16 %v3120_v12  ;;  %v2350_v15 = vrot.slane %v5609_v3, 6 }
 0x22a   : > { %v4090_v29 = vadd.f32 %v4089_v5, %v4059_v23  ;;  %v2911_v40 = vadd.f32 %v2840_v11, %v2593_v1  ;;  %v3298_v49 = vpop.f32.mrf.mxu3  ;;  %5483 = vst [vmem:[%s6851_s10 + $0x10] sm:$0xff] %v5415_v46   ;;  %v3546_v5 = vsel %vm6128_vm5, %v5224_v34, %v3545_v54  ;;  %v4854_v34 = vld [vmem:[%s5852_s13 + $0xb4] sm:$0xc]  ;;  %v4855_v23 = vld [vmem:[%s5852_s13 + $0xbc] sm:$0x3]  ;;  %v3552_v11 = vrot.slane %v5108_v56, 6 }
 0x22b   : > { %v2524_v19 = vpop.f32.mrf.mxu1  ;;  %v3612_v30 = vunpack.c.l.b16 %v3546_v5  ;;  %v2430_v47 = vpack.c.b16 %v2411_v4, %v2410_v25  ;;  %v3206_v46 = vpack.c.b16 %v3187_v31, %v3186_v41  ;;  %v5107_v1 = vld [vmem:[%s5852_s13 + $0xcc] sm:$0xe]  ;;  %v2352_v24 = vrot.slane %v2350_v15, 4 }
 0x22c   : > { %v3369_v16 = vadd.f32 %v3298_v49, %v2911_v40  ;;  %v2594_v18 = vadd.f32 %v2524_v19, %v6498_v8  ;;  %v5109_v49 = vld [vmem:[%s5852_s13 + $0xd4] sm:$0x1]  ;;  %v5206_v19 = vld [vmem:[%s5852_s13 + $0xcc] sm:$0xc]  ;;  %v5129_v37 = vrot.slane %v5107_v1, 9  ;;  %v3128_v5 = vrot.slane %v3126_v60, 4 }
 0x22d   : > { %v3726_v45 = vpop.f32.mrf.mxu0  ;;  %v3129_v0 = vrot.slane %v5109_v49, 5  ;;  %v5225_v25 = vrot.slane %v5206_v19, 10  ;;  %v3554_v4 = vrot.slane %v3552_v11, 4  ;;  %v3555_v41 = vrot.slane %v5207_v27, 6  ;;  %v5111_v1 = vld [vmem:[%s5852_s13 + $0xdc] sm:$0xf] }
 0x22e   : > { %v3795_v55 = vadd.f32 %v3724_v52, %v3369_v16  ;;  %v2353_v16 = vrot.slane %v4855_v23, 6  ;;  %v5610_v27 = vld [vmem:[%s5852_s13 + $0xc4] sm:$0xf] }
 0x230   : > { %v4021_v33 = vadd.f32 %v4020_v17, %v3795_v55  ;;  %v4060_v42 = vmul.f32 %v3795_v55, %v3795_v55  ;;  %v3632_v17 = vpack.c.b16 %v3613_v62, %v3612_v30 }
 0x231   : > { %v2842_v54 = vpop.f32.mrf.mxu2 }
 0x232   : > { %v4091_v52 = vadd.f32 %v4090_v29, %v4060_v42  ;;  %v2912_v59 = vadd.f32 %v2842_v54, %v2594_v18  ;;  %v3300_v57 = vpop.f32.mrf.mxu3  ;;  %v4873_v29 = vrot.slane %v4854_v34, 10 }
 0x233   : > { %v2527_v50 = vpop.f32.mrf.mxu1 }
 0x234   : > { %v3370_v8 = vadd.f32 %v3300_v57, %v2912_v59  ;;  %v2595_v56 = vadd.f32 %v2527_v50, %v6521_v21  ;;  %v2351_v59 = vsel %vm6128_vm5, %v4873_v29, %v2350_v15  ;;  %v2354_v57 = vsel %vm6128_vm5, %v2352_v24, %v2353_v16 }
 0x235   : > { %v3729_v40 = vpop.f32.mrf.mxu0  ;;  %v3130_v21 = vsel %vm5883_vm2, %v3128_v5, %v3129_v0  ;;  %v2412_v15 = vunpack.c.l.b16 %v2351_v59  ;;  %v2413_v50 = vunpack.c.l.b16 %v2354_v57  ;;  %v2357_v29 = vrot.slane %v5610_v27, 6  ;;  %v4856_v5 = vld [vmem:[%s5852_s13 + $0xc0] sm:$0xc] }
 0x236   : > { %v3796_v12 = vadd.f32 %v3726_v45, %v3370_v8  ;;  %2566 = vmatmul.bf16.gmra.mxu1 %v2430_v47  ;;  %2884 = vmatmul.bf16.gmra.mxu2 %v5373_v48  ;;  %v3556_v48 = vsel %vm6128_vm5, %v3554_v4, %v3555_v41  ;;  %v3133_v0 = vrot.slane %v5111_v1, 5 }
 0x237   : > { %3342 = vmatmul.bf16.gmra.mxu3 %v3206_v46  ;;  %v3615_v23 = vunpack.c.l.b16 %v3556_v48  ;;  %v2431_v16 = vpack.c.b16 %v2413_v50, %v2412_v15 }
 0x238   : > { %3768 = vmatmul.bf16.gmra.mxu0 %v3632_v17  ;;  %v5420_v31 = vpack.c.bf16 %v3796_v12, %v3795_v55  ;;  %v4022_v30 = vadd.f32 %v4021_v33, %v3796_v12  ;;  %v4061_v62 = vmul.f32 %v3796_v12, %v3796_v12  ;;  %v3127_v55 = vsel %vm5883_vm2, %v5129_v37, %v3126_v60  ;;  %v5374_v37 = vld [vmem:[%s5852_s13 + $0xcc] sm:$0xff] }
 0x239   : > { %v2845_v42 = vpop.f32.mrf.mxu2  ;;  %v3188_v46 = vunpack.c.l.b16 %v3127_v55  ;;  %v3189_v17 = vunpack.c.l.b16 %v3130_v21 }
 0x23a   : > { %v4092_v18 = vadd.f32 %v4091_v52, %v4061_v62  ;;  %v2913_v45 = vadd.f32 %v2845_v42, %v2595_v56  ;;  %v3303_v54 = vpop.f32.mrf.mxu3  ;;  %5484 = vst [vmem:[%s6851_s10 + $0x18] sm:$0xff] %v5420_v31   ;;  %v3553_v52 = vsel %vm6128_vm5, %v5225_v25, %v3552_v11  ;;  %v4857_v31 = vld [vmem:[%s5852_s13 + $0xc8] sm:$0x3]  ;;  %v3559_v62 = vrot.slane %v5111_v1, 6  ;;  %v5112_v42 = vld [vmem:[%s5852_s13 + $0xe0] sm:$0x1] }
 0x23b   : > { %v2529_v3 = vpop.f32.mrf.mxu1  ;;  %v3614_v60 = vunpack.c.l.b16 %v3553_v52  ;;  %v3207_v4 = vpack.c.b16 %v3189_v17, %v3188_v46  ;;  %v2360_v57 = vrot.slane %v4857_v31, 6  ;;  %v3136_v21 = vrot.slane %v5112_v42, 5  ;;  %v5611_v42 = vld [vmem:[%s5852_s13 + $0xd0] sm:$0xf] }
 0x23c   : > { %v3371_v33 = vadd.f32 %v3303_v54, %v2913_v45  ;;  %v2596_v19 = vadd.f32 %v2529_v3, %v6532_v53  ;;  %v5208_v45 = vld [vmem:[%s5852_s13 + $0xd8] sm:$0xc]  ;;  %v5209_v54 = vld [vmem:[%s5852_s13 + $0xe0] sm:$0x3]  ;;  %v2359_v3 = vrot.slane %v2357_v29, 4  ;;  %v3561_v48 = vrot.slane %v3559_v62, 4 }
 0x23d   : > { %v3731_v47 = vpop.f32.mrf.mxu0  ;;  %v3633_v41 = vpack.c.b16 %v3615_v23, %v3614_v60  ;;  %v5226_v52 = vrot.slane %v5208_v45, 10  ;;  %v3562_v15 = vrot.slane %v5209_v54, 6  ;;  %v2364_v45 = vrot.slane %v5611_v42, 6 }
 0x23e   : > { %v3797_v34 = vadd.f32 %v3729_v40, %v3371_v33  ;;  %v3135_v33 = vrot.slane %v3133_v0, 4  ;;  %v2361_v27 = vsel %vm6128_vm5, %v2359_v3, %v2360_v57  ;;  %v4858_v57 = vld [vmem:[%s5852_s13 + $0xcc] sm:$0xc] }
 0x240   : > { %v4023_v8 = vadd.f32 %v4022_v30, %v3797_v34  ;;  %v4062_v49 = vmul.f32 %v3797_v34, %v3797_v34  ;;  %v5110_v30 = vld [vmem:[%s5852_s13 + $0xd8] sm:$0xe] }
 0x241   : > { %v2847_v11 = vpop.f32.mrf.mxu2  ;;  %v5130_v55 = vrot.slane %v5110_v30, 9 }
 0x242   : > { %v4093_v40 = vadd.f32 %v4092_v18, %v4062_v49  ;;  %v2914_v24 = vadd.f32 %v2847_v11, %v2596_v19  ;;  %v3305_v12 = vpop.f32.mrf.mxu3  ;;  %v4874_v18 = vrot.slane %v4856_v5, 10 }
 0x243   : > { %v2532_v25 = vpop.f32.mrf.mxu1 }
 0x244   : > { %v3372_v53 = vadd.f32 %v3305_v12, %v2914_v24  ;;  %v2597_v60 = vadd.f32 %v2532_v25, %v6543_v22  ;;  %v2358_v11 = vsel %vm6128_vm5, %v4874_v18, %v2357_v29  ;;  %v3137_v22 = vsel %vm5883_vm2, %v3135_v33, %v3136_v21 }
 0x245   : > { %v3734_v56 = vpop.f32.mrf.mxu0  ;;  %v3563_v12 = vsel %vm6128_vm5, %v3561_v48, %v3562_v15  ;;  %v2414_v29 = vunpack.c.l.b16 %v2358_v11  ;;  %v3191_v25 = vunpack.c.l.b16 %v3137_v22  ;;  %v4859_v48 = vld [vmem:[%s5852_s13 + $0xd4] sm:$0x3]  ;;  %v5113_v15 = vld [vmem:[%s5852_s13 + $0xe4] sm:$0xe] }
 0x246   : > { %v3798_v59 = vadd.f32 %v3731_v47, %v3372_v53  ;;  %2571 = vmatmul.bf16.gmra.mxu1 %v2431_v16  ;;  %2889 = vmatmul.bf16.gmra.mxu2 %v5374_v37  ;;  %v2415_v37 = vunpack.c.l.b16 %v2361_v27  ;;  %v5131_v11 = vrot.slane %v5113_v15, 9 }
 0x247   : > { %3347 = vmatmul.bf16.gmra.mxu3 %v3207_v4  ;;  %v3617_v4 = vunpack.c.l.b16 %v3563_v12 }
 0x248   : > { %3773 = vmatmul.bf16.gmra.mxu0 %v3633_v41  ;;  %v5425_v50 = vpack.c.bf16 %v3798_v59, %v3797_v34  ;;  %v4024_v46 = vadd.f32 %v4023_v8, %v3798_v59  ;;  %v4063_v17 = vmul.f32 %v3798_v59, %v3798_v59  ;;  %v3134_v34 = vsel %vm5883_vm2, %v5130_v55, %v3133_v0  ;;  %v5114_v41 = vld [vmem:[%s5852_s13 + $0xe8] sm:$0xf]  ;;  %v5375_v59 = vld [vmem:[%s5852_s13 + $0xd8] sm:$0xff] }
 0x249   : > { %v2850_v23 = vpop.f32.mrf.mxu2  ;;  %v3190_v5 = vunpack.c.l.b16 %v3134_v34  ;;  %v2432_v3 = vpack.c.b16 %v2415_v37, %v2414_v29  ;;  %v3140_v55 = vrot.slane %v5114_v41, 5 }
 0x24a   : > { %v4094_v1 = vadd.f32 %v4093_v40, %v4063_v17  ;;  %v2915_v47 = vadd.f32 %v2850_v23, %v2597_v60  ;;  %v3308_v49 = vpop.f32.mrf.mxu3  ;;  %5485 = vst [vmem:[%s6851_s10 + $0x20] sm:$0xff] %v5425_v50   ;;  %v3560_v40 = vsel %vm6128_vm5, %v5226_v52, %v3559_v62  ;;  %v3566_v50 = vrot.slane %v5114_v41, 6  ;;  %v5115_v17 = vld [vmem:[%s5852_s13 + $0xec] sm:$0x1]  ;;  %v5210_v60 = vld [vmem:[%s5852_s13 + $0xe4] sm:$0xc] }
 0x24b   : > { %v2534_v19 = vpop.f32.mrf.mxu1  ;;  %v3616_v0 = vunpack.c.l.b16 %v3560_v40  ;;  %v3208_v21 = vpack.c.b16 %v3191_v25, %v3190_v5  ;;  %v5211_v23 = vld [vmem:[%s5852_s13 + $0xec] sm:$0x3]  ;;  %v3142_v27 = vrot.slane %v3140_v55, 4  ;;  %v3143_v34 = vrot.slane %v5115_v17, 5  ;;  %v7122_v5 = vld [vmem:[#allocation10_spill] sm:$0xff] }
 0x24c   : > { %v3373_v8 = vadd.f32 %v3308_v49, %v2915_v47  ;;  %v2598_v53 = vadd.f32 %v2534_v19, %v6554_v9  ;;  %v2366_v47 = vrot.slane %v2364_v45, 4  ;;  %v2367_v19 = vrot.slane %v4859_v48, 6 }
 0x24d   : > { %v3736_v24 = vpop.f32.mrf.mxu0  ;;  %v3634_v52 = vpack.c.b16 %v3617_v4, %v3616_v0  ;;  %v3568_v22 = vrot.slane %v3566_v50, 4  ;;  %v3569_v40 = vrot.slane %v5211_v23, 6  ;;  %v3141_v42 = vsel %vm5883_vm2, %v5131_v11, %v3140_v55  ;;  %v5376_v23 = vld [vmem:[%s5852_s13 + $0xe4] sm:$0xff]  ;;  %s5401_s13 = sshll.u32 %s5742_s18, 7 }
 0x24e   : > { %v3799_v16 = vadd.f32 %v3734_v56, %v3373_v8  ;;  %v5227_v8 = vrot.slane %v5210_v60, 10  ;;  %s4146_s14 = scalar_lea.hbm %s7111_s2, %s5401_s13 }
 0x24f   : > { %s4149_s26 = sshll.u32 %s4146_s14, 4  ;;  %s4150_s26 = int_to_ptr.hbm [resolvable:$true] %s4149_s26 }
 0x250   : > { %v4025_v31 = vadd.f32 %v4024_v46, %v3799_v16  ;;  %v4064_v30 = vmul.f32 %v3799_v16, %v3799_v16  ;;  %s5626_s30 = sshra.s32 %s4150_s26, 4  ;;  %s5627_s30 = int_to_ptr.hbm [resolvable:$true] %s5626_s30 }
 0x251   : > { %v2852_v62 = vpop.f32.mrf.mxu2  ;;  %s5628_s5 = scalar_lea.hbm %s5627_s30, 128  ;;  %p5633_p1 = scmp.lt.s32.totalorder %s5627_s30, %s7111_s2 }
 0x252   : > { %v4095_v56 = vadd.f32 %v4094_v1, %v4064_v30  ;;  %v2916_v54 = vadd.f32 %v2852_v62, %v2598_v53  ;;  %v3310_v18 = vpop.f32.mrf.mxu3  ;;  %v4875_v1 = vrot.slane %v4858_v57, 10  ;;  %v2368_v62 = vsel %vm6128_vm5, %v2366_v47, %v2367_v19  ;;  %p5629_p12 = scmp.ne.s32.totalorder %s5627_s30, %s5628_s5  ;;  %p5634_p2 = scmp.lt.s32.totalorder %s5632_s9, %s5628_s5 }
 0x253   : > { %v2537_v33 = vpop.f32.mrf.mxu1  ;;  %v3192_v57 = vunpack.c.l.b16 %v3141_v42 }
 0x254   : > { %v3374_v9 = vadd.f32 %v3310_v18, %v2916_v54  ;;  %v2599_v25 = vadd.f32 %v2537_v33, %v7122_v5  ;;  %v2365_v53 = vsel %vm6128_vm5, %v4875_v1, %v2364_v45  ;;  %v3144_v54 = vsel %vm5883_vm2, %v3142_v27, %v3143_v34  ;;  %p5630_p13 = pnand %p5629_p12, %p5821_p4  ;;  %p5635_p3 = por %p5634_p2, %p5633_p1 }
 0x255   : > { %v3739_v46 = vpop.f32.mrf.mxu0  ;;  %v3570_v18 = vsel %vm6128_vm5, %v3568_v22, %v3569_v40  ;;  %v2416_v45 = vunpack.c.l.b16 %v2365_v53  ;;  %v3193_v33 = vunpack.c.l.b16 %v3144_v54 }
 0x256   : > { %v3800_v49 = vadd.f32 %v3736_v24, %v3374_v9  ;;  %2576 = vmatmul.bf16.gmra.mxu1 %v2432_v3  ;;  %2894 = vmatmul.bf16.gmra.mxu2 %v5375_v59  ;;  %v2417_v59 = vunpack.c.l.b16 %v2368_v62  ;;  %p5631_p0 = pneg %p5630_p13 }
 0x257   : > { %3352 = vmatmul.bf16.gmra.mxu3 %v3208_v21  ;;  %v3209_v1 = vpack.c.b16 %v3193_v33, %v3192_v57 }
 0x258   : > { %3778 = vmatmul.bf16.gmra.mxu0 %v3634_v52  ;;  %v5430_v12 = vpack.c.bf16 %v3800_v49, %v3799_v16  ;;  %v4026_v29 = vadd.f32 %v4025_v31, %v3800_v49  ;;  %v4065_v37 = vmul.f32 %v3800_v49, %v3800_v49  ;;  %v3619_v52 = vunpack.c.l.b16 %v3570_v18  ;;  %p5636_p5 = pnand %p5635_p3, %p5631_p0 }
 0x259   : > { %v2855_v0 = vpop.f32.mrf.mxu2 }
 0x25a   : > { %v4096_v4 = vadd.f32 %v4095_v56, %v4065_v37  ;;  %v2917_v24 = vadd.f32 %v2855_v0, %v2599_v25  ;;  %v3313_v41 = vpop.f32.mrf.mxu3  ;;  %5486 = vst [vmem:[%s6851_s10 + $0x28] sm:$0xff] %v5430_v12   ;;  %v3567_v56 = vsel %vm6128_vm5, %v5227_v8, %v3566_v50  ;;  %v2433_v50 = vpack.c.b16 %v2417_v59, %v2416_v45 }
 0x25b   : > { %v2539_v30 = vpop.f32.mrf.mxu1  ;;  %v3618_v21 = vunpack.c.l.b16 %v3567_v56 }
 0x25c   : > { %v3375_v16 = vadd.f32 %v3313_v41, %v2917_v24  ;;  %v2600_v15 = vadd.f32 %v2539_v30, %v6578_v36 }
 0x25d   : > { %v3741_v31 = vpop.f32.mrf.mxu0  ;;  %v3635_v47 = vpack.c.b16 %v3619_v52, %v3618_v21 }
 0x25e   : > { %v3801_v3 = vadd.f32 %v3739_v46, %v3375_v16 }
 0x260   : > { %v4027_v55 = vadd.f32 %v4026_v29, %v3801_v3  ;;  %v4066_v48 = vmul.f32 %v3801_v3, %v3801_v3 }
 0x261   : > { %v2857_v26 = vpop.f32.mrf.mxu2 }
 0x262   : > { %v4097_v9 = vadd.f32 %v4096_v4, %v4066_v48  ;;  %v2918_v17 = vadd.f32 %v2857_v26, %v2600_v15  ;;  %v3315_v60 = vpop.f32.mrf.mxu3 }
 0x263   : > { %v2542_v7 = vpop.f32.mrf.mxu1 }
 0x264   : > { %v3376_v46 = vadd.f32 %v3315_v60, %v2918_v17  ;;  %v2601_v34 = vadd.f32 %v2542_v7, %v6593_v51 }
 0x265   : > { %v3744_v49 = vpop.f32.mrf.mxu0 }
 0x266   : > { %v3802_v19 = vadd.f32 %v3741_v31, %v3376_v46  ;;  %2581 = vmatmul.bf16.gmra.mxu1 %v2433_v50  ;;  %2899 = vmatmul.bf16.gmra.mxu2 %v5376_v23 }
 0x267   : > { %3357 = vmatmul.bf16.gmra.mxu3 %v3209_v1 }
 0x268   : > { %3783 = vmatmul.bf16.gmra.mxu0 %v3635_v47  ;;  %v5435_v11 = vpack.c.bf16 %v3802_v19, %v3801_v3  ;;  %v4028_v27 = vadd.f32 %v4027_v55, %v3802_v19  ;;  %v4067_v36 = vmul.f32 %v3802_v19, %v3802_v19 }
 0x269   : > { %v2860_v8 = vpop.f32.mrf.mxu2 }
 0x26a   : > { %v4098_v22 = vadd.f32 %v4097_v9, %v4067_v36  ;;  %v2919_v40 = vadd.f32 %v2860_v8, %v2601_v34  ;;  %v3318_v12 = vpop.f32.mrf.mxu3  ;;  %5487 = vst [vmem:[%s6851_s10 + $0x30] sm:$0xff] %v5435_v11  }
 0x26b   : > { %v2544_v29 = vpop.f32.mrf.mxu1 }
 0x26c   : > { %v3377_v37 = vadd.f32 %v3318_v12, %v2919_v40  ;;  %v2602_v24 = vadd.f32 %v2544_v29, %v6605_v13 }
 0x26d   : > { %v3746_v5 = vpop.f32.mrf.mxu0 }
 0x26e   : > { %v3803_v25 = vadd.f32 %v3744_v49, %v3377_v37 }
 0x270   : > { %v4029_v0 = vadd.f32 %v4028_v27, %v3803_v25  ;;  %v4068_v4 = vmul.f32 %v3803_v25, %v3803_v25 }
 0x271   : > { %v2862_v41 = vpop.f32.mrf.mxu2 }
 0x272   : > { %v4099_v30 = vadd.f32 %v4098_v22, %v4068_v4  ;;  %v2920_v53 = vadd.f32 %v2862_v41, %v2602_v24  ;;  %v3320_v62 = vpop.f32.mrf.mxu3 }
 0x273   : > { %v2547_v42 = vpop.f32.mrf.mxu1 }
 0x274   : > { %v3378_v51 = vadd.f32 %v3320_v62, %v2920_v53  ;;  %v2603_v3 = vadd.f32 %v2547_v42, %v6620_v2 }
 0x275   : > { %v3749_v16 = vpop.f32.mrf.mxu0 }
 0x276   : > { %v3804_v31 = vadd.f32 %v3746_v5, %v3378_v51 }
 0x278   : > { %v5440_v54 = vpack.c.bf16 %v3804_v31, %v3803_v25  ;;  %v4030_v56 = vadd.f32 %v4029_v0, %v3804_v31  ;;  %v4069_v18 = vmul.f32 %v3804_v31, %v3804_v31 }
 0x279   : > { %v2865_v45 = vpop.f32.mrf.mxu2 }
 0x27a   : > { %v4100_v59 = vadd.f32 %v4099_v30, %v4069_v18  ;;  %v2921_v57 = vadd.f32 %v2865_v45, %v2603_v3  ;;  %v3323_v33 = vpop.f32.mrf.mxu3  ;;  %5488 = vst [vmem:[%s6851_s10 + $0x38] sm:$0xff] %v5440_v54  }
 0x27b   : > { %v2549_v13 = vpop.f32.mrf.mxu1 }
 0x27c   : > { %v3379_v21 = vadd.f32 %v3323_v33, %v2921_v57  ;;  %v2604_v26 = vadd.f32 %v2549_v13, %v6632_v44 }
 0x27d   : > { %v3751_v52 = vpop.f32.mrf.mxu0 }
 0x27e   : > { %v3805_v55 = vadd.f32 %v3749_v16, %v3379_v21 }
 0x280   : > { %v4031_v48 = vadd.f32 %v4030_v56, %v3805_v55  ;;  %v4070_v15 = vmul.f32 %v3805_v55, %v3805_v55 }
 0x281   : > { %v2867_v9 = vpop.f32.mrf.mxu2 }
 0x282   : > { %v4101_v17 = vadd.f32 %v4100_v59, %v4070_v15  ;;  %v2922_v60 = vadd.f32 %v2867_v9, %v2604_v26  ;;  %v3325_v50 = vpop.f32.mrf.mxu3 }
 0x283   : > { %v2552_v23 = vpop.f32.mrf.mxu1 }
 0x284   : > { %v3380_v2 = vadd.f32 %v3325_v50, %v2922_v60  ;;  %v2605_v19 = vadd.f32 %v2552_v23, %v6647_v39 }
 0x285   : > { %v3754_v7 = vpop.f32.mrf.mxu0 }
 0x286   : > { %v3806_v1 = vadd.f32 %v3751_v52, %v3380_v2 }
 0x288   : > { %v5445_v47 = vpack.c.bf16 %v3806_v1, %v3805_v55  ;;  %v4032_v46 = vadd.f32 %v4031_v48, %v3806_v1  ;;  %v4071_v49 = vmul.f32 %v3806_v1, %v3806_v1 }
 0x289   : > { %v2870_v11 = vpop.f32.mrf.mxu2 }
 0x28a   : > { %v4102_v27 = vadd.f32 %v4101_v17, %v4071_v49  ;;  %v2923_v36 = vadd.f32 %v2870_v11, %v2605_v19  ;;  %v3328_v34 = vpop.f32.mrf.mxu3  ;;  %5489 = vst [vmem:[%s6851_s10 + $0x40] sm:$0xff] %v5445_v47  }
 0x28b   : > { %v2554_v44 = vpop.f32.mrf.mxu1 }
 0x28c   : > { %v3381_v8 = vadd.f32 %v3328_v34, %v2923_v36  ;;  %v2606_v37 = vadd.f32 %v2554_v44, %v6659_v35 }
 0x28d   : > { %v3756_v22 = vpop.f32.mrf.mxu0 }
 0x28e   : > { %v3807_v40 = vadd.f32 %v3754_v7, %v3381_v8 }
 0x290   : > { %v4033_v12 = vadd.f32 %v4032_v46, %v3807_v40  ;;  %v4072_v29 = vmul.f32 %v3807_v40, %v3807_v40 }
 0x291   : > { %v2872_v5 = vpop.f32.mrf.mxu2 }
 0x292   : > { %v4103_v25 = vadd.f32 %v4102_v27, %v4072_v29  ;;  %v2924_v0 = vadd.f32 %v2872_v5, %v2606_v37  ;;  %v3330_v4 = vpop.f32.mrf.mxu3 }
 0x293   : > { %v2557_v24 = vpop.f32.mrf.mxu1 }
 0x294   : > { %v3382_v39 = vadd.f32 %v3330_v4, %v2924_v0  ;;  %v2607_v51 = vadd.f32 %v2557_v24, %v6674_v61 }
 0x295   : > { %v3759_v41 = vpop.f32.mrf.mxu0 }
 0x296   : > { %v3808_v30 = vadd.f32 %v3756_v22, %v3382_v39 }
 0x298   : > { %v5450_v53 = vpack.c.bf16 %v3808_v30, %v3807_v40  ;;  %v4034_v62 = vadd.f32 %v4033_v12, %v3808_v30  ;;  %v4073_v42 = vmul.f32 %v3808_v30, %v3808_v30 }
 0x299   : > { %v2875_v16 = vpop.f32.mrf.mxu2 }
 0x29a   : > { %v4104_v31 = vadd.f32 %v4103_v25, %v4073_v42  ;;  %v2925_v54 = vadd.f32 %v2875_v16, %v2607_v51  ;;  %v3333_v56 = vpop.f32.mrf.mxu3  ;;  %5490 = vst [vmem:[%s6851_s10 + $0x48] sm:$0xff] %v5450_v53  }
 0x29b   : > { %v2559_v35 = vpop.f32.mrf.mxu1 }
 0x29c   : > { %v3383_v18 = vadd.f32 %v3333_v56, %v2925_v54  ;;  %v2608_v33 = vadd.f32 %v2559_v35, %v6686_v43 }
 0x29d   : > { %v3761_v3 = vpop.f32.mrf.mxu0 }
 0x29e   : > { %v3809_v45 = vadd.f32 %v3759_v41, %v3383_v18 }
 0x2a0   : > { %v4035_v59 = vadd.f32 %v4034_v62, %v3809_v45  ;;  %v4074_v57 = vmul.f32 %v3809_v45, %v3809_v45 }
 0x2a1   : > { %v2877_v13 = vpop.f32.mrf.mxu2 }
 0x2a2   : > { %v4105_v21 = vadd.f32 %v4104_v31, %v4074_v57  ;;  %v2926_v52 = vadd.f32 %v2877_v13, %v2608_v33  ;;  %v3335_v55 = vpop.f32.mrf.mxu3 }
 0x2a3   : > { %v2562_v48 = vpop.f32.mrf.mxu1 }
 0x2a4   : > { %v3384_v61 = vadd.f32 %v3335_v55, %v2926_v52  ;;  %v2609_v50 = vadd.f32 %v2562_v48, %v6701_v63 }
 0x2a5   : > { %v3764_v15 = vpop.f32.mrf.mxu0 }
 0x2a6   : > { %v3810_v26 = vadd.f32 %v3761_v3, %v3384_v61 }
 0x2a8   : > { %v5455_v9 = vpack.c.bf16 %v3810_v26, %v3809_v45  ;;  %v4036_v17 = vadd.f32 %v4035_v59, %v3810_v26  ;;  %v4075_v60 = vmul.f32 %v3810_v26, %v3810_v26 }
 0x2a9   : > { %v2880_v23 = vpop.f32.mrf.mxu2 }
 0x2aa   : > { %v4106_v2 = vadd.f32 %v4105_v21, %v4075_v60  ;;  %v2927_v7 = vadd.f32 %v2880_v23, %v2609_v50  ;;  %v3338_v1 = vpop.f32.mrf.mxu3  ;;  %5491 = vst [vmem:[%s6851_s10 + $0x50] sm:$0xff] %v5455_v9  }
 0x2ab   : > { %v2564_v43 = vpop.f32.mrf.mxu1 }
 0x2ac   : > { %v3385_v47 = vadd.f32 %v3338_v1, %v2927_v7  ;;  %v2610_v27 = vadd.f32 %v2564_v43, %v6713_v38 }
 0x2ad   : > { %v3766_v46 = vpop.f32.mrf.mxu0 }
 0x2ae   : > { %v3811_v49 = vadd.f32 %v3764_v15, %v3385_v47 }
 0x2b0   : > { %v4037_v19 = vadd.f32 %v4036_v17, %v3811_v49  ;;  %v4076_v11 = vmul.f32 %v3811_v49, %v3811_v49 }
 0x2b1   : > { %v2882_v36 = vpop.f32.mrf.mxu2 }
 0x2b2   : > { %v4107_v34 = vadd.f32 %v4106_v2, %v4076_v11  ;;  %v2928_v44 = vadd.f32 %v2882_v36, %v2610_v27  ;;  %v3340_v8 = vpop.f32.mrf.mxu3 }
 0x2b3   : > { %v2567_v22 = vpop.f32.mrf.mxu1 }
 0x2b4   : > { %v3386_v63 = vadd.f32 %v3340_v8, %v2928_v44  ;;  %v2611_v25 = vadd.f32 %v2567_v22, %v6728_v58 }
 0x2b5   : > { %v3769_v40 = vpop.f32.mrf.mxu0 }
 0x2b6   : > { %v3812_v12 = vadd.f32 %v3766_v46, %v3386_v63 }
 0x2b8   : > { %v5460_v29 = vpack.c.bf16 %v3812_v12, %v3811_v49  ;;  %v4038_v37 = vadd.f32 %v4037_v19, %v3812_v12  ;;  %v4077_v5 = vmul.f32 %v3812_v12, %v3812_v12 }
 0x2b9   : > { %v2885_v0 = vpop.f32.mrf.mxu2 }
 0x2ba   : > { %v4108_v4 = vadd.f32 %v4107_v34, %v4077_v5  ;;  %v2929_v24 = vadd.f32 %v2885_v0, %v2611_v25  ;;  %v3343_v39 = vpop.f32.mrf.mxu3  ;;  %5492 = vst [vmem:[%s6851_s10 + $0x58] sm:$0xff] %v5460_v29  }
 0x2bb   : > { %v2569_v38 = vpop.f32.mrf.mxu1 }
 0x2bc   : > { %v3387_v41 = vadd.f32 %v3343_v39, %v2929_v24  ;;  %v2612_v51 = vadd.f32 %v2569_v38, %v6740_v32 }
 0x2bd   : > { %v3771_v30 = vpop.f32.mrf.mxu0 }
 0x2be   : > { %v3813_v53 = vadd.f32 %v3769_v40, %v3387_v41 }
 0x2c0   : > { %v4039_v62 = vadd.f32 %v4038_v37, %v3813_v53  ;;  %v4078_v42 = vmul.f32 %v3813_v53, %v3813_v53 }
 0x2c1   : > { %v2887_v16 = vpop.f32.mrf.mxu2 }
 0x2c2   : > { %v4109_v31 = vadd.f32 %v4108_v4, %v4078_v42  ;;  %v2930_v54 = vadd.f32 %v2887_v16, %v2612_v51  ;;  %v3345_v56 = vpop.f32.mrf.mxu3 }
 0x2c3   : > { %v2572_v35 = vpop.f32.mrf.mxu1 }
 0x2c4   : > { %v3388_v58 = vadd.f32 %v3345_v56, %v2930_v54  ;;  %v2613_v33 = vadd.f32 %v2572_v35, %v6755_v10  ;;  %v7123_v35 = vld [vmem:[#allocation11_spill] sm:$0xff] }
 0x2c5   : > { %v3774_v18 = vpop.f32.mrf.mxu0 }
 0x2c6   : > { %v3814_v3 = vadd.f32 %v3771_v30, %v3388_v58 }
 0x2c8   : > { %v5465_v45 = vpack.c.bf16 %v3814_v3, %v3813_v53  ;;  %v4040_v59 = vadd.f32 %v4039_v62, %v3814_v3  ;;  %v4079_v57 = vmul.f32 %v3814_v3, %v3814_v3 }
 0x2c9   : > { %v2890_v13 = vpop.f32.mrf.mxu2 }
 0x2ca   : > { %v4110_v21 = vadd.f32 %v4109_v31, %v4079_v57  ;;  %v2931_v52 = vadd.f32 %v2890_v13, %v2613_v33  ;;  %v3348_v55 = vpop.f32.mrf.mxu3  ;;  %5493 = vst [vmem:[%s6851_s10 + $0x60] sm:$0xff] %v5465_v45  }
 0x2cb   : > { %v2574_v32 = vpop.f32.mrf.mxu1 }
 0x2cc   : > { %v3389_v48 = vadd.f32 %v3348_v55, %v2931_v52  ;;  %v2614_v17 = vadd.f32 %v2574_v32, %v6767_v28 }
 0x2cd   : > { %v3776_v61 = vpop.f32.mrf.mxu0 }
 0x2ce   : > { %v3815_v15 = vadd.f32 %v3774_v18, %v3389_v48 }
 0x2d0   : > { %v4041_v26 = vadd.f32 %v4040_v59, %v3815_v15  ;;  %v4080_v9 = vmul.f32 %v3815_v15, %v3815_v15 }
 0x2d1   : > { %v2892_v60 = vpop.f32.mrf.mxu2 }
 0x2d2   : > { %v4111_v50 = vadd.f32 %v4110_v21, %v4080_v9  ;;  %v2932_v23 = vadd.f32 %v2892_v60, %v2614_v17  ;;  %v3350_v2 = vpop.f32.mrf.mxu3 }
 0x2d3   : > { %v2577_v7 = vpop.f32.mrf.mxu1 }
 0x2d4   : > { %v3390_v10 = vadd.f32 %v3350_v2, %v2932_v23  ;;  %v2615_v19 = vadd.f32 %v2577_v7, %v6782_v20 }
 0x2d5   : > { %v3779_v43 = vpop.f32.mrf.mxu0 }
 0x2d6   : > { %v3816_v1 = vadd.f32 %v3776_v61, %v3390_v10 }
 0x2d8   : > { %v5470_v47 = vpack.c.bf16 %v3816_v1, %v3815_v15  ;;  %v4042_v46 = vadd.f32 %v4041_v26, %v3816_v1  ;;  %v4081_v49 = vmul.f32 %v3816_v1, %v3816_v1 }
 0x2d9   : > { %v2895_v11 = vpop.f32.mrf.mxu2 }
 0x2da   : > { %v4112_v27 = vadd.f32 %v4111_v50, %v4081_v49  ;;  %v2933_v36 = vadd.f32 %v2895_v11, %v2615_v19  ;;  %v3353_v34 = vpop.f32.mrf.mxu3  ;;  %5494 = vst [vmem:[%s6851_s10 + $0x68] sm:$0xff] %v5470_v47  }
 0x2db   : > { %v2579_v28 = vpop.f32.mrf.mxu1 }
 0x2dc   : > { %v3391_v44 = vadd.f32 %v3353_v34, %v2933_v36  ;;  %v2616_v40 = vadd.f32 %v2579_v28, %v6794_v14 }
 0x2dd   : > { %v3781_v12 = vpop.f32.mrf.mxu0 }
 0x2de   : > { %v3817_v8 = vadd.f32 %v3779_v43, %v3391_v44 }
 0x2e0   : > { %v4043_v22 = vadd.f32 %v4042_v46, %v3817_v8  ;;  %v4082_v63 = vmul.f32 %v3817_v8, %v3817_v8 }
 0x2e1   : > { %v2897_v29 = vpop.f32.mrf.mxu2 }
 0x2e2   : > { %v4113_v37 = vadd.f32 %v4112_v27, %v4082_v63  ;;  %v2934_v5 = vadd.f32 %v2897_v29, %v2616_v40  ;;  %v3355_v25 = vpop.f32.mrf.mxu3 }
 0x2e3   : > { %v2582_v0 = vpop.f32.mrf.mxu1 }
 0x2e4   : > { %v3392_v20 = vadd.f32 %v3355_v25, %v2934_v5  ;;  %v2617_v41 = vadd.f32 %v2582_v0, %v6809_v6 }
 0x2e5   : > { %v3784_v14 = vpop.f32.mrf.mxu0 }
 0x2e6   : > { %v3818_v4 = vadd.f32 %v3781_v12, %v3392_v20 }
 0x2e8   : > { %v5475_v24 = vpack.c.bf16 %v3818_v4, %v3817_v8  ;;  %v4044_v39 = vadd.f32 %v4043_v22, %v3818_v4  ;;  %v4083_v38 = vmul.f32 %v3818_v4, %v3818_v4 }
 0x2e9   : > { %v2900_v30 = vpop.f32.mrf.mxu2 }
 0x2ea   : > { %v4114_v53 = vadd.f32 %v4113_v37, %v4083_v38  ;;  %v2935_v62 = vadd.f32 %v2900_v30, %v2617_v41  ;;  %v3358_v42 = vpop.f32.mrf.mxu3  ;;  %5495 = vst [vmem:[%s6851_s10 + $0x70] sm:$0xff] %v5475_v24  }
 0x2eb   : > { %v2584_v16 = vpop.f32.mrf.mxu1 }
 0x2ec   : > { %v3393_v51 = vadd.f32 %v3358_v42, %v2935_v62  ;;  %v2618_v58 = vadd.f32 %v2584_v16, %v7123_v35 }
 0x2ed   : > { %v3786_v57 = vpop.f32.mrf.mxu0 }
 0x2ee   : > { %v3819_v31 = vadd.f32 %v3784_v14, %v3393_v51 }
 0x2f0   : > { %v4045_v54 = vadd.f32 %v4044_v39, %v3819_v31  ;;  %v4084_v56 = vmul.f32 %v3819_v31, %v3819_v31 }
 0x2f1   : > { %v2902_v18 = vpop.f32.mrf.mxu2 }
 0x2f2   : > { %v4115_v3 = vadd.f32 %v4114_v53, %v4084_v56  ;;  %v2936_v45 = vadd.f32 %v2902_v18, %v2618_v58  ;;  %v3360_v6 = vpop.f32.mrf.mxu3 }
 0x2f4   : > { %v3394_v59 = vadd.f32 %v3360_v6, %v2936_v45 }
 0x2f6   : > { %v3820_v33 = vadd.f32 %v3786_v57, %v3394_v59 }
 0x2f8   : > { %v5480_v13 = vpack.c.bf16 %v3820_v33, %v3819_v31  ;;  %v4046_v21 = vadd.f32 %v4045_v54, %v3820_v33  ;;  %v4085_v52 = vmul.f32 %v3820_v33, %v3820_v33 }
 0x2fa   : > { %v4047_v55 = vrot.slane %v4046_v21, 4  ;;  %v4116_v32 = vadd.f32 %v4115_v3, %v4085_v52  ;;  %5496 = vst [vmem:[%s6851_s10 + $0x78] sm:$0xff] %v5480_v13  }
 0x2fb   : > { %5639 = shalt.err (!%p5636_p5)
}
 0x2fc   : > { %s5752_s10 = smov 64   ;;  %s5753_s12 = smov 4   ;;  %v4048_v48 = vadd.f32 %v4047_v55, %v4046_v21  ;;  %v4117_v61 = vrot.slane %v4116_v32, 4 }
 0x2fd   : > { %5522 = dma.vmem_to_hbm [thread:$0]  (%p5821_p4), %s4148_s24, 2048, %s4150_s26, %s4125_s29, %s5752_s10, %s5752_s10, %s5753_s12  }
 0x2fe   : > { %v4118_v15 = vadd.f32 %v4117_v61, %v4116_v32  ;;  %v4049_v26 = vrot.slane %v4048_v48, 2  ;;  %s4162_s5 = scalar_lea.hbm %s7112_s3, %s5742_s18  ;;  %s7038_s6 = sand.u32 1, %s4340_s21  }
 0x2ff   : > { %s4176_s13 = scalar_lea.hbm %s7113_s4, %s5742_s18  ;;  %s249_s11 = scalar_lea.vmem [#allocation5], %s6840_s8 }
 0x300   : > { %v4050_v9 = vadd.f32 %v4049_v26, %v4048_v48  ;;  %v4119_v17 = vrot.slane %v4118_v15, 2  ;;  %s7045_s24 = sshll.u32 %s249_s11, 4  ;;  %s7047_s26 = sshll.u32 %s4162_s5, 4  ;;  %s4165_s24 = int_to_ptr.vmem [resolvable:$true] %s7045_s24  ;;  %s4167_s26 = int_to_ptr.hbm [resolvable:$true] %s7047_s26 }
 0x301   : > { %s255_s29 = scalar_lea.vmem [#allocation7], %s6840_s8  ;;  %s7052_s10 = sshll.u32 %s4176_s13, 4  ;;  %s4181_s10 = int_to_ptr.hbm [resolvable:$true] %s7052_s10 }
 0x302   : > { %v4051_v60 = vrot.slane %v4050_v9, 1  ;;  %v4120_v50 = vadd.f32 %v4119_v17, %v4118_v15  ;;  %s7050_s21 = sshll.u32 %s255_s29, 4  ;;  %s4130_s18 = scalar_lea.sflag [#allocation6], %s7038_s6  ;;  %s4179_s21 = int_to_ptr.vmem [resolvable:$true] %s7050_s21 }
 0x303   : > { %s5654_s12 = sshra.s32 %s4167_s26, 4  ;;  %s5660_s5 = scalar_lea.hbm %s7112_s3, 2  ;;  %s5655_s12 = int_to_ptr.hbm [resolvable:$true] %s5654_s12 }
 0x304   : > { %v4052_v23 = vadd.f32 %v4051_v60, %v4050_v9  ;;  %v4121_v2 = vrot.slane %v4120_v50, 1  ;;  %s5656_s14 = scalar_lea.hbm %s5655_s12, 1  ;;  %p5661_p10 = scmp.lt.s32.totalorder %s5655_s12, %s7112_s3 }
 0x305   : > { %p5657_p6 = scmp.ne.s32.totalorder %s5655_s12, %s5656_s14  ;;  %p5662_p11 = scmp.lt.s32.totalorder %s5660_s5, %s5656_s14 }
 0x306   : > { %4053 = vst [vmem:[%s249_s11] sm:$0x1] %v4052_v23  ;;  %v4122_v7 = vadd.f32 %v4121_v2, %v4120_v50 }
 0x307   : > { %p5658_p7 = pnand %p5657_p6, %p5821_p4  ;;  %p5663_p12 = por %p5662_p11, %p5661_p10 }
 0x309   : > { %p5659_p9 = pneg %p5658_p7 }
 0x30b   : > { %p5664_p13 = pnand %p5663_p12, %p5659_p9 }
 0x30d   : > { %5667 = shalt.err (!%p5664_p13)
}
 0x30e   : > { %5523 = dma.vmem_to_hbm [thread:$0]  (%p5821_p4), %s4165_s24, 16, %s4167_s26, %s4130_s18   ;;  %4123 = vst [vmem:[%s255_s29] sm:$0x1] %v4122_v7 }
 0x30f   : > { %s5682_s6 = sshra.s32 %s4181_s10, 4  ;;  %s5688_s14 = scalar_lea.hbm %s7113_s4, 2  ;;  %s5683_s6 = int_to_ptr.hbm [resolvable:$true] %s5682_s6 }
 0x310   : > { %s5684_s13 = scalar_lea.hbm %s5683_s6, 1  ;;  %p5689_p3 = scmp.lt.s32.totalorder %s5683_s6, %s7113_s4 }
 0x311   : > { %p5685_p0 = scmp.ne.s32.totalorder %s5683_s6, %s5684_s13  ;;  %p5690_p5 = scmp.lt.s32.totalorder %s5688_s14, %s5684_s13 }
 0x313   : > { %p5686_p1 = pnand %p5685_p0, %p5821_p4  ;;  %p5691_p6 = por %p5690_p5, %p5689_p3 }
 0x315   : > { %p5687_p2 = pneg %p5686_p1 }
 0x317   : > { %p5692_p7 = pnand %p5691_p6, %p5687_p2 }
 0x319   : > { %5695 = shalt.err (!%p5692_p7)
}
 0x31a   : > { %5524 = dma.vmem_to_hbm [thread:$0]  (%p5821_p4), %s4179_s21, 16, %s4181_s10, %s4130_s18  }
 0x31b PF: > { %p5538_p9 = scmp.ge.s32.totalorder %s5750_s20, 2  ;;  %s4192_s24 = sand.u32 1, %s5730_s15  }
 0x31c   : > { %s4193_s26 = scalar_lea.sflag [#allocation4], %s4192_s24 }
 0x31d   : > { %p5529_p10 = pnand %p5538_p9, %p5830_p8 }
 0x31f   : > { %p5530_p11 = pneg %p5529_p10 }
 0x321   : > { %5721 = dma.done.wait (%p5530_p11), %s4193_s26, 2048  }
 0x322   : > { %5723 = vsyncadd (%p5530_p11), %s4193_s26, 4294965248  ;;  %s4202_s25 = sand.u32 1, %s4341_s22  }
 0x323   : > { %s4203_s29 = scalar_lea.sflag [#allocation6], %s4202_s25 }
 0x324   : > { %5725 = dma.done.wait (%p5530_p11), %s4203_s29, 32  }
 0x325   : > { %5727 = vsyncadd (%p5530_p11), %s4203_s29, 4294967264  ;;  %s21_s20 = sadd.s32 1, %s5750_s20   ;;  %s7124_s15 = smov %s5734_s16 }
 0x326   : > { %p18_p4 = scmp.ge.s32.totalorder %s21_s20, 4   ;;  %s7125_s16 = smov %s5738_s17 }
 0x327   : > { %s7126_s17 = smov %s5836_s28  ;;  %s7127_s18 = smov %s5746_s19 }
 0x328   : > { %s7128_s19 = smov %s7130_s23  ;;  %20 = sbr.rel (!%p18_p4) target bundleno = 6 (0x6), region = 117 }
 0x32d   :  { %4217 = vsyncpa [#allocation4], 1 }
 0x32e   :  { %4219 = vsyncpa [#allocation4 + $0x1], 1 }
 0x32f   :  { %4220 = vsyncpa [#allocation6], 1 }
 0x330   :  { %4222 = vsyncpa [#allocation6 + $0x1], 1 }

</bundles_post_ra>
